<compile_context>
chip_gen: v7x
topology: tpu7x:2x2x1
jax: 0.10.0
libtpu: 0.0.40
codegen_flags: <defaults>
</compile_context>

<pallas_src>
import functools

import jax
import jax.numpy as jnp
from jax import lax
from jax.experimental import pallas as pl
from jax.experimental.pallas import tpu as pltpu

EPS = 1e-5
L_IN = 2             # input sequence length (see TODO above)
C_IN = 10
FC4_OUT = 16836
FC4_OUT_PAD = 16896  # 132 * 128
TILE_N = 2816        # 22 * 128 ; 6 tiles total
N_TILES = FC4_OUT_PAD // TILE_N


# --------------------------------------------------------------------------
# Fused kernel: feature stack (conv1+bn1+relu, conv2+bn2+relu, flatten,
# fc1..fc3 + bn + relu) computed once at grid step 0 into a VMEM scratch,
# then fc4 (128 -> 16896) streamed tile-by-tile over the grid.
# --------------------------------------------------------------------------
def fused_kernel(x_ref, w1cT, b1c, g1, be1,
                 w2aT, w2bT, b2c, g2, be2,
                 w1aT, w1bT, bf1, g3, be3,
                 wf2T, bf2, g4, be4,
                 wf3T, bf3, g5, be5,
                 w4_ref, b4_ref,
                 out_ref, h_scratch, *, batch):

    @pl.when(pl.program_id(0) == 0)
    def _():
        b_pad = x_ref.shape[0]
        inv_b = 1.0 / batch
        # mask out padded batch rows from all batch statistics
        mask = (lax.broadcasted_iota(jnp.int32, (b_pad, 1), 0)
                < batch).astype(jnp.float32)

        def bn_relu(z, g, b):
            mu = jnp.sum(z * mask, axis=0, keepdims=True) * inv_b
            d = (z - mu) * mask
            va = jnp.sum(d * d, axis=0, keepdims=True) * inv_b
            return jnp.maximum((z - mu) * lax.rsqrt(va + EPS) * g + b, 0.0)

        x = x_ref[...]                                          # (B_pad, Cin*K)

        # conv1 (k=2, pad=0, L_in=2 -> L_out=1) as a matmul, then bn1+relu.
        y1 = jnp.dot(x, w1cT[...], preferred_element_type=jnp.float32) + b1c[...]
        h1 = bn_relu(y1, g1[...], be1[...])

        # conv2 (k=2, pad=1, L_in=1 -> L_out=2): each output position is a
        # matmul against one kernel tap (the other tap hits zero padding).
        o0 = jnp.dot(h1, w2bT[...], preferred_element_type=jnp.float32) + b2c[...]
        o1 = jnp.dot(h1, w2aT[...], preferred_element_type=jnp.float32) + b2c[...]
        # bn2: stats per channel over (batch, length=2)
        inv_2b = 0.5 * inv_b
        m2 = (jnp.sum(o0 * mask, axis=0, keepdims=True) +
              jnp.sum(o1 * mask, axis=0, keepdims=True)) * inv_2b
        d0 = (o0 - m2) * mask
        d1 = (o1 - m2) * mask
        v2 = (jnp.sum(d0 * d0, axis=0, keepdims=True) +
              jnp.sum(d1 * d1, axis=0, keepdims=True)) * inv_2b
        inv2 = lax.rsqrt(v2 + EPS)
        a0 = jnp.maximum((o0 - m2) * inv2 * g2[...] + be2[...], 0.0)   # l = 0
        a1 = jnp.maximum((o1 - m2) * inv2 * g2[...] + be2[...], 0.0)   # l = 1

        # flatten (torch order: feature index = 2*c + l) folded into fc1 weights
        z1 = (jnp.dot(a0, w1aT[...], preferred_element_type=jnp.float32) +
              jnp.dot(a1, w1bT[...], preferred_element_type=jnp.float32) +
              bf1[...])
        h = bn_relu(z1, g3[...], be3[...])
        # dropout: identity (see TODO at top)

        z2 = jnp.dot(h, wf2T[...], preferred_element_type=jnp.float32) + bf2[...]
        h = bn_relu(z2, g4[...], be4[...])
        # dropout: identity

        z3 = jnp.dot(h, wf3T[...], preferred_element_type=jnp.float32) + bf3[...]
        h = bn_relu(z3, g5[...], be5[...])

        h_scratch[...] = h.astype(jnp.bfloat16)

    # fc4 tile: bf16 x bf16 on the MXU, f32 accumulation.
    out_ref[...] = (jnp.dot(h_scratch[...], w4_ref[...],
                            preferred_element_type=jnp.float32) + b4_ref[...])


# --------------------------------------------------------------------------
# One-time parameter preparation (NOT in the per-call jit path).
# --------------------------------------------------------------------------
def prepare_params(p):
    f32 = jnp.float32
    row = lambda v: v.reshape(1, -1).astype(f32)
    pp = dict(
        w1cT=p["conv1_w"].reshape(31, C_IN * 2).T.astype(f32),   # (20, 31)
        b1c=row(p["conv1_b"]), g1=row(p["bn1_g"]), be1=row(p["bn1_b"]),
        w2aT=p["conv2_w"][:, :, 0].T.astype(f32),                # (31, 32) tap 0
        w2bT=p["conv2_w"][:, :, 1].T.astype(f32),                # (31, 32) tap 1
        b2c=row(p["conv2_b"]), g2=row(p["bn2_g"]), be2=row(p["bn2_b"]),
        w1aT=p["fc1_w"][:, 0::2].T.astype(f32),                  # (32, 512) l=0
        w1bT=p["fc1_w"][:, 1::2].T.astype(f32),                  # (32, 512) l=1
        bf1=row(p["fc1_b"]), g3=row(p["bn3_g"]), be3=row(p["bn3_b"]),
        wf2T=p["fc2_w"].T.astype(f32),                           # (512, 256)
        bf2=row(p["fc2_b"]), g4=row(p["bn4_g"]), be4=row(p["bn4_b"]),
        wf3T=p["fc3_w"].T.astype(f32),                           # (256, 128)
        bf3=row(p["fc3_b"]), g5=row(p["bn5_g"]), be5=row(p["bn5_b"]),
        # fc4 weight: pre-transposed, padded to 16896, stored bf16 (HBM halved)
        w4T=jnp.pad(p["fc4_w"].T.astype(f32),
                    ((0, 0), (0, FC4_OUT_PAD - FC4_OUT))).astype(jnp.bfloat16),
        b4=jnp.pad(p["fc4_b"].astype(f32),
                   (0, FC4_OUT_PAD - FC4_OUT)).reshape(1, FC4_OUT_PAD),
    )
    return pp


_FEAT_KEYS = ("w1cT", "b1c", "g1", "be1",
              "w2aT", "w2bT", "b2c", "g2", "be2",
              "w1aT", "w1bT", "bf1", "g3", "be3",
              "wf2T", "bf2", "g4", "be4",
              "wf3T", "bf3", "g5", "be5")


@jax.jit
def convnet_forward(x, pp):
    B = x.shape[0]
    B_PAD = ((B + 7) // 8) * 8                    # full sublane group
    x_flat = x.reshape(B, C_IN * L_IN).astype(jnp.float32)
    x_flat = jnp.pad(x_flat, ((0, B_PAD - B), (0, 0)))

    feat_inputs = tuple(pp[k] for k in _FEAT_KEYS)
    # constant-index full-array specs -> resident in VMEM across all grid steps
    feat_specs = [pl.BlockSpec(a.shape, lambda j: (0, 0)) for a in feat_inputs]

    feat_flops = 2 * B_PAD * (20 * 31 + 31 * 32 * 2 + 64 * 512
                              + 512 * 256 + 256 * 128)
    cost = pl.CostEstimate(
        flops=2 * B_PAD * 128 * FC4_OUT_PAD + feat_flops,
        transcendentals=0,
        bytes_accessed=(pp["w4T"].size * 2                 # bf16 fc4 weight
                        + B_PAD * FC4_OUT_PAD * 4          # f32 output
                        + sum(a.size * 4 for a in feat_inputs)
                        + x_flat.size * 4),
    )

    out = pl.pallas_call(
        functools.partial(fused_kernel, batch=B),
        out_shape=jax.ShapeDtypeStruct((B_PAD, FC4_OUT_PAD), jnp.float32),
        grid=(N_TILES,),
        in_specs=([pl.BlockSpec((B_PAD, C_IN * L_IN), lambda j: (0, 0))]
                  + feat_specs
                  + [pl.BlockSpec((128, TILE_N), lambda j: (0, j)),
                     pl.BlockSpec((1, TILE_N), lambda j: (0, j))]),
        out_specs=pl.BlockSpec((B_PAD, TILE_N), lambda j: (0, j)),
        scratch_shapes=[pltpu.VMEM((B_PAD, 128), jnp.bfloat16)],
        compiler_params=pltpu.CompilerParams(
            dimension_semantics=("arbitrary",)),   # scratch carried across steps
        cost_estimate=cost,
    )(x_flat, *feat_inputs, pp["w4T"], pp["b4"])

    return out[:B, :FC4_OUT]


# --------------------------------------------------------------------------
# Pure-JAX reference (independent formulation) for correctness checking.
# --------------------------------------------------------------------------
def reference_forward(x, p):
    def bn_conv(z, g, b):
        m = jnp.mean(z, axis=(0, 2), keepdims=True)
        v = jnp.mean((z - m) ** 2, axis=(0, 2), keepdims=True)
        return (z - m) * lax.rsqrt(v + EPS) * g[None, :, None] + b[None, :, None]

    def bn_fc(z, g, b):
        m = jnp.mean(z, axis=0, keepdims=True)
        v = jnp.mean((z - m) ** 2, axis=0, keepdims=True)
        return (z - m) * lax.rsqrt(v + EPS) * g[None, :] + b[None, :]

    hi = lax.Precision.HIGHEST
    B = x.shape[0]
    # conv1: valid, k=2, L=2 -> 1
    y1 = jnp.einsum('bck,ock->bo', x, p["conv1_w"], precision=hi)
    y1 = (y1 + p["conv1_b"])[:, :, None]                     # (B, 31, 1)
    h1 = jnp.maximum(bn_conv(y1, p["bn1_g"], p["bn1_b"]), 0.0)
    # conv2: pad=1, k=2, L=1 -> 2
    xp = jnp.pad(h1, ((0, 0), (0, 0), (1, 1)))
    y2 = jnp.stack(
        [jnp.einsum('bck,ock->bo', xp[:, :, t:t + 2], p["conv2_w"], precision=hi)
         + p["conv2_b"] for t in range(2)], axis=-1)          # (B, 32, 2)
    h2 = jnp.maximum(bn_conv(y2, p["bn2_g"], p["bn2_b"]), 0.0)
    flat = h2.reshape(B, -1)                                  # torch .view order
    z = jnp.maximum(bn_fc(flat @ p["fc1_w"].T + p["fc1_b"],
                          p["bn3_g"], p["bn3_b"]), 0.0)
    z = jnp.maximum(bn_fc(z @ p["fc2_w"].T + p["fc2_b"],
                          p["bn4_g"], p["bn4_b"]), 0.0)
    z = jnp.maximum(bn_fc(z @ p["fc3_w"].T + p["fc3_b"],
                          p["bn5_g"], p["bn5_b"]), 0.0)
    return z @ p["fc4_w"].T + p["fc4_b"]


def make_params(key):
    ks = jax.random.split(key, 22)
    n = lambda k, s, sc: (sc * jax.random.normal(k, s)).astype(jnp.float32)
    p = {
        "conv1_w": n(ks[0], (31, C_IN, 2), 0.2),  "conv1_b": n(ks[1], (31,), 0.1),
        "bn1_g": 1.0 + n(ks[2], (31,), 0.1),      "bn1_b": n(ks[3], (31,), 0.1),
        "conv2_w": n(ks[4], (32, 31, 2), 0.15),   "conv2_b": n(ks[5], (32,), 0.1),
        "bn2_g": 1.0 + n(ks[6], (32,), 0.1),      "bn2_b": n(ks[7], (32,), 0.1),
        "fc1_w": n(ks[8], (512, 64), 0.1),        "fc1_b": n(ks[9], (512,), 0.05),
        "bn3_g": 1.0 + n(ks[10], (512,), 0.1),    "bn3_b": n(ks[11], (512,), 0.1),
        "fc2_w": n(ks[12], (256, 512), 0.05),     "fc2_b": n(ks[13], (256,), 0.05),
        "bn4_g": 1.0 + n(ks[14], (256,), 0.1),    "bn4_b": n(ks[15], (256,), 0.1),
        "fc3_w": n(ks[16], (128, 256), 0.05),     "fc3_b": n(ks[17], (128,), 0.05),
        "bn5_g": 1.0 + n(ks[18], (128,), 0.1),    "bn5_b": n(ks[19], (128,), 0.1),
        "fc4_w": n(ks[20], (FC4_OUT, 128), 0.05), "fc4_b": n(ks[21], (FC4_OUT,), 0.05),
    }
    return p


if __name__ == "__main__":
    key = jax.random.PRNGKey(0)
    kx, kp = jax.random.split(key)
    x = jax.random.normal(kx, (2, C_IN, L_IN), dtype=jnp.float32)  # NCL
    params = make_params(kp)

    prepped = prepare_params(params)          # one-time weight prep (hoisted)
    prepped = jax.block_until_ready(prepped)

    out = convnet_forward(x, prepped)
    out = jax.block_until_ready(out)
    assert out.shape == (2, FC4_OUT) and out.dtype == jnp.float32

    ref = reference_forward(x, params)
    err = float(jnp.max(jnp.abs(out - ref)))
    assert err < 5e-2, f"mismatch vs reference: max abs err = {err}"

    print("KERNEL_OK")
</pallas_src>

<mosaic_0001>
module attributes {stable_mosaic.version = 11 : i64} {
  func.func @fused_kernel(%arg0: i32, %arg1: memref<8x20xf32, #tpu.memory_space<vmem>>, %arg2: memref<20x31xf32, #tpu.memory_space<vmem>>, %arg3: memref<1x31xf32, #tpu.memory_space<vmem>>, %arg4: memref<1x31xf32, #tpu.memory_space<vmem>>, %arg5: memref<1x31xf32, #tpu.memory_space<vmem>>, %arg6: memref<31x32xf32, #tpu.memory_space<vmem>>, %arg7: memref<31x32xf32, #tpu.memory_space<vmem>>, %arg8: memref<1x32xf32, #tpu.memory_space<vmem>>, %arg9: memref<1x32xf32, #tpu.memory_space<vmem>>, %arg10: memref<1x32xf32, #tpu.memory_space<vmem>>, %arg11: memref<32x512xf32, #tpu.memory_space<vmem>>, %arg12: memref<32x512xf32, #tpu.memory_space<vmem>>, %arg13: memref<1x512xf32, #tpu.memory_space<vmem>>, %arg14: memref<1x512xf32, #tpu.memory_space<vmem>>, %arg15: memref<1x512xf32, #tpu.memory_space<vmem>>, %arg16: memref<512x256xf32, #tpu.memory_space<vmem>>, %arg17: memref<1x256xf32, #tpu.memory_space<vmem>>, %arg18: memref<1x256xf32, #tpu.memory_space<vmem>>, %arg19: memref<1x256xf32, #tpu.memory_space<vmem>>, %arg20: memref<256x128xf32, #tpu.memory_space<vmem>>, %arg21: memref<1x128xf32, #tpu.memory_space<vmem>>, %arg22: memref<1x128xf32, #tpu.memory_space<vmem>>, %arg23: memref<1x128xf32, #tpu.memory_space<vmem>>, %arg24: memref<128x2816xbf16, #tpu.memory_space<vmem>>, %arg25: memref<1x2816xf32, #tpu.memory_space<vmem>>, %arg26: memref<8x2816xf32, #tpu.memory_space<vmem>>, %arg27: memref<8x128xbf16, #tpu.memory_space<vmem>>) attributes {dimension_semantics = [#tpu.dimension_semantics<arbitrary>], iteration_bounds = array<i64: 6>, scalar_prefetch = 0 : i64, scratch_operands = 1 : i64, tpu.core_type = #tpu.core_type<tc>, window_params = [{pipeline_mode = #tpu.pipeline_mode<synchronous>, transform_indices = @transform_0, window_bounds = array<i64: 8, 20>}, {pipeline_mode = #tpu.pipeline_mode<synchronous>, transform_indices = @transform_1, window_bounds = array<i64: 20, 31>}, {pipeline_mode = #tpu.pipeline_mode<synchronous>, transform_indices = @transform_2, window_bounds = array<i64: 1, 31>}, {pipeline_mode = #tpu.pipeline_mode<synchronous>, transform_indices = @transform_3, window_bounds = array<i64: 1, 31>}, {pipeline_mode = #tpu.pipeline_mode<synchronous>, transform_indices = @transform_4, window_bounds = array<i64: 1, 31>}, {pipeline_mode = #tpu.pipeline_mode<synchronous>, transform_indices = @transform_5, window_bounds = array<i64: 31, 32>}, {pipeline_mode = #tpu.pipeline_mode<synchronous>, transform_indices = @transform_6, window_bounds = array<i64: 31, 32>}, {pipeline_mode = #tpu.pipeline_mode<synchronous>, transform_indices = @transform_7, window_bounds = array<i64: 1, 32>}, {pipeline_mode = #tpu.pipeline_mode<synchronous>, transform_indices = @transform_8, window_bounds = array<i64: 1, 32>}, {pipeline_mode = #tpu.pipeline_mode<synchronous>, transform_indices = @transform_9, window_bounds = array<i64: 1, 32>}, {pipeline_mode = #tpu.pipeline_mode<synchronous>, transform_indices = @transform_10, window_bounds = array<i64: 32, 512>}, {pipeline_mode = #tpu.pipeline_mode<synchronous>, transform_indices = @transform_11, window_bounds = array<i64: 32, 512>}, {pipeline_mode = #tpu.pipeline_mode<synchronous>, transform_indices = @transform_12, window_bounds = array<i64: 1, 512>}, {pipeline_mode = #tpu.pipeline_mode<synchronous>, transform_indices = @transform_13, window_bounds = array<i64: 1, 512>}, {pipeline_mode = #tpu.pipeline_mode<synchronous>, transform_indices = @transform_14, window_bounds = array<i64: 1, 512>}, {pipeline_mode = #tpu.pipeline_mode<synchronous>, transform_indices = @transform_15, window_bounds = array<i64: 512, 256>}, {pipeline_mode = #tpu.pipeline_mode<synchronous>, transform_indices = @transform_16, window_bounds = array<i64: 1, 256>}, {pipeline_mode = #tpu.pipeline_mode<synchronous>, transform_indices = @transform_17, window_bounds = array<i64: 1, 256>}, {pipeline_mode = #tpu.pipeline_mode<synchronous>, transform_indices = @transform_18, window_bounds = array<i64: 1, 256>}, {pipeline_mode = #tpu.pipeline_mode<synchronous>, transform_indices = @transform_19, window_bounds = array<i64: 256, 128>}, {pipeline_mode = #tpu.pipeline_mode<synchronous>, transform_indices = @transform_20, window_bounds = array<i64: 1, 128>}, {pipeline_mode = #tpu.pipeline_mode<synchronous>, transform_indices = @transform_21, window_bounds = array<i64: 1, 128>}, {pipeline_mode = #tpu.pipeline_mode<synchronous>, transform_indices = @transform_22, window_bounds = array<i64: 1, 128>}, {transform_indices = @transform_23, window_bounds = array<i64: 128, 2816>}, {transform_indices = @transform_24, window_bounds = array<i64: 1, 2816>}, {transform_indices = @transform_25, window_bounds = array<i64: 8, 2816>}]} {
    %c0_i32 = arith.constant 0 : i32
    %0 = arith.cmpi eq, %arg0, %c0_i32 : i32
    %1 = arith.extui %0 : i1 to i32
    %c0_i32_0 = arith.constant 0 : i32
    %2 = arith.cmpi ne, %1, %c0_i32_0 : i32
    scf.if %2 {
      %10 = tpu.iota {dimensions = array<i32: 0>} : vector<8x1xi32>
      %c2_i32 = arith.constant 2 : i32
      %11 = vector.broadcast %c2_i32 : i32 to vector<8x1xi32>
      %12 = arith.cmpi slt, %10, %11 : vector<8x1xi32>
      %13 = arith.extui %12 : vector<8x1xi1> to vector<8x1xi32>
      %14 = arith.sitofp %13 : vector<8x1xi32> to vector<8x1xf32>
      %c0_8 = arith.constant 0 : index
      %c0_9 = arith.constant 0 : index
      %15 = vector.load %arg1[%c0_8, %c0_9] : memref<8x20xf32, #tpu.memory_space<vmem>>, vector<8x20xf32>
      %c0_10 = arith.constant 0 : index
      %c0_11 = arith.constant 0 : index
      %16 = vector.load %arg2[%c0_10, %c0_11] : memref<20x31xf32, #tpu.memory_space<vmem>>, vector<20x31xf32>
      %cst_12 = arith.constant dense<0.000000e+00> : vector<8x31xf32>
      %17 = tpu.matmul %15, %16, %cst_12 {dimension_numbers = #tpu.dot_dimension_numbers<[1], [0], [0], [1], [0, 0, 1, 1], [], []>} : vector<8x20xf32>, vector<20x31xf32>, vector<8x31xf32> -> vector<8x31xf32>
      %c0_13 = arith.constant 0 : index
      %c0_14 = arith.constant 0 : index
      %18 = vector.load %arg3[%c0_13, %c0_14] : memref<1x31xf32, #tpu.memory_space<vmem>>, vector<1x31xf32>
      %19 = vector.broadcast %18 : vector<1x31xf32> to vector<8x31xf32>
      %20 = arith.addf %17, %19 : vector<8x31xf32>
      %c0_15 = arith.constant 0 : index
      %c0_16 = arith.constant 0 : index
      %21 = vector.load %arg4[%c0_15, %c0_16] : memref<1x31xf32, #tpu.memory_space<vmem>>, vector<1x31xf32>
      %c0_17 = arith.constant 0 : index
      %c0_18 = arith.constant 0 : index
      %22 = vector.load %arg5[%c0_17, %c0_18] : memref<1x31xf32, #tpu.memory_space<vmem>>, vector<1x31xf32>
      %23 = vector.broadcast %14 : vector<8x1xf32> to vector<8x31xf32>
      %24 = arith.mulf %20, %23 : vector<8x31xf32>
      %cst_19 = arith.constant dense<0.000000e+00> : vector<31xf32>
      %25 = vector.multi_reduction <add>, %24, %cst_19 [0] : vector<8x31xf32> to vector<31xf32>
      %26 = vector.shape_cast %25 : vector<31xf32> to vector<1x31xf32>
      %cst_20 = arith.constant 5.000000e-01 : f32
      %27 = vector.broadcast %cst_20 : f32 to vector<1x31xf32>
      %28 = arith.mulf %26, %27 : vector<1x31xf32>
      %29 = vector.broadcast %28 : vector<1x31xf32> to vector<8x31xf32>
      %30 = arith.subf %20, %29 : vector<8x31xf32>
      %31 = vector.broadcast %14 : vector<8x1xf32> to vector<8x31xf32>
      %32 = arith.mulf %30, %31 : vector<8x31xf32>
      %33 = arith.mulf %32, %32 : vector<8x31xf32>
      %cst_21 = arith.constant dense<0.000000e+00> : vector<31xf32>
      %34 = vector.multi_reduction <add>, %33, %cst_21 [0] : vector<8x31xf32> to vector<31xf32>
      %35 = vector.shape_cast %34 : vector<31xf32> to vector<1x31xf32>
      %cst_22 = arith.constant 5.000000e-01 : f32
      %36 = vector.broadcast %cst_22 : f32 to vector<1x31xf32>
      %37 = arith.mulf %35, %36 : vector<1x31xf32>
      %38 = vector.broadcast %28 : vector<1x31xf32> to vector<8x31xf32>
      %39 = arith.subf %20, %38 : vector<8x31xf32>
      %cst_23 = arith.constant 9.99999974E-6 : f32
      %40 = vector.broadcast %cst_23 : f32 to vector<1x31xf32>
      %41 = arith.addf %37, %40 : vector<1x31xf32>
      %42 = math.rsqrt %41 : vector<1x31xf32>
      %43 = vector.broadcast %42 : vector<1x31xf32> to vector<8x31xf32>
      %44 = arith.mulf %39, %43 : vector<8x31xf32>
      %45 = vector.broadcast %21 : vector<1x31xf32> to vector<8x31xf32>
      %46 = arith.mulf %44, %45 : vector<8x31xf32>
      %47 = vector.broadcast %22 : vector<1x31xf32> to vector<8x31xf32>
      %48 = arith.addf %46, %47 : vector<8x31xf32>
      %cst_24 = arith.constant 0.000000e+00 : f32
      %49 = vector.broadcast %cst_24 : f32 to vector<8x31xf32>
      %50 = arith.maximumf %48, %49 : vector<8x31xf32>
      %c0_25 = arith.constant 0 : index
      %c0_26 = arith.constant 0 : index
      %51 = vector.load %arg7[%c0_25, %c0_26] : memref<31x32xf32, #tpu.memory_space<vmem>>, vector<31x32xf32>
      %cst_27 = arith.constant dense<0.000000e+00> : vector<8x32xf32>
      %52 = tpu.matmul %50, %51, %cst_27 {dimension_numbers = #tpu.dot_dimension_numbers<[1], [0], [0], [1], [0, 0, 1, 1], [], []>} : vector<8x31xf32>, vector<31x32xf32>, vector<8x32xf32> -> vector<8x32xf32>
      %c0_28 = arith.constant 0 : index
      %c0_29 = arith.constant 0 : index
      %53 = vector.load %arg8[%c0_28, %c0_29] : memref<1x32xf32, #tpu.memory_space<vmem>>, vector<1x32xf32>
      %54 = vector.broadcast %53 : vector<1x32xf32> to vector<8x32xf32>
      %55 = arith.addf %52, %54 : vector<8x32xf32>
      %c0_30 = arith.constant 0 : index
      %c0_31 = arith.constant 0 : index
      %56 = vector.load %arg6[%c0_30, %c0_31] : memref<31x32xf32, #tpu.memory_space<vmem>>, vector<31x32xf32>
      %cst_32 = arith.constant dense<0.000000e+00> : vector<8x32xf32>
      %57 = tpu.matmul %50, %56, %cst_32 {dimension_numbers = #tpu.dot_dimension_numbers<[1], [0], [0], [1], [0, 0, 1, 1], [], []>} : vector<8x31xf32>, vector<31x32xf32>, vector<8x32xf32> -> vector<8x32xf32>
      %c0_33 = arith.constant 0 : index
      %c0_34 = arith.constant 0 : index
      %58 = vector.load %arg8[%c0_33, %c0_34] : memref<1x32xf32, #tpu.memory_space<vmem>>, vector<1x32xf32>
      %59 = vector.broadcast %58 : vector<1x32xf32> to vector<8x32xf32>
      %60 = arith.addf %57, %59 : vector<8x32xf32>
      %61 = vector.broadcast %14 : vector<8x1xf32> to vector<8x32xf32>
      %62 = arith.mulf %55, %61 : vector<8x32xf32>
      %cst_35 = arith.constant dense<0.000000e+00> : vector<32xf32>
      %63 = vector.multi_reduction <add>, %62, %cst_35 [0] : vector<8x32xf32> to vector<32xf32>
      %64 = vector.shape_cast %63 : vector<32xf32> to vector<1x32xf32>
      %65 = vector.broadcast %14 : vector<8x1xf32> to vector<8x32xf32>
      %66 = arith.mulf %60, %65 : vector<8x32xf32>
      %cst_36 = arith.constant dense<0.000000e+00> : vector<32xf32>
      %67 = vector.multi_reduction <add>, %66, %cst_36 [0] : vector<8x32xf32> to vector<32xf32>
      %68 = vector.shape_cast %67 : vector<32xf32> to vector<1x32xf32>
      %69 = arith.addf %64, %68 : vector<1x32xf32>
      %cst_37 = arith.constant 2.500000e-01 : f32
      %70 = vector.broadcast %cst_37 : f32 to vector<1x32xf32>
      %71 = arith.mulf %69, %70 : vector<1x32xf32>
      %72 = vector.broadcast %71 : vector<1x32xf32> to vector<8x32xf32>
      %73 = arith.subf %55, %72 : vector<8x32xf32>
      %74 = vector.broadcast %14 : vector<8x1xf32> to vector<8x32xf32>
      %75 = arith.mulf %73, %74 : vector<8x32xf32>
      %76 = vector.broadcast %71 : vector<1x32xf32> to vector<8x32xf32>
      %77 = arith.subf %60, %76 : vector<8x32xf32>
      %78 = vector.broadcast %14 : vector<8x1xf32> to vector<8x32xf32>
      %79 = arith.mulf %77, %78 : vector<8x32xf32>
      %80 = arith.mulf %75, %75 : vector<8x32xf32>
      %cst_38 = arith.constant dense<0.000000e+00> : vector<32xf32>
      %81 = vector.multi_reduction <add>, %80, %cst_38 [0] : vector<8x32xf32> to vector<32xf32>
      %82 = vector.shape_cast %81 : vector<32xf32> to vector<1x32xf32>
      %83 = arith.mulf %79, %79 : vector<8x32xf32>
      %cst_39 = arith.constant dense<0.000000e+00> : vector<32xf32>
      %84 = vector.multi_reduction <add>, %83, %cst_39 [0] : vector<8x32xf32> to vector<32xf32>
      %85 = vector.shape_cast %84 : vector<32xf32> to vector<1x32xf32>
      %86 = arith.addf %82, %85 : vector<1x32xf32>
      %cst_40 = arith.constant 2.500000e-01 : f32
      %87 = vector.broadcast %cst_40 : f32 to vector<1x32xf32>
      %88 = arith.mulf %86, %87 : vector<1x32xf32>
      %cst_41 = arith.constant 9.99999974E-6 : f32
      %89 = vector.broadcast %cst_41 : f32 to vector<1x32xf32>
      %90 = arith.addf %88, %89 : vector<1x32xf32>
      %91 = math.rsqrt %90 : vector<1x32xf32>
      %92 = vector.broadcast %71 : vector<1x32xf32> to vector<8x32xf32>
      %93 = arith.subf %55, %92 : vector<8x32xf32>
      %94 = vector.broadcast %91 : vector<1x32xf32> to vector<8x32xf32>
      %95 = arith.mulf %93, %94 : vector<8x32xf32>
      %c0_42 = arith.constant 0 : index
      %c0_43 = arith.constant 0 : index
      %96 = vector.load %arg9[%c0_42, %c0_43] : memref<1x32xf32, #tpu.memory_space<vmem>>, vector<1x32xf32>
      %97 = vector.broadcast %96 : vector<1x32xf32> to vector<8x32xf32>
      %98 = arith.mulf %95, %97 : vector<8x32xf32>
      %c0_44 = arith.constant 0 : index
      %c0_45 = arith.constant 0 : index
      %99 = vector.load %arg10[%c0_44, %c0_45] : memref<1x32xf32, #tpu.memory_space<vmem>>, vector<1x32xf32>
      %100 = vector.broadcast %99 : vector<1x32xf32> to vector<8x32xf32>
      %101 = arith.addf %98, %100 : vector<8x32xf32>
      %cst_46 = arith.constant 0.000000e+00 : f32
      %102 = vector.broadcast %cst_46 : f32 to vector<8x32xf32>
      %103 = arith.maximumf %101, %102 : vector<8x32xf32>
      %104 = vector.broadcast %71 : vector<1x32xf32> to vector<8x32xf32>
      %105 = arith.subf %60, %104 : vector<8x32xf32>
      %106 = vector.broadcast %91 : vector<1x32xf32> to vector<8x32xf32>
      %107 = arith.mulf %105, %106 : vector<8x32xf32>
      %c0_47 = arith.constant 0 : index
      %c0_48 = arith.constant 0 : index
      %108 = vector.load %arg9[%c0_47, %c0_48] : memref<1x32xf32, #tpu.memory_space<vmem>>, vector<1x32xf32>
      %109 = vector.broadcast %108 : vector<1x32xf32> to vector<8x32xf32>
      %110 = arith.mulf %107, %109 : vector<8x32xf32>
      %c0_49 = arith.constant 0 : index
      %c0_50 = arith.constant 0 : index
      %111 = vector.load %arg10[%c0_49, %c0_50] : memref<1x32xf32, #tpu.memory_space<vmem>>, vector<1x32xf32>
      %112 = vector.broadcast %111 : vector<1x32xf32> to vector<8x32xf32>
      %113 = arith.addf %110, %112 : vector<8x32xf32>
      %cst_51 = arith.constant 0.000000e+00 : f32
      %114 = vector.broadcast %cst_51 : f32 to vector<8x32xf32>
      %115 = arith.maximumf %113, %114 : vector<8x32xf32>
      %c0_52 = arith.constant 0 : index
      %c0_53 = arith.constant 0 : index
      %116 = vector.load %arg11[%c0_52, %c0_53] : memref<32x512xf32, #tpu.memory_space<vmem>>, vector<32x512xf32>
      %cst_54 = arith.constant dense<0.000000e+00> : vector<8x512xf32>
      %117 = tpu.matmul %103, %116, %cst_54 {dimension_numbers = #tpu.dot_dimension_numbers<[1], [0], [0], [1], [0, 0, 1, 1], [], []>} : vector<8x32xf32>, vector<32x512xf32>, vector<8x512xf32> -> vector<8x512xf32>
      %c0_55 = arith.constant 0 : index
      %c0_56 = arith.constant 0 : index
      %118 = vector.load %arg12[%c0_55, %c0_56] : memref<32x512xf32, #tpu.memory_space<vmem>>, vector<32x512xf32>
      %cst_57 = arith.constant dense<0.000000e+00> : vector<8x512xf32>
      %119 = tpu.matmul %115, %118, %cst_57 {dimension_numbers = #tpu.dot_dimension_numbers<[1], [0], [0], [1], [0, 0, 1, 1], [], []>} : vector<8x32xf32>, vector<32x512xf32>, vector<8x512xf32> -> vector<8x512xf32>
      %120 = arith.addf %117, %119 : vector<8x512xf32>
      %c0_58 = arith.constant 0 : index
      %c0_59 = arith.constant 0 : index
      %121 = vector.load %arg13[%c0_58, %c0_59] : memref<1x512xf32, #tpu.memory_space<vmem>>, vector<1x512xf32>
      %122 = vector.broadcast %121 : vector<1x512xf32> to vector<8x512xf32>
      %123 = arith.addf %120, %122 : vector<8x512xf32>
      %c0_60 = arith.constant 0 : index
      %c0_61 = arith.constant 0 : index
      %124 = vector.load %arg14[%c0_60, %c0_61] : memref<1x512xf32, #tpu.memory_space<vmem>>, vector<1x512xf32>
      %c0_62 = arith.constant 0 : index
      %c0_63 = arith.constant 0 : index
      %125 = vector.load %arg15[%c0_62, %c0_63] : memref<1x512xf32, #tpu.memory_space<vmem>>, vector<1x512xf32>
      %126 = vector.broadcast %14 : vector<8x1xf32> to vector<8x512xf32>
      %127 = arith.mulf %123, %126 : vector<8x512xf32>
      %cst_64 = arith.constant dense<0.000000e+00> : vector<512xf32>
      %128 = vector.multi_reduction <add>, %127, %cst_64 [0] : vector<8x512xf32> to vector<512xf32>
      %129 = vector.shape_cast %128 : vector<512xf32> to vector<1x512xf32>
      %cst_65 = arith.constant 5.000000e-01 : f32
      %130 = vector.broadcast %cst_65 : f32 to vector<1x512xf32>
      %131 = arith.mulf %129, %130 : vector<1x512xf32>
      %132 = vector.broadcast %131 : vector<1x512xf32> to vector<8x512xf32>
      %133 = arith.subf %123, %132 : vector<8x512xf32>
      %134 = vector.broadcast %14 : vector<8x1xf32> to vector<8x512xf32>
      %135 = arith.mulf %133, %134 : vector<8x512xf32>
      %136 = arith.mulf %135, %135 : vector<8x512xf32>
      %cst_66 = arith.constant dense<0.000000e+00> : vector<512xf32>
      %137 = vector.multi_reduction <add>, %136, %cst_66 [0] : vector<8x512xf32> to vector<512xf32>
      %138 = vector.shape_cast %137 : vector<512xf32> to vector<1x512xf32>
      %cst_67 = arith.constant 5.000000e-01 : f32
      %139 = vector.broadcast %cst_67 : f32 to vector<1x512xf32>
      %140 = arith.mulf %138, %139 : vector<1x512xf32>
      %141 = vector.broadcast %131 : vector<1x512xf32> to vector<8x512xf32>
      %142 = arith.subf %123, %141 : vector<8x512xf32>
      %cst_68 = arith.constant 9.99999974E-6 : f32
      %143 = vector.broadcast %cst_68 : f32 to vector<1x512xf32>
      %144 = arith.addf %140, %143 : vector<1x512xf32>
      %145 = math.rsqrt %144 : vector<1x512xf32>
      %146 = vector.broadcast %145 : vector<1x512xf32> to vector<8x512xf32>
      %147 = arith.mulf %142, %146 : vector<8x512xf32>
      %148 = vector.broadcast %124 : vector<1x512xf32> to vector<8x512xf32>
      %149 = arith.mulf %147, %148 : vector<8x512xf32>
      %150 = vector.broadcast %125 : vector<1x512xf32> to vector<8x512xf32>
      %151 = arith.addf %149, %150 : vector<8x512xf32>
      %cst_69 = arith.constant 0.000000e+00 : f32
      %152 = vector.broadcast %cst_69 : f32 to vector<8x512xf32>
      %153 = arith.maximumf %151, %152 : vector<8x512xf32>
      %c0_70 = arith.constant 0 : index
      %c0_71 = arith.constant 0 : index
      %154 = vector.load %arg16[%c0_70, %c0_71] : memref<512x256xf32, #tpu.memory_space<vmem>>, vector<512x256xf32>
      %cst_72 = arith.constant dense<0.000000e+00> : vector<8x256xf32>
      %155 = tpu.matmul %153, %154, %cst_72 {dimension_numbers = #tpu.dot_dimension_numbers<[1], [0], [0], [1], [0, 0, 1, 1], [], []>} : vector<8x512xf32>, vector<512x256xf32>, vector<8x256xf32> -> vector<8x256xf32>
      %c0_73 = arith.constant 0 : index
      %c0_74 = arith.constant 0 : index
      %156 = vector.load %arg17[%c0_73, %c0_74] : memref<1x256xf32, #tpu.memory_space<vmem>>, vector<1x256xf32>
      %157 = vector.broadcast %156 : vector<1x256xf32> to vector<8x256xf32>
      %158 = arith.addf %155, %157 : vector<8x256xf32>
      %c0_75 = arith.constant 0 : index
      %c0_76 = arith.constant 0 : index
      %159 = vector.load %arg18[%c0_75, %c0_76] : memref<1x256xf32, #tpu.memory_space<vmem>>, vector<1x256xf32>
      %c0_77 = arith.constant 0 : index
      %c0_78 = arith.constant 0 : index
      %160 = vector.load %arg19[%c0_77, %c0_78] : memref<1x256xf32, #tpu.memory_space<vmem>>, vector<1x256xf32>
      %161 = vector.broadcast %14 : vector<8x1xf32> to vector<8x256xf32>
      %162 = arith.mulf %158, %161 : vector<8x256xf32>
      %cst_79 = arith.constant dense<0.000000e+00> : vector<256xf32>
      %163 = vector.multi_reduction <add>, %162, %cst_79 [0] : vector<8x256xf32> to vector<256xf32>
      %164 = vector.shape_cast %163 : vector<256xf32> to vector<1x256xf32>
      %cst_80 = arith.constant 5.000000e-01 : f32
      %165 = vector.broadcast %cst_80 : f32 to vector<1x256xf32>
      %166 = arith.mulf %164, %165 : vector<1x256xf32>
      %167 = vector.broadcast %166 : vector<1x256xf32> to vector<8x256xf32>
      %168 = arith.subf %158, %167 : vector<8x256xf32>
      %169 = vector.broadcast %14 : vector<8x1xf32> to vector<8x256xf32>
      %170 = arith.mulf %168, %169 : vector<8x256xf32>
      %171 = arith.mulf %170, %170 : vector<8x256xf32>
      %cst_81 = arith.constant dense<0.000000e+00> : vector<256xf32>
      %172 = vector.multi_reduction <add>, %171, %cst_81 [0] : vector<8x256xf32> to vector<256xf32>
      %173 = vector.shape_cast %172 : vector<256xf32> to vector<1x256xf32>
      %cst_82 = arith.constant 5.000000e-01 : f32
      %174 = vector.broadcast %cst_82 : f32 to vector<1x256xf32>
      %175 = arith.mulf %173, %174 : vector<1x256xf32>
      %176 = vector.broadcast %166 : vector<1x256xf32> to vector<8x256xf32>
      %177 = arith.subf %158, %176 : vector<8x256xf32>
      %cst_83 = arith.constant 9.99999974E-6 : f32
      %178 = vector.broadcast %cst_83 : f32 to vector<1x256xf32>
      %179 = arith.addf %175, %178 : vector<1x256xf32>
      %180 = math.rsqrt %179 : vector<1x256xf32>
      %181 = vector.broadcast %180 : vector<1x256xf32> to vector<8x256xf32>
      %182 = arith.mulf %177, %181 : vector<8x256xf32>
      %183 = vector.broadcast %159 : vector<1x256xf32> to vector<8x256xf32>
      %184 = arith.mulf %182, %183 : vector<8x256xf32>
      %185 = vector.broadcast %160 : vector<1x256xf32> to vector<8x256xf32>
      %186 = arith.addf %184, %185 : vector<8x256xf32>
      %cst_84 = arith.constant 0.000000e+00 : f32
      %187 = vector.broadcast %cst_84 : f32 to vector<8x256xf32>
      %188 = arith.maximumf %186, %187 : vector<8x256xf32>
      %c0_85 = arith.constant 0 : index
      %c0_86 = arith.constant 0 : index
      %189 = vector.load %arg20[%c0_85, %c0_86] : memref<256x128xf32, #tpu.memory_space<vmem>>, vector<256x128xf32>
      %cst_87 = arith.constant dense<0.000000e+00> : vector<8x128xf32>
      %190 = tpu.matmul %188, %189, %cst_87 {dimension_numbers = #tpu.dot_dimension_numbers<[1], [0], [0], [1], [0, 0, 1, 1], [], []>} : vector<8x256xf32>, vector<256x128xf32>, vector<8x128xf32> -> vector<8x128xf32>
      %c0_88 = arith.constant 0 : index
      %c0_89 = arith.constant 0 : index
      %191 = vector.load %arg21[%c0_88, %c0_89] : memref<1x128xf32, #tpu.memory_space<vmem>>, vector<1x128xf32>
      %192 = vector.broadcast %191 : vector<1x128xf32> to vector<8x128xf32>
      %193 = arith.addf %190, %192 : vector<8x128xf32>
      %c0_90 = arith.constant 0 : index
      %c0_91 = arith.constant 0 : index
      %194 = vector.load %arg22[%c0_90, %c0_91] : memref<1x128xf32, #tpu.memory_space<vmem>>, vector<1x128xf32>
      %c0_92 = arith.constant 0 : index
      %c0_93 = arith.constant 0 : index
      %195 = vector.load %arg23[%c0_92, %c0_93] : memref<1x128xf32, #tpu.memory_space<vmem>>, vector<1x128xf32>
      %196 = vector.broadcast %14 : vector<8x1xf32> to vector<8x128xf32>
      %197 = arith.mulf %193, %196 : vector<8x128xf32>
      %cst_94 = arith.constant dense<0.000000e+00> : vector<128xf32>
      %198 = vector.multi_reduction <add>, %197, %cst_94 [0] : vector<8x128xf32> to vector<128xf32>
      %199 = vector.shape_cast %198 : vector<128xf32> to vector<1x128xf32>
      %cst_95 = arith.constant 5.000000e-01 : f32
      %200 = vector.broadcast %cst_95 : f32 to vector<1x128xf32>
      %201 = arith.mulf %199, %200 : vector<1x128xf32>
      %202 = vector.broadcast %201 : vector<1x128xf32> to vector<8x128xf32>
      %203 = arith.subf %193, %202 : vector<8x128xf32>
      %204 = vector.broadcast %14 : vector<8x1xf32> to vector<8x128xf32>
      %205 = arith.mulf %203, %204 : vector<8x128xf32>
      %206 = arith.mulf %205, %205 : vector<8x128xf32>
      %cst_96 = arith.constant dense<0.000000e+00> : vector<128xf32>
      %207 = vector.multi_reduction <add>, %206, %cst_96 [0] : vector<8x128xf32> to vector<128xf32>
      %208 = vector.shape_cast %207 : vector<128xf32> to vector<1x128xf32>
      %cst_97 = arith.constant 5.000000e-01 : f32
      %209 = vector.broadcast %cst_97 : f32 to vector<1x128xf32>
      %210 = arith.mulf %208, %209 : vector<1x128xf32>
      %211 = vector.broadcast %201 : vector<1x128xf32> to vector<8x128xf32>
      %212 = arith.subf %193, %211 : vector<8x128xf32>
      %cst_98 = arith.constant 9.99999974E-6 : f32
      %213 = vector.broadcast %cst_98 : f32 to vector<1x128xf32>
      %214 = arith.addf %210, %213 : vector<1x128xf32>
      %215 = math.rsqrt %214 : vector<1x128xf32>
      %216 = vector.broadcast %215 : vector<1x128xf32> to vector<8x128xf32>
      %217 = arith.mulf %212, %216 : vector<8x128xf32>
      %218 = vector.broadcast %194 : vector<1x128xf32> to vector<8x128xf32>
      %219 = arith.mulf %217, %218 : vector<8x128xf32>
      %220 = vector.broadcast %195 : vector<1x128xf32> to vector<8x128xf32>
      %221 = arith.addf %219, %220 : vector<8x128xf32>
      %cst_99 = arith.constant 0.000000e+00 : f32
      %222 = vector.broadcast %cst_99 : f32 to vector<8x128xf32>
      %223 = arith.maximumf %221, %222 : vector<8x128xf32>
      %224 = arith.truncf %223 : vector<8x128xf32> to vector<8x128xbf16>
      %c0_100 = arith.constant 0 : index
      %c0_101 = arith.constant 0 : index
      %225 = vector.load %arg27[%c0_100, %c0_101] : memref<8x128xbf16, #tpu.memory_space<vmem>>, vector<8x128xbf16>
      tpu.vector_store %arg27[%c0_100, %c0_101], %224 {strides = array<i32>} : memref<8x128xbf16, #tpu.memory_space<vmem>>, vector<8x128xbf16>,
    } else {
    }
    %c0 = arith.constant 0 : index
    %c0_1 = arith.constant 0 : index
    %3 = vector.load %arg27[%c0, %c0_1] : memref<8x128xbf16, #tpu.memory_space<vmem>>, vector<8x128xbf16>
    %c0_2 = arith.constant 0 : index
    %c0_3 = arith.constant 0 : index
    %4 = vector.load %arg24[%c0_2, %c0_3] : memref<128x2816xbf16, #tpu.memory_space<vmem>>, vector<128x2816xbf16>
    %cst = arith.constant dense<0.000000e+00> : vector<8x2816xf32>
    %5 = tpu.matmul %3, %4, %cst {dimension_numbers = #tpu.dot_dimension_numbers<[1], [0], [0], [1], [0, 0, 1, 1], [], []>} : vector<8x128xbf16>, vector<128x2816xbf16>, vector<8x2816xf32> -> vector<8x2816xf32>
    %c0_4 = arith.constant 0 : index
    %c0_5 = arith.constant 0 : index
    %6 = vector.load %arg25[%c0_4, %c0_5] : memref<1x2816xf32, #tpu.memory_space<vmem>>, vector<1x2816xf32>
    %7 = vector.broadcast %6 : vector<1x2816xf32> to vector<8x2816xf32>
    %8 = arith.addf %5, %7 : vector<8x2816xf32>
    %c0_6 = arith.constant 0 : index
    %c0_7 = arith.constant 0 : index
    %9 = vector.load %arg26[%c0_6, %c0_7] : memref<8x2816xf32, #tpu.memory_space<vmem>>, vector<8x2816xf32>
    tpu.vector_store %arg26[%c0_6, %c0_7], %8 {strides = array<i32>} : memref<8x2816xf32, #tpu.memory_space<vmem>>, vector<8x2816xf32>,
    return
  }
  func.func @transform_0(%arg0: i32) -> (i32, i32) {
    %c0_i32 = arith.constant 0 : i32
    %c0_i32_0 = arith.constant 0 : i32
    %c0_i32_1 = arith.constant 0 : i32
    return %c0_i32, %c0_i32_0 : i32, i32
  }
  func.func @transform_1(%arg0: i32) -> (i32, i32) {
    %c0_i32 = arith.constant 0 : i32
    %c0_i32_0 = arith.constant 0 : i32
    %c0_i32_1 = arith.constant 0 : i32
    return %c0_i32, %c0_i32_0 : i32, i32
  }
  func.func @transform_2(%arg0: i32) -> (i32, i32) {
    %c0_i32 = arith.constant 0 : i32
    %c0_i32_0 = arith.constant 0 : i32
    %c0_i32_1 = arith.constant 0 : i32
    return %c0_i32, %c0_i32_0 : i32, i32
  }
  func.func @transform_3(%arg0: i32) -> (i32, i32) {
    %c0_i32 = arith.constant 0 : i32
    %c0_i32_0 = arith.constant 0 : i32
    %c0_i32_1 = arith.constant 0 : i32
    return %c0_i32, %c0_i32_0 : i32, i32
  }
  func.func @transform_4(%arg0: i32) -> (i32, i32) {
    %c0_i32 = arith.constant 0 : i32
    %c0_i32_0 = arith.constant 0 : i32
    %c0_i32_1 = arith.constant 0 : i32
    return %c0_i32, %c0_i32_0 : i32, i32
  }
  func.func @transform_5(%arg0: i32) -> (i32, i32) {
    %c0_i32 = arith.constant 0 : i32
    %c0_i32_0 = arith.constant 0 : i32
    %c0_i32_1 = arith.constant 0 : i32
    return %c0_i32, %c0_i32_0 : i32, i32
  }
  func.func @transform_6(%arg0: i32) -> (i32, i32) {
    %c0_i32 = arith.constant 0 : i32
    %c0_i32_0 = arith.constant 0 : i32
    %c0_i32_1 = arith.constant 0 : i32
    return %c0_i32, %c0_i32_0 : i32, i32
  }
  func.func @transform_7(%arg0: i32) -> (i32, i32) {
    %c0_i32 = arith.constant 0 : i32
    %c0_i32_0 = arith.constant 0 : i32
    %c0_i32_1 = arith.constant 0 : i32
    return %c0_i32, %c0_i32_0 : i32, i32
  }
  func.func @transform_8(%arg0: i32) -> (i32, i32) {
    %c0_i32 = arith.constant 0 : i32
    %c0_i32_0 = arith.constant 0 : i32
    %c0_i32_1 = arith.constant 0 : i32
    return %c0_i32, %c0_i32_0 : i32, i32
  }
  func.func @transform_9(%arg0: i32) -> (i32, i32) {
    %c0_i32 = arith.constant 0 : i32
    %c0_i32_0 = arith.constant 0 : i32
    %c0_i32_1 = arith.constant 0 : i32
    return %c0_i32, %c0_i32_0 : i32, i32
  }
  func.func @transform_10(%arg0: i32) -> (i32, i32) {
    %c0_i32 = arith.constant 0 : i32
    %c0_i32_0 = arith.constant 0 : i32
    %c0_i32_1 = arith.constant 0 : i32
    return %c0_i32, %c0_i32_0 : i32, i32
  }
  func.func @transform_11(%arg0: i32) -> (i32, i32) {
    %c0_i32 = arith.constant 0 : i32
    %c0_i32_0 = arith.constant 0 : i32
    %c0_i32_1 = arith.constant 0 : i32
    return %c0_i32, %c0_i32_0 : i32, i32
  }
  func.func @transform_12(%arg0: i32) -> (i32, i32) {
    %c0_i32 = arith.constant 0 : i32
    %c0_i32_0 = arith.constant 0 : i32
    %c0_i32_1 = arith.constant 0 : i32
    return %c0_i32, %c0_i32_0 : i32, i32
  }
  func.func @transform_13(%arg0: i32) -> (i32, i32) {
    %c0_i32 = arith.constant 0 : i32
    %c0_i32_0 = arith.constant 0 : i32
    %c0_i32_1 = arith.constant 0 : i32
    return %c0_i32, %c0_i32_0 : i32, i32
  }
  func.func @transform_14(%arg0: i32) -> (i32, i32) {
    %c0_i32 = arith.constant 0 : i32
    %c0_i32_0 = arith.constant 0 : i32
    %c0_i32_1 = arith.constant 0 : i32
    return %c0_i32, %c0_i32_0 : i32, i32
  }
  func.func @transform_15(%arg0: i32) -> (i32, i32) {
    %c0_i32 = arith.constant 0 : i32
    %c0_i32_0 = arith.constant 0 : i32
    %c0_i32_1 = arith.constant 0 : i32
    return %c0_i32, %c0_i32_0 : i32, i32
  }
  func.func @transform_16(%arg0: i32) -> (i32, i32) {
    %c0_i32 = arith.constant 0 : i32
    %c0_i32_0 = arith.constant 0 : i32
    %c0_i32_1 = arith.constant 0 : i32
    return %c0_i32, %c0_i32_0 : i32, i32
  }
  func.func @transform_17(%arg0: i32) -> (i32, i32) {
    %c0_i32 = arith.constant 0 : i32
    %c0_i32_0 = arith.constant 0 : i32
    %c0_i32_1 = arith.constant 0 : i32
    return %c0_i32, %c0_i32_0 : i32, i32
  }
  func.func @transform_18(%arg0: i32) -> (i32, i32) {
    %c0_i32 = arith.constant 0 : i32
    %c0_i32_0 = arith.constant 0 : i32
    %c0_i32_1 = arith.constant 0 : i32
    return %c0_i32, %c0_i32_0 : i32, i32
  }
  func.func @transform_19(%arg0: i32) -> (i32, i32) {
    %c0_i32 = arith.constant 0 : i32
    %c0_i32_0 = arith.constant 0 : i32
    %c0_i32_1 = arith.constant 0 : i32
    return %c0_i32, %c0_i32_0 : i32, i32
  }
  func.func @transform_20(%arg0: i32) -> (i32, i32) {
    %c0_i32 = arith.constant 0 : i32
    %c0_i32_0 = arith.constant 0 : i32
    %c0_i32_1 = arith.constant 0 : i32
    return %c0_i32, %c0_i32_0 : i32, i32
  }
  func.func @transform_21(%arg0: i32) -> (i32, i32) {
    %c0_i32 = arith.constant 0 : i32
    %c0_i32_0 = arith.constant 0 : i32
    %c0_i32_1 = arith.constant 0 : i32
    return %c0_i32, %c0_i32_0 : i32, i32
  }
  func.func @transform_22(%arg0: i32) -> (i32, i32) {
    %c0_i32 = arith.constant 0 : i32
    %c0_i32_0 = arith.constant 0 : i32
    %c0_i32_1 = arith.constant 0 : i32
    return %c0_i32, %c0_i32_0 : i32, i32
  }
  func.func @transform_23(%arg0: i32) -> (i32, i32) {
    %c0_i32 = arith.constant 0 : i32
    %c0_i32_0 = arith.constant 0 : i32
    return %c0_i32, %arg0 : i32, i32
  }
  func.func @transform_24(%arg0: i32) -> (i32, i32) {
    %c0_i32 = arith.constant 0 : i32
    %c0_i32_0 = arith.constant 0 : i32
    return %c0_i32, %arg0 : i32, i32
  }
  func.func @transform_25(%arg0: i32) -> (i32, i32) {
    %c0_i32 = arith.constant 0 : i32
    %c0_i32_0 = arith.constant 0 : i32
    return %c0_i32, %arg0 : i32, i32
  }
}

</mosaic_0001>

<bundles_post_ra>
// kernel: convnet_forward.1
= control target key start
LH: loop header
LB: loop body
LE: loop exit
PB: predicated region body
PF: predicated region fallthrough
CT: control target
= control target key end

     0   :  { %s7501_s0 = inlined_call_operand.vmem [shape: f32[8,20], index: 0, kind: input, shape index: {}]   ;;  %s7502_s1 = inlined_call_operand.hbm [shape: f32[20,31], index: 1, kind: input, shape index: {}]   ;;  %s7503_s2 = inlined_call_operand.hbm [shape: f32[1,31], index: 2, kind: input, shape index: {}]   ;;  %s7504_s3 = inlined_call_operand.hbm [shape: f32[1,31], index: 3, kind: input, shape index: {}]   ;;  %s7505_s4 = inlined_call_operand.hbm [shape: f32[1,31], index: 4, kind: input, shape index: {}]   ;;  %s7506_s5 = inlined_call_operand.hbm [shape: f32[31,32], index: 5, kind: input, shape index: {}]   ;;  %s7507_s6 = inlined_call_operand.hbm [shape: f32[31,32], index: 6, kind: input, shape index: {}]   ;;  %s7508_s7 = inlined_call_operand.hbm [shape: f32[1,32], index: 7, kind: input, shape index: {}]   ;;  %s7509_s8 = inlined_call_operand.hbm [shape: f32[1,32], index: 8, kind: input, shape index: {}]   ;;  %s7510_s9 = inlined_call_operand.hbm [shape: f32[1,32], index: 9, kind: input, shape index: {}]   ;;  %s7511_s10 = inlined_call_operand.hbm [shape: f32[32,512], index: 10, kind: input, shape index: {}]   ;;  %s7512_s11 = inlined_call_operand.hbm [shape: f32[32,512], index: 11, kind: input, shape index: {}]   ;;  %s7513_s12 = inlined_call_operand.hbm [shape: f32[1,512], index: 12, kind: input, shape index: {}]   ;;  %s7514_s13 = inlined_call_operand.hbm [shape: f32[1,512], index: 13, kind: input, shape index: {}]   ;;  %s7515_s14 = inlined_call_operand.hbm [shape: f32[1,512], index: 14, kind: input, shape index: {}]   ;;  %s7516_s15 = inlined_call_operand.hbm [shape: f32[512,256], index: 15, kind: input, shape index: {}]   ;;  %s7517_s16 = inlined_call_operand.hbm [shape: f32[1,256], index: 16, kind: input, shape index: {}]   ;;  %s7518_s17 = inlined_call_operand.hbm [shape: f32[1,256], index: 17, kind: input, shape index: {}]   ;;  %s7519_s18 = inlined_call_operand.hbm [shape: f32[1,256], index: 18, kind: input, shape index: {}]   ;;  %s7520_s19 = inlined_call_operand.hbm [shape: f32[256,128], index: 19, kind: input, shape index: {}]   ;;  %s7521_s20 = inlined_call_operand.hbm [shape: f32[1,128], index: 20, kind: input, shape index: {}]   ;;  %s7522_s21 = inlined_call_operand.hbm [shape: f32[1,128], index: 21, kind: input, shape index: {}]   ;;  %s7523_s22 = inlined_call_operand.hbm [shape: f32[1,128], index: 22, kind: input, shape index: {}]   ;;  %s7524_s23 = inlined_call_operand.hbm [shape: bf16[128,16896], index: 23, kind: input, shape index: {}]   ;;  %s7525_s24 = inlined_call_operand.hbm [shape: f32[1,16896], index: 24, kind: input, shape index: {}]   ;;  %s7526_s25 = inlined_call_operand.vmem [shape: f32[8,16896], index: 25, kind: output, shape index: {}]  }
   0x1   :  { %7567 = sst [smem:[#allocation53_spill]] %s7501_s0 }
   0x2   :  { %7568 = sst [smem:[#allocation54_spill]] %s7502_s1 }
   0x3   :  { %7569 = sst [smem:[#allocation55_spill]] %s7503_s2 }
   0x4   :  { %7570 = sst [smem:[#allocation56_spill]] %s7504_s3 }
   0x5   :  { %7571 = sst [smem:[#allocation57_spill]] %s7505_s4 }
   0x6   :  { %7572 = sst [smem:[#allocation58_spill]] %s7506_s5 }
   0x7   :  { %7573 = sst [smem:[#allocation59_spill]] %s7507_s6 }
   0x8   :  { %7574 = sst [smem:[#allocation60_spill]] %s7508_s7 }
   0x9   :  { %7575 = sst [smem:[#allocation61_spill]] %s7509_s8 }
   0xa   :  { %7576 = sst [smem:[#allocation62_spill]] %s7510_s9 }
   0xb   :  { %7577 = sst [smem:[#allocation63_spill]] %s7511_s10 }
   0xc   :  { %7578 = sst [smem:[#allocation64_spill]] %s7512_s11 }
   0xd   :  { %7579 = sst [smem:[#allocation65_spill]] %s7513_s12 }
   0xe   :  { %7580 = sst [smem:[#allocation66_spill]] %s7514_s13 }
   0xf   :  { %7581 = sst [smem:[#allocation67_spill]] %s7515_s14 }
  0x10   :  { %7582 = sst [smem:[#allocation68_spill]] %s7516_s15 }
  0x11   :  { %7583 = sst [smem:[#allocation69_spill]] %s7517_s16 }
  0x12   :  { %7584 = sst [smem:[#allocation70_spill]] %s7518_s17 }
  0x13   :  { %7585 = sst [smem:[#allocation71_spill]] %s7519_s18 }
  0x14   :  { %7586 = sst [smem:[#allocation72_spill]] %s7520_s19 }
  0x15   :  { %7587 = sst [smem:[#allocation73_spill]] %s7521_s20 }
  0x16   :  { %7588 = sst [smem:[#allocation74_spill]] %s7522_s21 }
  0x17   :  { %7589 = sst [smem:[#allocation75_spill]] %s7523_s22 }
  0x18   :  { %7590 = sst [smem:[#allocation76_spill]] %s7524_s23 }
  0x19   :  { %7591 = sst [smem:[#allocation77_spill]] %s7525_s24 }
  0x1a   :  { %7592 = sst [smem:[#allocation78_spill]] %s7526_s25 }
  0x1b   :  { %30 = vsyncpa [#allocation4], 0 }
  0x1c   :  { %31 = vsyncpa [#allocation6], 0 }
  0x1d   :  { %32 = vsyncpa [#allocation9], 0 }
  0x1e   :  { %33 = vsyncpa [#allocation12], 0 }
  0x1f   :  { %34 = vsyncpa [#allocation15], 0 }
  0x20   :  { %35 = vsyncpa [#allocation18], 0 }
  0x21   :  { %36 = vsyncpa [#allocation21], 0 }
  0x22   :  { %37 = vsyncpa [#allocation24], 0 }
  0x23   :  { %38 = vsyncpa [#allocation27], 0 }
  0x24   :  { %39 = vsyncpa [#allocation30], 0 }
  0x25   :  { %40 = vsyncpa [#allocation33], 0 }
  0x26   :  { %41 = vsyncpa [#allocation36], 0  ;;  %s6456_s29 = smov 0   ;;  %s6458_s2 = smov 0  }
  0x27   :  { %s6460_s6 = smov 0   ;;  %s6462_s30 = smov 0  }
  0x28 LB: > { %s6288_s7 = smov [#allocation3]   ;;  %s6477_s26 = sadd.s32 4294967295, %s6286_s30   ;;  %s6286_s30 = sphi %s6462_s30, %s7668_s30   ;;  %s6282_s6 = sphi %s6460_s6, %s7667_s6   ;;  %s6278_s2 = sphi %s6458_s2, %s7666_s2   ;;  %s6274_s29 = sphi %s6456_s29, %s7665_s29  }
  0x29   : > { %s628_s3 = sshll.u32 %s6288_s7, 4  ;;  %p4415_p0 = scmp.ge.s32.totalorder %s6286_s30, 1  ;;  %s6483_s3 = int_to_ptr.vmem [resolvable:$true] %s628_s3 }
  0x2a   : > { %p7549_p1 = scmp.eq.s32.totalorder %s6477_s26, 0  ;;  %p613_p2 = scmp.lt.s32.totalorder %s6286_s30, 7 }
  0x2b   : > { %s6289_s8 = smov [#allocation5]   ;;  %s6290_s28 = smov [#allocation8]  }
  0x2c   : > { %p6485_p4 = pnand %p4415_p0, %p613_p2  ;;  %s642_s27 = sshll.u32 %s6289_s8, 4  ;;  %s6497_s27 = int_to_ptr.vmem [resolvable:$true] %s642_s27 }
  0x2d   : > { %s664_s9 = sshll.u32 %s6290_s28, 4  ;;  %s7596_s7 = sld [smem:[#allocation54_spill]]  ;;  %s6499_s9 = int_to_ptr.vmem [resolvable:$true] %s664_s9 }
  0x2e   : > { %s7593_s1 = scalar_select %p6485_p4, 1, 0 }
  0x2f   : > { %p5059_p5 = pneg %p6485_p4 }
  0x30   : > { %7594 = sst [smem:[#allocation52_spill]] %s7593_s1 }
  0x31   : > { %p6493_p6 = pnand %p5059_p5, %p7549_p1 }
  0x33   : > { %s7595_s4 = scalar_select %p6493_p6, 1, 0 }
  0x34   : > { %s5528_s25 = scalar_lea.hbm %s7596_s7, 384  ;;  %p6509_p8 = pneg %p6493_p6 }
  0x35   : > { %p5529_p7 = scmp.ne.s32.totalorder %s7596_s7, %s5528_s25  ;;  %p5535_p11 = scmp.lt.u32.totalorder %s5528_s25, %s7596_s7 }
  0x37   : > { %p5531_p9 = pnand %p6509_p8, %p5529_p7 }
  0x39   : > { %p5532_p10 = pneg %p5531_p9 }
  0x3b   : > { %p5537_p12 = pnand %p5535_p11, %p5532_p10 }
  0x3d   : > { %5540 = shalt.err (!%p5537_p12)
}
  0x3e   : > { %s5541_s24 = scalar_lea.vmem %s6483_s3, 384  ;;  %p5549_p5 = scmp.lt.s32.totalorder %s6483_s3, %s6483_s3 }
  0x3f   : > { %p5542_p13 = scmp.ne.s32.totalorder %s6483_s3, %s5541_s24  ;;  %p5550_p3 = scmp.lt.s32.totalorder %s5541_s24, %s5541_s24 }
  0x41   : > { %p5544_p0 = pnand %p5542_p13, %p6509_p8  ;;  %p5551_p7 = por %p5550_p3, %p5549_p5 }
  0x43   : > { %p5545_p2 = pneg %p5544_p0 }
  0x45   : > { %p5552_p9 = pnand %p5551_p7, %p5545_p2 }
  0x47   : > { %5555 = shalt.err (!%p5552_p9)
}
  0x48   : > { %s7544_s1 = smov 128   ;;  %s7546_s22 = smov 8  }
  0x49   : > { %5062 = dma.hbm_to_vmem [thread:$0]  (!%p6493_p6), %s7596_s7, 384, %s6483_s3, [#allocation4], %s7544_s1, %s7544_s1, %s7546_s22  }
  0x4a   : > { %s7598_s21 = sld [smem:[#allocation55_spill]] }
  0x50   : > { %s5556_s24 = scalar_lea.hbm %s7598_s21, 16 }
  0x51   : > { %p5557_p3 = scmp.ne.s32.totalorder %s7598_s21, %s5556_s24  ;;  %p5563_p12 = scmp.lt.u32.totalorder %s5556_s24, %s7598_s21 }
  0x53   : > { %p5559_p10 = pnand %p5557_p3, %p6509_p8 }
  0x55   : > { %p5560_p11 = pneg %p5559_p10 }
  0x57   : > { %p5565_p13 = pnand %p5563_p12, %p5560_p11 }
  0x59   : > { %5568 = shalt.err (!%p5565_p13)
}
  0x5a   : > { %s5569_s3 = scalar_lea.vmem %s6497_s27, 16  ;;  %s5576_s17 = scalar_lea.vmem %s6497_s27, 32 }
  0x5b   : > { %p5570_p0 = scmp.ne.s32.totalorder %s6497_s27, %s5569_s3  ;;  %p5577_p7 = scmp.lt.s32.totalorder %s6497_s27, %s6497_s27 }
  0x5c   : > { %p5578_p9 = scmp.lt.s32.totalorder %s5576_s17, %s5569_s3 }
  0x5d   : > { %p5572_p2 = pnand %p5570_p0, %p6509_p8 }
  0x5e   : > { %p5579_p3 = por %p5578_p9, %p5577_p7 }
  0x5f   : > { %p5573_p5 = pneg %p5572_p2 }
  0x61   : > { %p5580_p10 = pnand %p5579_p3, %p5573_p5 }
  0x63   : > { %5583 = shalt.err (!%p5580_p10)
}
  0x64   : > { %5065 = dma.hbm_to_vmem [thread:$0]  (!%p6493_p6), %s7598_s21, 16, %s6497_s27, [#allocation6]  }
  0x65   : > { %s7599_s5 = sld [smem:[#allocation57_spill]] }
  0x6b   : > { %s5584_s0 = scalar_lea.hbm %s7599_s5, 16 }
  0x6c   : > { %p5585_p11 = scmp.ne.s32.totalorder %s7599_s5, %s5584_s0  ;;  %p5591_p0 = scmp.lt.u32.totalorder %s5584_s0, %s7599_s5 }
  0x6e   : > { %p5587_p12 = pnand %p5585_p11, %p6509_p8 }
  0x70   : > { %p5588_p13 = pneg %p5587_p12 }
  0x72   : > { %p5593_p2 = pnand %p5591_p0, %p5588_p13 }
  0x74   : > { %5596 = shalt.err (!%p5593_p2)
}
  0x75   : > { %s5597_s27 = scalar_lea.vmem %s6499_s9, 16  ;;  %s5604_s13 = scalar_lea.vmem %s6499_s9, 32 }
  0x76   : > { %p5598_p5 = scmp.ne.s32.totalorder %s6499_s9, %s5597_s27  ;;  %p5605_p3 = scmp.lt.s32.totalorder %s6499_s9, %s6499_s9 }
  0x77   : > { %p5606_p10 = scmp.lt.s32.totalorder %s5604_s13, %s5597_s27 }
  0x78   : > { %p5600_p7 = pnand %p5598_p5, %p6509_p8 }
  0x79   : > { %p5607_p11 = por %p5606_p10, %p5605_p3 }
  0x7a   : > { %p5601_p9 = pneg %p5600_p7 }
  0x7c   : > { %p5608_p12 = pnand %p5607_p11, %p5601_p9 }
  0x7e   : > { %5611 = shalt.err (!%p5608_p12)
}
  0x7f   : > { %5071 = dma.hbm_to_vmem [thread:$0]  (!%p6493_p6), %s7599_s5, 16, %s6499_s9, [#allocation9]  }
  0x80   : > { %s6293_s25 = smov [#allocation11]   ;;  %s6294_s28 = smov [#allocation14]  }
  0x81   : > { %s687_s0 = sshll.u32 %s6293_s25, 4  ;;  %s712_s24 = sshll.u32 %s6294_s28, 4  ;;  %s688_s0 = int_to_ptr.vmem [resolvable:$true] %s687_s0  ;;  %s713_s24 = int_to_ptr.vmem [resolvable:$true] %s712_s24 }
  0x82   : > { %s7600_s1 = sld [smem:[#allocation59_spill]] }
  0x88   : > { %s5612_s27 = scalar_lea.hbm %s7600_s1, 512 }
  0x89   : > { %p5613_p13 = scmp.ne.s32.totalorder %s7600_s1, %s5612_s27  ;;  %p5619_p5 = scmp.lt.u32.totalorder %s5612_s27, %s7600_s1 }
  0x8b   : > { %p5615_p0 = pnand %p5613_p13, %p6509_p8 }
  0x8d   : > { %p5616_p2 = pneg %p5615_p0 }
  0x8f   : > { %p5621_p7 = pnand %p5619_p5, %p5616_p2 }
  0x91   : > { %5624 = shalt.err (!%p5621_p7)
}
  0x92   : > { %s5625_s9 = scalar_lea.vmem %s688_s0, 512  ;;  %p5633_p11 = scmp.lt.s32.totalorder %s688_s0, %s688_s0 }
  0x93   : > { %p5626_p9 = scmp.ne.s32.totalorder %s688_s0, %s5625_s9  ;;  %p5634_p12 = scmp.lt.s32.totalorder %s5625_s9, %s5625_s9 }
  0x95   : > { %p5628_p3 = pnand %p5626_p9, %p6509_p8  ;;  %p5635_p1 = por %p5634_p12, %p5633_p11 }
  0x97   : > { %p5629_p10 = pneg %p5628_p3 }
  0x99   : > { %p5636_p4 = pnand %p5635_p1, %p5629_p10 }
  0x9b   : > { %5639 = shalt.err (!%p5636_p4)
}
  0x9c   : > { %s7601_s22 = smov 8   ;;  %s7602_s19 = smov 128  }
  0x9d   : > { %5077 = dma.hbm_to_vmem [thread:$0]  (!%p6493_p6), %s7600_s1, 512, %s688_s0, [#allocation12], %s7602_s19, %s7602_s19, %s7601_s22  }
  0x9e   : > { %s7603_s17 = sld [smem:[#allocation61_spill]] }
  0xa4   : > { %s5640_s27 = scalar_lea.hbm %s7603_s17, 16 }
  0xa5   : > { %p5641_p1 = scmp.ne.s32.totalorder %s7603_s17, %s5640_s27  ;;  %p5647_p0 = scmp.lt.u32.totalorder %s5640_s27, %s7603_s17 }
  0xa7   : > { %p5643_p4 = pnand %p5641_p1, %p6509_p8 }
  0xa9   : > { %p5644_p13 = pneg %p5643_p4 }
  0xab   : > { %p5649_p2 = pnand %p5647_p0, %p5644_p13 }
  0xad   : > { %5652 = shalt.err (!%p5649_p2)
}
  0xae   : > { %s5653_s7 = scalar_lea.vmem %s713_s24, 16  ;;  %s5660_s0 = scalar_lea.vmem %s713_s24, 32 }
  0xaf   : > { %p5654_p5 = scmp.ne.s32.totalorder %s713_s24, %s5653_s7  ;;  %p5661_p3 = scmp.lt.s32.totalorder %s713_s24, %s713_s24 }
  0xb0   : > { %p5662_p10 = scmp.lt.s32.totalorder %s5660_s0, %s5653_s7 }
  0xb1   : > { %p5656_p7 = pnand %p5654_p5, %p6509_p8 }
  0xb2   : > { %p5663_p11 = por %p5662_p10, %p5661_p3 }
  0xb3   : > { %p5657_p9 = pneg %p5656_p7 }
  0xb5   : > { %p5664_p12 = pnand %p5663_p11, %p5657_p9 }
  0xb7   : > { %5667 = shalt.err (!%p5664_p12)
}
  0xb8   : > { %5083 = dma.hbm_to_vmem [thread:$0]  (!%p6493_p6), %s7603_s17, 16, %s713_s24, [#allocation15]  }
  0xb9   : > { %s6295_s5 = smov [#allocation17]   ;;  %s7604_s10 = sld [smem:[#allocation63_spill]] }
  0xba   : > { %s733_s3 = sshll.u32 %s6295_s5, 4  ;;  %s734_s3 = int_to_ptr.vmem [resolvable:$true] %s733_s3 }
  0xbf   : > { %s5668_s15 = scalar_lea.hbm %s7604_s10, 2048 }
  0xc0   : > { %p5669_p1 = scmp.ne.s32.totalorder %s7604_s10, %s5668_s15  ;;  %p5675_p0 = scmp.lt.u32.totalorder %s5668_s15, %s7604_s10 }
  0xc2   : > { %p5671_p4 = pnand %p5669_p1, %p6509_p8 }
  0xc4   : > { %p5672_p13 = pneg %p5671_p4 }
  0xc6   : > { %p5677_p2 = pnand %p5675_p0, %p5672_p13 }
  0xc8   : > { %5680 = shalt.err (!%p5677_p2)
}
  0xc9   : > { %s5681_s24 = scalar_lea.vmem %s734_s3, 2048  ;;  %p5689_p3 = scmp.lt.s32.totalorder %s734_s3, %s734_s3 }
  0xca   : > { %p5682_p5 = scmp.ne.s32.totalorder %s734_s3, %s5681_s24  ;;  %p5690_p10 = scmp.lt.s32.totalorder %s5681_s24, %s5681_s24 }
  0xcc   : > { %p5684_p7 = pnand %p5682_p5, %p6509_p8  ;;  %p5691_p11 = por %p5690_p10, %p5689_p3 }
  0xce   : > { %p5685_p9 = pneg %p5684_p7 }
  0xd0   : > { %p5692_p12 = pnand %p5691_p11, %p5685_p9 }
  0xd2   : > { %5695 = shalt.err (!%p5692_p12)
}
  0xd3   : > { %s7556_s1 = smov 512   ;;  %s7557_s25 = smov 32  }
  0xd4   : > { %5089 = dma.hbm_to_vmem [thread:$0]  (!%p6493_p6), %s7604_s10, 2048, %s734_s3, [#allocation18], %s7556_s1, %s7556_s1, %s7557_s25  }
  0xd5   : > { %s6298_s27 = smov [#allocation20]   ;;  %s6299_s15 = smov [#allocation23]  }
  0xd6   : > { %s760_s13 = sshll.u32 %s6298_s27, 4  ;;  %s782_s9 = sshll.u32 %s6299_s15, 4  ;;  %s761_s13 = int_to_ptr.vmem [resolvable:$true] %s760_s13  ;;  %s6641_s9 = int_to_ptr.vmem [resolvable:$true] %s782_s9 }
  0xd7   : > { %s7605_s12 = sld [smem:[#allocation65_spill]] }
  0xdd   : > { %s5696_s24 = scalar_lea.hbm %s7605_s12, 64 }
  0xde   : > { %p5697_p1 = scmp.ne.s32.totalorder %s7605_s12, %s5696_s24  ;;  %p5703_p0 = scmp.lt.u32.totalorder %s5696_s24, %s7605_s12 }
  0xe0   : > { %p5699_p4 = pnand %p5697_p1, %p6509_p8 }
  0xe2   : > { %p5700_p13 = pneg %p5699_p4 }
  0xe4   : > { %p5705_p2 = pnand %p5703_p0, %p5700_p13 }
  0xe6   : > { %5708 = shalt.err (!%p5705_p2)
}
  0xe7   : > { %s5709_s5 = scalar_lea.vmem %s761_s13, 64  ;;  %p5717_p3 = scmp.lt.s32.totalorder %s761_s13, %s761_s13 }
  0xe8   : > { %p5710_p5 = scmp.ne.s32.totalorder %s761_s13, %s5709_s5  ;;  %p5718_p10 = scmp.lt.s32.totalorder %s5709_s5, %s5709_s5 }
  0xea   : > { %p5712_p7 = pnand %p5710_p5, %p6509_p8  ;;  %p5719_p11 = por %p5718_p10, %p5717_p3 }
  0xec   : > { %p5713_p9 = pneg %p5712_p7 }
  0xee   : > { %p5720_p12 = pnand %p5719_p11, %p5713_p9 }
  0xf0   : > { %5723 = shalt.err (!%p5720_p12)
}
  0xf1   : > { %5095 = dma.hbm_to_vmem [thread:$0]  (!%p6493_p6), %s7605_s12, 64, %s761_s13, [#allocation21]  }
  0xf2   : > { %s7606_s14 = sld [smem:[#allocation67_spill]] }
  0xf8   : > { %s5724_s7 = scalar_lea.hbm %s7606_s14, 64 }
  0xf9   : > { %p5725_p1 = scmp.ne.s32.totalorder %s7606_s14, %s5724_s7  ;;  %p5731_p0 = scmp.lt.u32.totalorder %s5724_s7, %s7606_s14 }
  0xfb   : > { %p5727_p4 = pnand %p5725_p1, %p6509_p8 }
  0xfd   : > { %p5728_p13 = pneg %p5727_p4 }
  0xff   : > { %p5733_p2 = pnand %p5731_p0, %p5728_p13 }
 0x101   : > { %5736 = shalt.err (!%p5733_p2)
}
 0x102   : > { %s5737_s13 = scalar_lea.vmem %s6641_s9, 64  ;;  %p5745_p3 = scmp.lt.s32.totalorder %s6641_s9, %s6641_s9 }
 0x103   : > { %p5738_p5 = scmp.ne.s32.totalorder %s6641_s9, %s5737_s13  ;;  %p5746_p10 = scmp.lt.s32.totalorder %s5737_s13, %s5737_s13 }
 0x105   : > { %p5740_p7 = pnand %p5738_p5, %p6509_p8  ;;  %p5747_p11 = por %p5746_p10, %p5745_p3 }
 0x107   : > { %p5741_p9 = pneg %p5740_p7 }
 0x109   : > { %p5748_p12 = pnand %p5747_p11, %p5741_p9 }
 0x10b   : > { %5751 = shalt.err (!%p5748_p12)
}
 0x10c   : > { %5101 = dma.hbm_to_vmem [thread:$0]  (!%p6493_p6), %s7606_s14, 64, %s6641_s9, [#allocation24]  }
 0x10d   : > { %s6300_s17 = smov [#allocation26]   ;;  %s6301_s15 = smov [#allocation29]  }
 0x10e   : > { %s806_s27 = sshll.u32 %s6300_s17, 4  ;;  %s828_s7 = sshll.u32 %s6301_s15, 4  ;;  %s807_s27 = int_to_ptr.vmem [resolvable:$true] %s806_s27  ;;  %s6684_s7 = int_to_ptr.vmem [resolvable:$true] %s828_s7 }
 0x10f   : > { %s7607_s16 = sld [smem:[#allocation69_spill]] }
 0x115   : > { %s5752_s28 = scalar_lea.hbm %s7607_s16, 32 }
 0x116   : > { %p5753_p1 = scmp.ne.s32.totalorder %s7607_s16, %s5752_s28  ;;  %p5759_p0 = scmp.lt.u32.totalorder %s5752_s28, %s7607_s16 }
 0x118   : > { %p5755_p4 = pnand %p5753_p1, %p6509_p8 }
 0x11a   : > { %p5756_p13 = pneg %p5755_p4 }
 0x11c   : > { %p5761_p2 = pnand %p5759_p0, %p5756_p13 }
 0x11e   : > { %5764 = shalt.err (!%p5761_p2)
}
 0x11f   : > { %s5765_s21 = scalar_lea.vmem %s807_s27, 32  ;;  %p5773_p3 = scmp.lt.s32.totalorder %s807_s27, %s807_s27 }
 0x120   : > { %p5766_p5 = scmp.ne.s32.totalorder %s807_s27, %s5765_s21  ;;  %p5774_p10 = scmp.lt.s32.totalorder %s5765_s21, %s5765_s21 }
 0x122   : > { %p5768_p7 = pnand %p5766_p5, %p6509_p8  ;;  %p5775_p11 = por %p5774_p10, %p5773_p3 }
 0x124   : > { %p5769_p9 = pneg %p5768_p7 }
 0x126   : > { %p5776_p12 = pnand %p5775_p11, %p5769_p9 }
 0x128   : > { %5779 = shalt.err (!%p5776_p12)
}
 0x129   : > { %5107 = dma.hbm_to_vmem [thread:$0]  (!%p6493_p6), %s7607_s16, 32, %s807_s27, [#allocation27]  }
 0x12a   : > { %s7608_s18 = sld [smem:[#allocation71_spill]] }
 0x130   : > { %s5780_s28 = scalar_lea.hbm %s7608_s18, 32 }
 0x131   : > { %p5781_p1 = scmp.ne.s32.totalorder %s7608_s18, %s5780_s28  ;;  %p5787_p0 = scmp.lt.u32.totalorder %s5780_s28, %s7608_s18 }
 0x133   : > { %p5783_p4 = pnand %p5781_p1, %p6509_p8 }
 0x135   : > { %p5784_p13 = pneg %p5783_p4 }
 0x137   : > { %p5789_p2 = pnand %p5787_p0, %p5784_p13 }
 0x139   : > { %5792 = shalt.err (!%p5789_p2)
}
 0x13a   : > { %s5793_s27 = scalar_lea.vmem %s6684_s7, 32  ;;  %p5801_p3 = scmp.lt.s32.totalorder %s6684_s7, %s6684_s7 }
 0x13b   : > { %p5794_p5 = scmp.ne.s32.totalorder %s6684_s7, %s5793_s27  ;;  %p5802_p10 = scmp.lt.s32.totalorder %s5793_s27, %s5793_s27 }
 0x13d   : > { %p5796_p7 = pnand %p5794_p5, %p6509_p8  ;;  %p5803_p11 = por %p5802_p10, %p5801_p3 }
 0x13f   : > { %p5797_p9 = pneg %p5796_p7 }
 0x141   : > { %p5804_p12 = pnand %p5803_p11, %p5797_p9 }
 0x143   : > { %5807 = shalt.err (!%p5804_p12)
}
 0x144   : > { %5113 = dma.hbm_to_vmem [thread:$0]  (!%p6493_p6), %s7608_s18, 32, %s6684_s7, [#allocation30]  }
 0x145   : > { %s6302_s15 = smov [#allocation32]   ;;  %s7609_s20 = sld [smem:[#allocation73_spill]] }
 0x146   : > { %s852_s0 = sshll.u32 %s6302_s15, 4  ;;  %s853_s0 = int_to_ptr.vmem [resolvable:$true] %s852_s0 }
 0x14b   : > { %s5808_s3 = scalar_lea.hbm %s7609_s20, 16 }
 0x14c   : > { %p5809_p1 = scmp.ne.s32.totalorder %s7609_s20, %s5808_s3  ;;  %p5815_p0 = scmp.lt.u32.totalorder %s5808_s3, %s7609_s20 }
 0x14e   : > { %p5811_p4 = pnand %p5809_p1, %p6509_p8 }
 0x150   : > { %p5812_p13 = pneg %p5811_p4 }
 0x152   : > { %p5817_p2 = pnand %p5815_p0, %p5812_p13 }
 0x154   : > { %5820 = shalt.err (!%p5817_p2)
}
 0x155   : > { %s5821_s7 = scalar_lea.vmem %s853_s0, 16  ;;  %s5828_s21 = scalar_lea.vmem %s853_s0, 32 }
 0x156   : > { %p5822_p5 = scmp.ne.s32.totalorder %s853_s0, %s5821_s7  ;;  %p5829_p3 = scmp.lt.s32.totalorder %s853_s0, %s853_s0 }
 0x157   : > { %p5830_p10 = scmp.lt.s32.totalorder %s5828_s21, %s5821_s7 }
 0x158   : > { %p5824_p7 = pnand %p5822_p5, %p6509_p8 }
 0x159   : > { %p5831_p11 = por %p5830_p10, %p5829_p3 }
 0x15a   : > { %p5825_p9 = pneg %p5824_p7 }
 0x15c   : > { %p5832_p12 = pnand %p5831_p11, %p5825_p9 }
 0x15e   : > { %5835 = shalt.err (!%p5832_p12)
}
 0x15f   : > { %5119 = dma.hbm_to_vmem [thread:$0]  (!%p6493_p6), %s7609_s20, 16, %s853_s0, [#allocation33]  }
 0x160   : > { %s6746_s24 = sadd.s32 1, %s6286_s30   ;;  %s537_s3 = sadd.s32 1, %s6282_s6 }
 0x161   : > { %s534_s28 = ssub.s32 %s6286_s30, %s6746_s24  ;;  %p544_p4 = scmp.ne.s32.totalorder %s6282_s6, %s6278_s2 }
 0x162   : > { %p535_p1 = scmp.eq.s32.totalorder %s534_s28, 0  ;;  %p545_p13 = scmp.eq.s32.totalorder %s6286_s30, 0 }
 0x163   : > { %p550_p0 = scmp.ne.s32.totalorder %s6278_s2, %s6274_s29  ;;  %p7610_p5 = scmp.eq.s32.totalorder %s6477_s26, 0 }
 0x164   : > { %s6757_s13 = scalar_select %p535_p1, %s6282_s6, %s537_s3  }
 0x165   : > { %p546_p2 = por %p545_p13, %p544_p4  ;;  %p6761_p7 = por %p7610_p5, %p550_p0 }
 0x166   : > { %p5155_p9 = scmp.lt.s32.totalorder %s6286_s30, 6  ;;  %s885_s0 = sand.u32 1, %s6286_s30  }
 0x167   : > { %s7611_s5 = scalar_select %p6761_p7, 1, 0 }
 0x168   : > { %s7555_s9 = sand.u32 1, %s6282_s6   ;;  %p6770_p3 = pnand %p5155_p9, %p546_p2 }
 0x169   : > { %s4963_s27 = smul.u32 1408, %s7555_s9  ;;  %s7613_s23 = sld [smem:[#allocation76_spill]] }
 0x16a   : > { %s7612_s7 = scalar_select %p6770_p3, 1, 0 }
 0x16b   : > { %s4664_s29 = smul.u32 1408, %s6286_s30  ;;  %s889_s28 = scalar_lea.vmem [#allocation37], %s4963_s27 }
 0x16c   : > { %s896_s3 = sshll.u32 %s889_s28, 4  ;;  %s6782_s9 = scalar_lea.sflag [#allocation4], %s885_s0  ;;  %s6780_s3 = int_to_ptr.vmem [resolvable:$true] %s896_s3 }
 0x16d   : > { %p7561_p11 = pneg %p6770_p3 }
 0x16f   : > { %s6778_s15 = scalar_lea.hbm %s7613_s23, %s4664_s29  ;;  %s5841_s17 = scalar_lea.hbm %s7613_s23, 135168 }
 0x170   : > { %s5836_s1 = scalar_lea.hbm %s6778_s15, 22528  ;;  %p5842_p4 = scmp.lt.u32.totalorder %s6778_s15, %s7613_s23 }
 0x171   : > { %p5837_p10 = scmp.ne.s32.totalorder %s6778_s15, %s5836_s1  ;;  %p5843_p13 = scmp.lt.u32.totalorder %s5841_s17, %s5836_s1 }
 0x172   : > { %p5845_p2 = scmp.lt.u32.totalorder %s5836_s1, %s6778_s15 }
 0x173   : > { %p5839_p12 = pnand %p7561_p11, %p5837_p10  ;;  %p5844_p0 = por %p5843_p13, %p5842_p4 }
 0x175   : > { %p5840_p1 = pneg %p5839_p12  ;;  %p5846_p5 = por %p5845_p2, %p5844_p0 }
 0x177   : > { %p5847_p9 = pnand %p5846_p5, %p5840_p1 }
 0x179   : > { %5850 = shalt.err (!%p5847_p9)
}
 0x17a   : > { %s5851_s0 = scalar_lea.vmem %s6780_s3, 22528  ;;  %s6303_s27 = smov [#allocation37]  }
 0x17b   : > { %p5852_p10 = scmp.ne.s32.totalorder %s6780_s3, %s5851_s0  ;;  %s5856_s28 = sshll.u32 %s6303_s27, 4  ;;  %s5857_s28 = int_to_ptr.vmem [resolvable:$false] %s5856_s28 }
 0x17c   : > { %s5858_s10 = scalar_lea.vmem %s5857_s28, 45056  ;;  %p5859_p6 = scmp.lt.s32.totalorder %s6780_s3, %s5857_s28 }
 0x17d   : > { %p5854_p12 = pnand %p5852_p10, %p7561_p11  ;;  %p5860_p4 = scmp.lt.s32.totalorder %s5858_s10, %s5851_s0 }
 0x17f   : > { %p5855_p7 = pneg %p5854_p12  ;;  %p5861_p13 = por %p5860_p4, %p5859_p6 }
 0x181   : > { %p5862_p0 = pnand %p5861_p13, %p5855_p7 }
 0x183   : > { %5865 = shalt.err (!%p5862_p0)
}
 0x184   : > { %s6304_s1 = smov 8448   ;;  %s6305_s25 = smov 1408  }
 0x185   : > { %s6306_s29 = smov 88   ;;  %s6307_s21 = smov [#allocation7]  }
 0x186   : > { %5129 = dma.hbm_to_vmem [thread:$0]  (!%p6770_p3), %s6778_s15, 22528, %s6780_s3, %s6782_s9, %s6304_s1, %s6305_s25, %s6306_s29  }
 0x187   : > { %s653_s17 = sshll.u32 %s6307_s21, 4  ;;  %s6308_s27 = smov [#allocation10]   ;;  %s654_s17 = int_to_ptr.vmem [resolvable:$true] %s653_s17 }
 0x188   : > { %s674_s12 = sshll.u32 %s6308_s27, 4  ;;  %s7614_s10 = sld [smem:[#allocation56_spill]]  ;;  %s675_s12 = int_to_ptr.vmem [resolvable:$true] %s674_s12 }
 0x18e   : > { %s5866_s14 = scalar_lea.hbm %s7614_s10, 16 }
 0x18f   : > { %p5867_p6 = scmp.ne.s32.totalorder %s7614_s10, %s5866_s14  ;;  %p5873_p2 = scmp.lt.u32.totalorder %s5866_s14, %s7614_s10 }
 0x191   : > { %p5869_p7 = pnand %p5867_p6, %p6509_p8 }
 0x193   : > { %p5870_p1 = pneg %p5869_p7 }
 0x195   : > { %p5875_p5 = pnand %p5873_p2, %p5870_p1 }
 0x197   : > { %5878 = shalt.err (!%p5875_p5)
}
 0x198   : > { %s5879_s15 = scalar_lea.vmem %s654_s17, 16  ;;  %s5886_s3 = scalar_lea.vmem %s654_s17, 32 }
 0x199   : > { %p5880_p9 = scmp.ne.s32.totalorder %s654_s17, %s5879_s15  ;;  %p5887_p4 = scmp.lt.s32.totalorder %s654_s17, %s654_s17 }
 0x19a   : > { %p5888_p13 = scmp.lt.s32.totalorder %s5886_s3, %s5879_s15 }
 0x19b   : > { %p5882_p10 = pnand %p5880_p9, %p6509_p8 }
 0x19c   : > { %p5889_p0 = por %p5888_p13, %p5887_p4 }
 0x19d   : > { %p5883_p12 = pneg %p5882_p10 }
 0x19f   : > { %p5890_p11 = pnand %p5889_p0, %p5883_p12 }
 0x1a1   : > { %5893 = shalt.err (!%p5890_p11)
}
 0x1a2   : > { %p7615_p6 = scmp.ne.s32.totalorder %s7595_s4, 0  ;;  %s7616_s23 = sld [smem:[#allocation58_spill]] }
 0x1a4   : > { %5068 = dma.hbm_to_vmem [thread:$0]  (!%p7615_p6), %s7614_s10, 16, %s654_s17, [#allocation6]  }
 0x1a8   : > { %s5894_s1 = scalar_lea.hbm %s7616_s23, 512 }
 0x1a9   : > { %p5895_p7 = scmp.ne.s32.totalorder %s7616_s23, %s5894_s1  ;;  %p5901_p11 = scmp.lt.u32.totalorder %s5894_s1, %s7616_s23 }
 0x1ab   : > { %p5897_p1 = pnand %p5895_p7, %p6509_p8 }
 0x1ad   : > { %p5898_p2 = pneg %p5897_p1 }
 0x1af   : > { %p5903_p5 = pnand %p5901_p11, %p5898_p2 }
 0x1b1   : > { %5906 = shalt.err (!%p5903_p5)
}
 0x1b2   : > { %s5907_s28 = scalar_lea.vmem %s675_s12, 512  ;;  %p5915_p4 = scmp.lt.s32.totalorder %s675_s12, %s675_s12 }
 0x1b3   : > { %p5908_p9 = scmp.ne.s32.totalorder %s675_s12, %s5907_s28  ;;  %p5916_p13 = scmp.lt.s32.totalorder %s5907_s28, %s5907_s28 }
 0x1b5   : > { %p5910_p10 = pnand %p5908_p9, %p6509_p8  ;;  %p5917_p0 = por %p5916_p13, %p5915_p4 }
 0x1b7   : > { %p5911_p12 = pneg %p5910_p10 }
 0x1b9   : > { %p5918_p3 = pnand %p5917_p0, %p5911_p12 }
 0x1bb   : > { %5921 = shalt.err (!%p5918_p3)
}
 0x1bc   : > { %5074 = dma.hbm_to_vmem [thread:$0]  (!%p7615_p6), %s7616_s23, 512, %s675_s12, [#allocation9], %s7602_s19, %s7602_s19, %s7601_s22  }
 0x1bd   : > { %s6309_s15 = smov [#allocation13]   ;;  %s6310_s16 = smov [#allocation16]  }
 0x1be   : > { %s701_s3 = sshll.u32 %s6309_s15, 4  ;;  %s723_s18 = sshll.u32 %s6310_s16, 4  ;;  %s702_s3 = int_to_ptr.vmem [resolvable:$true] %s701_s3  ;;  %s724_s18 = int_to_ptr.vmem [resolvable:$true] %s723_s18 }
 0x1bf   : > { %s7617_s1 = sld [smem:[#allocation60_spill]] }
 0x1c5   : > { %s5922_s25 = scalar_lea.hbm %s7617_s1, 16 }
 0x1c6   : > { %p5923_p3 = scmp.ne.s32.totalorder %s7617_s1, %s5922_s25  ;;  %p5929_p2 = scmp.lt.u32.totalorder %s5922_s25, %s7617_s1 }
 0x1c8   : > { %p5925_p7 = pnand %p5923_p3, %p6509_p8 }
 0x1ca   : > { %p5926_p1 = pneg %p5925_p7 }
 0x1cc   : > { %p5931_p11 = pnand %p5929_p2, %p5926_p1 }
 0x1ce   : > { %5934 = shalt.err (!%p5931_p11)
}
 0x1cf   : > { %s5935_s12 = scalar_lea.vmem %s702_s3, 16  ;;  %s5942_s17 = scalar_lea.vmem %s702_s3, 32 }
 0x1d0   : > { %p5936_p5 = scmp.ne.s32.totalorder %s702_s3, %s5935_s12  ;;  %p5943_p12 = scmp.lt.s32.totalorder %s702_s3, %s702_s3 }
 0x1d1   : > { %p5944_p4 = scmp.lt.s32.totalorder %s5942_s17, %s5935_s12 }
 0x1d2   : > { %p5938_p9 = pnand %p5936_p5, %p6509_p8 }
 0x1d3   : > { %p5945_p13 = por %p5944_p4, %p5943_p12 }
 0x1d4   : > { %p5939_p10 = pneg %p5938_p9 }
 0x1d6   : > { %p5946_p0 = pnand %p5945_p13, %p5939_p10 }
 0x1d8   : > { %5949 = shalt.err (!%p5946_p0)
}
 0x1d9   : > { %5080 = dma.hbm_to_vmem [thread:$0]  (!%p7615_p6), %s7617_s1, 16, %s702_s3, [#allocation12]  }
 0x1da   : > { %s7618_s20 = sld [smem:[#allocation62_spill]] }
 0x1e0   : > { %s5950_s25 = scalar_lea.hbm %s7618_s20, 16 }
 0x1e1   : > { %p5951_p3 = scmp.ne.s32.totalorder %s7618_s20, %s5950_s25  ;;  %p5957_p2 = scmp.lt.u32.totalorder %s5950_s25, %s7618_s20 }
 0x1e3   : > { %p5953_p7 = pnand %p5951_p3, %p6509_p8 }
 0x1e5   : > { %p5954_p1 = pneg %p5953_p7 }
 0x1e7   : > { %p5959_p11 = pnand %p5957_p2, %p5954_p1 }
 0x1e9   : > { %5962 = shalt.err (!%p5959_p11)
}
 0x1ea   : > { %s5963_s12 = scalar_lea.vmem %s724_s18, 16  ;;  %s5970_s3 = scalar_lea.vmem %s724_s18, 32 }
 0x1eb   : > { %p5964_p5 = scmp.ne.s32.totalorder %s724_s18, %s5963_s12  ;;  %p5971_p12 = scmp.lt.s32.totalorder %s724_s18, %s724_s18 }
 0x1ec   : > { %p5972_p4 = scmp.lt.s32.totalorder %s5970_s3, %s5963_s12 }
 0x1ed   : > { %p5966_p9 = pnand %p5964_p5, %p6509_p8 }
 0x1ee   : > { %p5973_p13 = por %p5972_p4, %p5971_p12 }
 0x1ef   : > { %p5967_p10 = pneg %p5966_p9 }
 0x1f1   : > { %p5974_p0 = pnand %p5973_p13, %p5967_p10 }
 0x1f3   : > { %5977 = shalt.err (!%p5974_p0)
}
 0x1f4   : > { %5086 = dma.hbm_to_vmem [thread:$0]  (!%p7615_p6), %s7618_s20, 16, %s724_s18, [#allocation15]  }
 0x1f5   : > { %s6311_s15 = smov [#allocation19]   ;;  %s6312_s14 = smov [#allocation22]  }
 0x1f6   : > { %s746_s16 = sshll.u32 %s6311_s15, 4  ;;  %s771_s25 = sshll.u32 %s6312_s14, 4  ;;  %s747_s16 = int_to_ptr.vmem [resolvable:$true] %s746_s16  ;;  %s772_s25 = int_to_ptr.vmem [resolvable:$true] %s771_s25 }
 0x1f7   : > { %s7619_s11 = sld [smem:[#allocation64_spill]] }
 0x1fd   : > { %s5978_s27 = scalar_lea.hbm %s7619_s11, 2048 }
 0x1fe   : > { %p5979_p3 = scmp.ne.s32.totalorder %s7619_s11, %s5978_s27  ;;  %p5985_p2 = scmp.lt.u32.totalorder %s5978_s27, %s7619_s11 }
 0x200   : > { %p5981_p7 = pnand %p5979_p3, %p6509_p8 }
 0x202   : > { %p5982_p1 = pneg %p5981_p7 }
 0x204   : > { %p5987_p11 = pnand %p5985_p2, %p5982_p1 }
 0x206   : > { %5990 = shalt.err (!%p5987_p11)
}
 0x207   : > { %s5991_s18 = scalar_lea.vmem %s747_s16, 2048  ;;  %p5999_p12 = scmp.lt.s32.totalorder %s747_s16, %s747_s16 }
 0x208   : > { %p5992_p5 = scmp.ne.s32.totalorder %s747_s16, %s5991_s18  ;;  %p6000_p4 = scmp.lt.s32.totalorder %s5991_s18, %s5991_s18 }
 0x20a   : > { %p5994_p9 = pnand %p5992_p5, %p6509_p8  ;;  %p6001_p13 = por %p6000_p4, %p5999_p12 }
 0x20c   : > { %p5995_p10 = pneg %p5994_p9 }
 0x20e   : > { %p6002_p0 = pnand %p6001_p13, %p5995_p10 }
 0x210   : > { %6005 = shalt.err (!%p6002_p0)
}
 0x211   : > { %s7620_s0 = smov 32   ;;  %s7621_s15 = smov 512  }
 0x212   : > { %5092 = dma.hbm_to_vmem [thread:$0]  (!%p7615_p6), %s7619_s11, 2048, %s747_s16, [#allocation18], %s7621_s15, %s7621_s15, %s7620_s0  }
 0x213   : > { %s7622_s28 = sld [smem:[#allocation66_spill]] }
 0x219   : > { %s6006_s12 = scalar_lea.hbm %s7622_s28, 64 }
 0x21a   : > { %p6007_p3 = scmp.ne.s32.totalorder %s7622_s28, %s6006_s12  ;;  %p6013_p2 = scmp.lt.u32.totalorder %s6006_s12, %s7622_s28 }
 0x21c   : > { %p6009_p7 = pnand %p6007_p3, %p6509_p8 }
 0x21e   : > { %p6010_p1 = pneg %p6009_p7 }
 0x220   : > { %p6015_p11 = pnand %p6013_p2, %p6010_p1 }
 0x222   : > { %6018 = shalt.err (!%p6015_p11)
}
 0x223   : > { %s6019_s14 = scalar_lea.vmem %s772_s25, 64  ;;  %p6027_p12 = scmp.lt.s32.totalorder %s772_s25, %s772_s25 }
 0x224   : > { %p6020_p5 = scmp.ne.s32.totalorder %s772_s25, %s6019_s14  ;;  %p6028_p4 = scmp.lt.s32.totalorder %s6019_s14, %s6019_s14 }
 0x226   : > { %p6022_p9 = pnand %p6020_p5, %p6509_p8  ;;  %p6029_p13 = por %p6028_p4, %p6027_p12 }
 0x228   : > { %p6023_p10 = pneg %p6022_p9 }
 0x22a   : > { %p6030_p0 = pnand %p6029_p13, %p6023_p10 }
 0x22c   : > { %6033 = shalt.err (!%p6030_p0)
}
 0x22d   : > { %5098 = dma.hbm_to_vmem [thread:$0]  (!%p7615_p6), %s7622_s28, 64, %s772_s25, [#allocation21]  }
 0x22e   : > { %s6313_s1 = smov [#allocation25]   ;;  %s7623_s27 = sld [smem:[#allocation68_spill]] }
 0x22f   : > { %s792_s15 = sshll.u32 %s6313_s1, 4  ;;  %s793_s15 = int_to_ptr.vmem [resolvable:$true] %s792_s15 }
 0x234   : > { %s6034_s12 = scalar_lea.hbm %s7623_s27, 16384 }
 0x235   : > { %p6035_p3 = scmp.ne.s32.totalorder %s7623_s27, %s6034_s12  ;;  %p6041_p2 = scmp.lt.u32.totalorder %s6034_s12, %s7623_s27 }
 0x237   : > { %p6037_p7 = pnand %p6035_p3, %p6509_p8 }
 0x239   : > { %p6038_p1 = pneg %p6037_p7 }
 0x23b   : > { %p6043_p11 = pnand %p6041_p2, %p6038_p1 }
 0x23d   : > { %6046 = shalt.err (!%p6043_p11)
}
 0x23e   : > { %s6047_s25 = scalar_lea.vmem %s793_s15, 16384  ;;  %p6055_p12 = scmp.lt.s32.totalorder %s793_s15, %s793_s15 }
 0x23f   : > { %p6048_p5 = scmp.ne.s32.totalorder %s793_s15, %s6047_s25  ;;  %p6056_p4 = scmp.lt.s32.totalorder %s6047_s25, %s6047_s25 }
 0x241   : > { %p6050_p9 = pnand %p6048_p5, %p6509_p8  ;;  %p6057_p13 = por %p6056_p4, %p6055_p12 }
 0x243   : > { %p6051_p10 = pneg %p6050_p9 }
 0x245   : > { %p6058_p0 = pnand %p6057_p13, %p6051_p10 }
 0x247   : > { %6061 = shalt.err (!%p6058_p0)
}
 0x248   : > { %s6314_s16 = smov 256   ;;  %s6315_s0 = smov 16  }
 0x249   : > { %5104 = dma.hbm_to_vmem [thread:$0]  (!%p7615_p6), %s7623_s27, 16384, %s793_s15, [#allocation24], %s6314_s16, %s6314_s16, %s6315_s0  }
 0x24a   : > { %s6316_s21 = smov [#allocation28]   ;;  %s6317_s3 = smov [#allocation31]  }
 0x24b   : > { %s817_s12 = sshll.u32 %s6316_s21, 4  ;;  %s838_s17 = sshll.u32 %s6317_s3, 4  ;;  %s818_s12 = int_to_ptr.vmem [resolvable:$true] %s817_s12  ;;  %s6942_s17 = int_to_ptr.vmem [resolvable:$true] %s838_s17 }
 0x24c   : > { %s7624_s25 = sld [smem:[#allocation70_spill]] }
 0x252   : > { %s6062_s10 = scalar_lea.hbm %s7624_s25, 32 }
 0x253   : > { %p6063_p3 = scmp.ne.s32.totalorder %s7624_s25, %s6062_s10  ;;  %p6069_p2 = scmp.lt.u32.totalorder %s6062_s10, %s7624_s25 }
 0x255   : > { %p6065_p7 = pnand %p6063_p3, %p6509_p8 }
 0x257   : > { %p6066_p1 = pneg %p6065_p7 }
 0x259   : > { %p6071_p11 = pnand %p6069_p2, %p6066_p1 }
 0x25b   : > { %6074 = shalt.err (!%p6071_p11)
}
 0x25c   : > { %s6075_s16 = scalar_lea.vmem %s818_s12, 32  ;;  %p6083_p12 = scmp.lt.s32.totalorder %s818_s12, %s818_s12 }
 0x25d   : > { %p6076_p5 = scmp.ne.s32.totalorder %s818_s12, %s6075_s16  ;;  %p6084_p4 = scmp.lt.s32.totalorder %s6075_s16, %s6075_s16 }
 0x25f   : > { %p6078_p9 = pnand %p6076_p5, %p6509_p8  ;;  %p6085_p13 = por %p6084_p4, %p6083_p12 }
 0x261   : > { %p6079_p10 = pneg %p6078_p9 }
 0x263   : > { %p6086_p0 = pnand %p6085_p13, %p6079_p10 }
 0x265   : > { %6089 = shalt.err (!%p6086_p0)
}
 0x266   : > { %5110 = dma.hbm_to_vmem [thread:$0]  (!%p7615_p6), %s7624_s25, 32, %s818_s12, [#allocation27]  }
 0x267   : > { %s7625_s29 = sld [smem:[#allocation72_spill]] }
 0x26d   : > { %s7626_s21 = smov %s7625_s29  ;;  %s6090_s3 = scalar_lea.hbm %s7625_s29, 4096 }
 0x26e   : > { %p6091_p3 = scmp.ne.s32.totalorder %s7626_s21, %s6090_s3  ;;  %p6097_p2 = scmp.lt.u32.totalorder %s6090_s3, %s7626_s21 }
 0x270   : > { %p6093_p7 = pnand %p6091_p3, %p6509_p8 }
 0x272   : > { %p6094_p1 = pneg %p6093_p7 }
 0x274   : > { %p6099_p11 = pnand %p6097_p2, %p6094_p1 }
 0x276   : > { %6102 = shalt.err (!%p6099_p11)
}
 0x277   : > { %s6103_s12 = scalar_lea.vmem %s6942_s17, 4096  ;;  %p6111_p12 = scmp.lt.s32.totalorder %s6942_s17, %s6942_s17 }
 0x278   : > { %p6104_p5 = scmp.ne.s32.totalorder %s6942_s17, %s6103_s12  ;;  %p6112_p4 = scmp.lt.s32.totalorder %s6103_s12, %s6103_s12 }
 0x27a   : > { %p6106_p9 = pnand %p6104_p5, %p6509_p8  ;;  %p6113_p13 = por %p6112_p4, %p6111_p12 }
 0x27c   : > { %p6107_p10 = pneg %p6106_p9 }
 0x27e   : > { %p6114_p0 = pnand %p6113_p13, %p6107_p10 }
 0x280   : > { %6117 = shalt.err (!%p6114_p0)
}
 0x281   : > { %5116 = dma.hbm_to_vmem [thread:$0]  (!%p7615_p6), %s7626_s21, 4096, %s6942_s17, [#allocation30], %s7602_s19, %s7602_s19, %s7601_s22  }
 0x282   : > { %s6318_s20 = smov [#allocation34]   ;;  %s6319_s0 = smov [#allocation35]  }
 0x283   : > { %s863_s10 = sshll.u32 %s6318_s20, 4  ;;  %s874_s29 = sshll.u32 %s6319_s0, 4  ;;  %s864_s10 = int_to_ptr.vmem [resolvable:$true] %s863_s10  ;;  %s6988_s29 = int_to_ptr.vmem [resolvable:$true] %s874_s29 }
 0x284   : > { %s7627_s14 = sld [smem:[#allocation74_spill]] }
 0x28a   : > { %s6118_s1 = scalar_lea.hbm %s7627_s14, 16 }
 0x28b   : > { %p6119_p3 = scmp.ne.s32.totalorder %s7627_s14, %s6118_s1  ;;  %p6125_p2 = scmp.lt.u32.totalorder %s6118_s1, %s7627_s14 }
 0x28d   : > { %p6121_p7 = pnand %p6119_p3, %p6509_p8 }
 0x28f   : > { %p6122_p1 = pneg %p6121_p7 }
 0x291   : > { %p6127_p11 = pnand %p6125_p2, %p6122_p1 }
 0x293   : > { %6130 = shalt.err (!%p6127_p11)
}
 0x294   : > { %s6131_s19 = scalar_lea.vmem %s864_s10, 16  ;;  %s6138_s17 = scalar_lea.vmem %s864_s10, 32 }
 0x295   : > { %p6132_p5 = scmp.ne.s32.totalorder %s864_s10, %s6131_s19  ;;  %p6139_p12 = scmp.lt.s32.totalorder %s864_s10, %s864_s10 }
 0x296   : > { %p6140_p4 = scmp.lt.s32.totalorder %s6138_s17, %s6131_s19 }
 0x297   : > { %p6134_p9 = pnand %p6132_p5, %p6509_p8 }
 0x298   : > { %p6141_p13 = por %p6140_p4, %p6139_p12 }
 0x299   : > { %p6135_p10 = pneg %p6134_p9 }
 0x29b   : > { %p6142_p0 = pnand %p6141_p13, %p6135_p10 }
 0x29d   : > { %6145 = shalt.err (!%p6142_p0)
}
 0x29e   : > { %5122 = dma.hbm_to_vmem [thread:$0]  (!%p7615_p6), %s7627_s14, 16, %s864_s10, [#allocation33]  }
 0x29f   : > { %s7628_s18 = sld [smem:[#allocation75_spill]] }
 0x2a5   : > { %s6146_s1 = scalar_lea.hbm %s7628_s18, 16 }
 0x2a6   : > { %p6147_p3 = scmp.ne.s32.totalorder %s7628_s18, %s6146_s1  ;;  %p6153_p2 = scmp.lt.u32.totalorder %s6146_s1, %s7628_s18 }
 0x2a8   : > { %p6149_p7 = pnand %p6147_p3, %p6509_p8 }
 0x2aa   : > { %p6150_p1 = pneg %p6149_p7 }
 0x2ac   : > { %p6155_p11 = pnand %p6153_p2, %p6150_p1 }
 0x2ae   : > { %6158 = shalt.err (!%p6155_p11)
}
 0x2af   : > { %s6159_s10 = scalar_lea.vmem %s6988_s29, 16  ;;  %s6166_s19 = scalar_lea.vmem %s6988_s29, 32 }
 0x2b0   : > { %p6160_p5 = scmp.ne.s32.totalorder %s6988_s29, %s6159_s10  ;;  %p6167_p12 = scmp.lt.s32.totalorder %s6988_s29, %s6988_s29 }
 0x2b1   : > { %p6168_p4 = scmp.lt.s32.totalorder %s6166_s19, %s6159_s10 }
 0x2b2   : > { %p6162_p9 = pnand %p6160_p5, %p6509_p8 }
 0x2b3   : > { %p6169_p13 = por %p6168_p4, %p6167_p12 }
 0x2b4   : > { %p6163_p10 = pneg %p6162_p9 }
 0x2b6   : > { %p6170_p0 = pnand %p6169_p13, %p6163_p10 }
 0x2b8   : > { %6173 = shalt.err (!%p6170_p0)
}
 0x2b9   : > { %5125 = dma.hbm_to_vmem [thread:$0]  (!%p7615_p6), %s7628_s18, 16, %s6988_s29, [#allocation36]  }
 0x2ba   : > { %s7629_s8 = sand.u32 1, %s6282_s6   ;;  %s4665_s0 = smul.u32 352, %s6286_s30 }
 0x2bb   : > { %s4964_s20 = smul.u32 22, %s7629_s8  ;;  %s7630_s15 = sld [smem:[#allocation77_spill]] }
 0x2bc   : > { %p7631_p3 = scmp.ne.s32.totalorder %s7612_s7, 0 }
 0x2bd   : > { %s910_s4 = scalar_lea.vmem [#allocation38], %s4964_s20 }
 0x2be   : > { %s918_s16 = sshll.u32 %s910_s4, 4  ;;  %p7632_p7 = pneg %p7631_p3  ;;  %s919_s16 = int_to_ptr.vmem [resolvable:$true] %s918_s16 }
 0x2c1   : > { %s7038_s12 = scalar_lea.hbm %s7630_s15, %s4665_s0  ;;  %s6179_s10 = scalar_lea.hbm %s7630_s15, 2112 }
 0x2c2   : > { %s6174_s22 = scalar_lea.hbm %s7038_s12, 352  ;;  %p6180_p2 = scmp.lt.u32.totalorder %s7038_s12, %s7630_s15 }
 0x2c3   : > { %p6175_p8 = scmp.ne.s32.totalorder %s7038_s12, %s6174_s22  ;;  %p6181_p11 = scmp.lt.u32.totalorder %s6179_s10, %s6174_s22 }
 0x2c4   : > { %p6183_p9 = scmp.lt.u32.totalorder %s6174_s22, %s7038_s12 }
 0x2c5   : > { %p6177_p6 = pnand %p6175_p8, %p7632_p7  ;;  %p6182_p5 = por %p6181_p11, %p6180_p2 }
 0x2c7   : > { %p6178_p1 = pneg %p6177_p6  ;;  %p6184_p10 = por %p6183_p9, %p6182_p5 }
 0x2c9   : > { %p6185_p12 = pnand %p6184_p10, %p6178_p1 }
 0x2cb   : > { %6188 = shalt.err (!%p6185_p12)
}
 0x2cc   : > { %s6189_s11 = scalar_lea.vmem %s919_s16, 352  ;;  %p7633_p13 = pmov %p7632_p7 }
 0x2cd   : > { %p6190_p4 = scmp.ne.s32.totalorder %s919_s16, %s6189_s11  ;;  %s6320_s8 = smov [#allocation38]  }
 0x2ce   : > { %s6194_s20 = sshll.u32 %s6320_s8, 4  ;;  %s6195_s20 = int_to_ptr.vmem [resolvable:$false] %s6194_s20 }
 0x2cf   : > { %p6192_p0 = pnand %p6190_p4, %p7633_p13  ;;  %s6196_s0 = scalar_lea.vmem %s6195_s20, 704 }
 0x2d0   : > { %p6197_p7 = scmp.lt.s32.totalorder %s919_s16, %s6195_s20  ;;  %p6198_p6 = scmp.lt.s32.totalorder %s6196_s0, %s6189_s11 }
 0x2d1   : > { %p6193_p8 = pneg %p6192_p0 }
 0x2d2   : > { %p6199_p2 = por %p6198_p6, %p6197_p7 }
 0x2d4   : > { %p6200_p11 = pnand %p6199_p2, %p6193_p8 }
 0x2d6   : > { %6203 = shalt.err (!%p6200_p11)
}
 0x2d7   : > { %5132 = dma.hbm_to_vmem [thread:$0]  (!%p7631_p3), %s7038_s12, 352, %s919_s16, %s6782_s9  }
 0x2d8   : > { %s7634_s3 = sld [smem:[#allocation52_spill]] }
 0x2de   : > { %p7635_p1 = scmp.ne.s32.totalorder %s7634_s3, 0 }
 0x2df   : > { %p7636_p5 = scmp.eq.s32.totalorder (!%p7635_p1), %s6477_s26, 0 }
 0x2e0   : > { %927 = sbr.rel (%p7635_p1) target bundleno = 2603 (0xa2b), region = 120 }
 0x2e7   : > { %6221 = dma.done.wait (%p7636_p5), [#allocation4], 384   ;;  %p7637_p9 = pmov %p7636_p5 }
 0x2e8   : > { %p7638_p10 = pmov %p7636_p5 }
 0x2e9   : > { %6223 = vsyncadd (%p7637_p9), [#allocation4], 4294966912 }
 0x2ea   : > { %6225 = dma.done.wait (%p7638_p10), [#allocation6], 32   ;;  %p7639_p12 = pmov %p7636_p5 }
 0x2eb   : > { %p7640_p4 = pmov %p7636_p5 }
 0x2ec   : > { %6227 = vsyncadd (%p7639_p12), [#allocation6], 4294967264 }
 0x2ed   : > { %6229 = dma.done.wait (%p7640_p4), [#allocation9], 528   ;;  %p7641_p3 = pmov %p7640_p4 }
 0x2ef   : > { %6231 = vsyncadd (%p7641_p3), [#allocation9], 4294966768  ;;  %p7642_p13 = pmov %p7641_p3 }
 0x2f0   : > { %p7643_p0 = pmov %p7641_p3 }
 0x2f1   : > { %6233 = dma.done.wait (%p7642_p13), [#allocation12], 528  }
 0x2f2   : > { %6235 = vsyncadd (%p7643_p0), [#allocation12], 4294966768  ;;  %p7644_p8 = pmov %p7643_p0 }
 0x2f3   : > { %p7645_p7 = pmov %p7643_p0 }
 0x2f4   : > { %6237 = dma.done.wait (%p7644_p8), [#allocation15], 32  }
 0x2f5   : > { %6239 = vsyncadd (%p7645_p7), [#allocation15], 4294967264  ;;  %p7646_p6 = pmov %p7643_p0 }
 0x2f6   : > { %p7647_p2 = pmov %p7643_p0 }
 0x2f7   : > { %6241 = dma.done.wait (%p7646_p6), [#allocation18], 4096  }
 0x2f8   : > { %6243 = vsyncadd (%p7647_p2), [#allocation18], 4294963200  ;;  %p7648_p11 = pmov %p7643_p0 }
 0x2f9   : > { %p7649_p1 = pmov %p7643_p0 }
 0x2fa   : > { %6245 = dma.done.wait (%p7648_p11), [#allocation21], 128  }
 0x2fb   : > { %6247 = vsyncadd (%p7649_p1), [#allocation21], 4294967168  ;;  %p7650_p5 = pmov %p7643_p0 }
 0x2fc   : > { %p7651_p9 = pmov %p7643_p0 }
 0x2fd   : > { %6249 = dma.done.wait (%p7650_p5), [#allocation24], 16448  }
 0x2fe   : > { %6251 = vsyncadd (%p7651_p9), [#allocation24], 4294950848  ;;  %p7652_p10 = pmov %p7643_p0 }
 0x2ff   : > { %p7653_p12 = pmov %p7643_p0 }
 0x300   : > { %6253 = dma.done.wait (%p7652_p10), [#allocation27], 64  }
 0x301   : > { %6255 = vsyncadd (%p7653_p12), [#allocation27], 4294967232  ;;  %p7654_p4 = pmov %p7643_p0 }
 0x302   : > { %p7655_p3 = pmov %p7643_p0 }
 0x303   : > { %6257 = dma.done.wait (%p7654_p4), [#allocation30], 4128  }
 0x304   : > { %6259 = vsyncadd (%p7655_p3), [#allocation30], 4294963168  ;;  %p7656_p13 = pmov %p7643_p0 }
 0x306   : > { %6261 = dma.done.wait (%p7656_p13), [#allocation33], 32  }
 0x307   : > { %6263 = vsyncadd (%p7643_p0), [#allocation33], 4294967264  ;;  %p7657_p8 = pmov %p7643_p0 }
 0x308   : > { %p7658_p7 = pmov %p7643_p0 }
 0x309   : > { %6265 = dma.done.wait (%p7657_p8), [#allocation36], 16  }
 0x30a   : > { %6267 = vsyncadd (%p7658_p7), [#allocation36], 4294967280  ;;  %s1017_s9 = sand.u32 1, %s6477_s26   ;;  %s1019_s7 = sand.u32 1, %s6278_s2  }
 0x30b   : > { %s4965_s1 = smul.u32 1408, %s1019_s7  ;;  %s1018_s12 = scalar_lea.sflag [#allocation4], %s1017_s9 }
 0x30c   : > { %p7659_p6 = scmp.ne.s32.totalorder %s7611_s5, 0 }
 0x30d   : > { %s7112_s4 = scalar_lea.vmem [#allocation37], %s4965_s1 }
 0x30e   : > { %6269 = dma.done.wait (%p7659_p6), %s1018_s12, 22880  }
 0x30f   : > { %6271 = vsyncadd (%p7659_p6), %s1018_s12, 4294944416  ;;  %s4966_s16 = smul.u32 22, %s1019_s7  ;;  %s7660_s19 = sld [smem:[#allocation78_spill]] }
 0x310   : > { %s1104_s22 = smul.u32 22, %s6477_s26  ;;  %p7661_p11 = scmp.ne.s32.totalorder %s6477_s26, 0 }
 0x311   : > { %s7124_s11 = scalar_lea.vmem [#allocation38], %s4966_s16  ;;  %v1121_v0 = vld [vmem:[#allocation3] sm:$0xff] (!%p7661_p11)  ;;  %v1122_v1 = vld [vmem:[#allocation3 + $0x8] sm:$0xff] (!%p7661_p11)  ;;  %v6321_v2 = vmov (!%p7661_p11), 0.0|0.0   ;;  %vm6322_vm0 = vmmov (!%p7661_p11), 0   ;;  %v6323_v4 = vmov (!%p7661_p11), 0.0   ;;  %v1115_v14 = vlaneseq (!%p7661_p11) }
 0x312   : > { %p1105_p2 = scmp.lt.s32.totalorder %s1104_s22, 131  ;;  %1114 = sbr.rel (%p7661_p11) target bundleno = 2193 (0x891), region = 220  ;;  %4746 = vmatprep.subr.bf16.mxu0 (!%p7661_p11), %v6321_v2  ;;  %v4747_v3 = vpack.c.bf16 (!%p7661_p11), %v1122_v1, %v1121_v0  ;;  %4749 = vmatprep.subr.bf16.mxu1 (!%p7661_p11), %v6321_v2  ;;  %v1123_v5 = vld [vmem:[#allocation3 + $0x10] sm:$0xf] (!%p7661_p11)  ;;  %vm1135_vm1 = vcmask (!%p7661_p11), 1043456   ;;  %vm1131_vm2 = vcmask (!%p7661_p11), 162816  }
 0x313   : > { %4721 = vmatprep.mubr.msk.f32.mxu0 (!%p7661_p11), %vm6322_vm0, %v6323_v4  ;;  %4732 = vmatprep.mubr.msk.f32.mxu1 (!%p7661_p11), %vm6322_vm0, %v6323_v4  ;;  %s7662_s8 = sld [smem:[#allocation53_spill]] (!%p7661_p11)  ;;  %v1250_v7 = vld [vmem:[#allocation11] sm:$0xff] (!%p7661_p11)  ;;  %v1251_v8 = vld [vmem:[#allocation11 + $0x8] sm:$0xff] (!%p7661_p11)  ;;  %v1252_v10 = vld [vmem:[#allocation11 + $0x10] sm:$0xff] (!%p7661_p11)  ;;  %vm1264_vm3 = vcmask (!%p7661_p11), 1046528   ;;  %vm6324_vm4 = vmmov (!%p7661_p11), 1  }
 0x314   : > { %s7670_s22 = smov (!%p1105_p2, %s1104_s22), 131  ;;  %4748 = vmatpush3.bf16.msra.mxu0 (!%p7661_p11), %v4747_v3  ;;  %v4750_v9 = vpack.c.bf16 (!%p7661_p11), %v1251_v8, %v1250_v7  ;;  %v1253_v11 = vld [vmem:[#allocation11 + $0x18] sm:$0x7f] (!%p7661_p11)  ;;  %vm7140_vm5 = vmpackc.low (!%p7661_p11), %vm1264_vm3, %vm6324_vm4  ;;  %v7147_v15 = vshrl.u32 (!%p7661_p11), %v1115_v14, 7  ;;  %vm1212_vm7 = vcmask (!%p7661_p11), 252928   ;;  %v1338_v47 = vld [vmem:[#allocation10] sm:$0xff] (!%p7661_p11) }
 0x315   : > { %s4464_s29 = sshll.u32 %s7670_s22, 3  ;;  %4719 = vmatprep.subr.mxu0 (!%p7661_p11), %v6323_v4  ;;  %v4753_v12 = vpack.c.bf16 (!%p7661_p11), %v1253_v11, %v1252_v10  ;;  %v4467_v16 = vld [vmem:[#allocation5] ss:$0 sm:$0xff] (!%p7661_p11)  ;;  %v4470_v43 = vld [vmem:[#allocation7] ss:$0 sm:$0xff] (!%p7661_p11)  ;;  %v1339_v48 = vld [vmem:[#allocation10 + $0x8] sm:$0xff] (!%p7661_p11) }
 0x316   : > { %s7122_s17 = scalar_lea.vmem %s7660_s19, %s4464_s29  ;;  %4751 = vmatpush3.bf16.msra.mxu1 (!%p7661_p11), %v4750_v9  ;;  %vm1117_vm6 = vcmp.lt.s32.totalorder (!%p7661_p11), %v7147_v15, 2  ;;  %v4471_v45 = vld [vmem:[#allocation8] ss:$0 sm:$0xff] (!%p7661_p11)  ;;  %v4757_v50 = vpack.c.bf16 (!%p7661_p11), %v1339_v48, %v1338_v47  ;;  %v1340_v52 = vld [vmem:[#allocation10 + $0x10] sm:$0xff] (!%p7661_p11)  ;;  %v1496_v58 = vld [vmem:[#allocation19] sm:$0xff] (!%p7661_p11)  ;;  %vm1416_vm8 = vcmask (!%p7661_p11), 261120  }
 0x317   : > { %4752 = vmatprep.subr.bf16.mxu1 (!%p7661_p11), %v6321_v2  ;;  %v7151_v17 = vsel (!%p7661_p11), %vm1117_vm6, 1.0, %v6323_v4  ;;  %v1341_v53 = vld [vmem:[#allocation10 + $0x18] sm:$0x7f] (!%p7661_p11)  ;;  %v1497_v55 = vld [vmem:[#allocation19 + $0x8] sm:$0xff] (!%p7661_p11)  ;;  %v1500_v59 = vld [vmem:[#allocation19 + $0x20] sm:$0xff] (!%p7661_p11) }
 0x318   : > { %4720 = vmatpush3.msk.msra.mxu0 (!%p7661_p11), %vm1135_vm1, %v1123_v5  ;;  %v4760_v54 = vpack.c.bf16 (!%p7661_p11), %v1341_v53, %v1340_v52  ;;  %v1501_v56 = vld [vmem:[#allocation19 + $0x28] sm:$0xff] (!%p7661_p11)  ;;  %v1483_v60 = vld [vmem:[#allocation17 + $0x18] sm:$0xff] (!%p7661_p11)  ;;  %v4765_v61 = vpack.c.bf16 (!%p7661_p11), %v1500_v59, %v1496_v58  ;;  %v1482_v63 = vld [vmem:[#allocation17 + $0x10] sm:$0xff] (!%p7661_p11) }
 0x319   : > { %v1120_v6 = vld [vmem:[%s7662_s8] sm:$0xff]  ;;  %v4763_v57 = vpack.c.bf16 %v1501_v56, %v1497_v55  ;;  %v1486_v0 = vld [vmem:[#allocation17 + $0x30] sm:$0xff]  ;;  %v1505_v3 = vld [vmem:[#allocation19 + $0x48] sm:$0xff] }
 0x31a   : > { %4722 = vmatmul.mubr.msk.f32.vlgmr.msra.gmra.mrb[0].mxu0 %vm1131_vm2, %v1120_v6  ;;  %4755 = vmatpush3.bf16.msk.msra.mxu1 %vm7140_vm5, %v4753_v12  ;;  %v1487_v62 = vld [vmem:[#allocation17 + $0x38] sm:$0xff]  ;;  %v1509_v5 = vld [vmem:[#allocation19 + $0x68] sm:$0xff]  ;;  %v1504_v7 = vld [vmem:[#allocation19 + $0x40] sm:$0xff] }
 0x31b   : > { %1795 = vmatprep.mubr.f32.mxu0 %v6323_v4  ;;  %4756 = vmatprep.subr.bf16.mxu1 %v6321_v2  ;;  %v4787_v1 = vpack.c.bf16 %v1487_v62, %v1483_v60  ;;  %v4767_v6 = vpack.c.bf16 %v1509_v5, %v1505_v3  ;;  %v1508_v8 = vld [vmem:[#allocation19 + $0x60] sm:$0xff]  ;;  %v1491_v9 = vld [vmem:[#allocation17 + $0x58] sm:$0xff]  ;;  %v1490_v12 = vld [vmem:[#allocation17 + $0x50] sm:$0xff] }
 0x31c   : > { %v4769_v10 = vpack.c.bf16 %v1508_v8, %v1504_v7  ;;  %v1495_v11 = vld [vmem:[#allocation17 + $0x78] sm:$0xff]  ;;  %v1494_v14 = vld [vmem:[#allocation17 + $0x70] sm:$0xff] }
 0x31d   : > { %4788 = vmatprep.subr.bf16.mxu0 %v4787_v1  ;;  %v4791_v13 = vpack.c.bf16 %v1495_v11, %v1491_v9  ;;  %v4477_v7 = vld [vmem:[#allocation14] ss:$0 sm:$0xff] }
 0x3ed   : > { %v1205_v18 = vpop.f32.mrb[0].mxu0 }
 0x3ee   : > { %v1206_v19 = vadd.f32 %v4467_v16, %v1205_v18  ;;  %v4723_v20 = vpop.f32.mrb[1].mxu0  ;;  %v4793_v16 = vpack.c.bf16 %v1494_v14, %v1490_v12  ;;  %v1499_v18 = vld [vmem:[#allocation19 + $0x18] sm:$0xff]  ;;  %v1502_v14 = vld [vmem:[#allocation19 + $0x30] sm:$0xff] }
 0x3f0   : > { %v1211_v21 = vmul.f32 %v7151_v17, %v1206_v19 }
 0x3f2   : > { %v1213_v22 = vsel %vm1212_vm7, %v1211_v21, 0.0  ;;  %v4472_v21 = vld [vmem:[#allocation13] ss:$0 sm:$0xff] }
 0x3f3   : > { %v1214_v23 = vrot.slane %v1213_v22, 4 }
 0x3f5   : > { %v1215_v24 = vadd.f32 %v1214_v23, %v1213_v22 }
 0x3f7   : > { %v1216_v25 = vrot.slane %v1215_v24, 2 }
 0x3f9   : > { %v1217_v26 = vadd.f32 %v1216_v25, %v1215_v24 }
 0x3fb   : > { %v1218_v27 = vrot.slane %v1217_v26, 1 }
 0x3fd   : > { %v1219_v28 = vadd.f32 %v1218_v27, %v1217_v26 }
 0x3ff   : > { %v1220_v29 = vmul.f32 0.5, %v1219_v28 }
 0x401   : > { %v1221_v30 = vsub.f32 %v1206_v19, %v1220_v29  ;;  %v1503_v19 = vld [vmem:[#allocation19 + $0x38] sm:$0xff] }
 0x402   : > { %v4771_v20 = vpack.c.bf16 %v1503_v19, %v1499_v18  ;;  %v1511_v18 = vld [vmem:[#allocation19 + $0x78] sm:$0xff] }
 0x403   : > { %v1222_v31 = vmul.f32 %v7151_v17, %v1221_v30 }
 0x405   : > { %v1223_v32 = vmul.f32 %v1222_v31, %v1222_v31 }
 0x407   : > { %v1224_v33 = vsel %vm1212_vm7, %v1223_v32, 0.0 }
 0x408   : > { %v1225_v34 = vrot.slane %v1224_v33, 4 }
 0x40a   : > { %v1226_v35 = vadd.f32 %v1225_v34, %v1224_v33 }
 0x40c   : > { %v1227_v36 = vrot.slane %v1226_v35, 2 }
 0x40e   : > { %v1228_v37 = vadd.f32 %v1227_v36, %v1226_v35 }
 0x410   : > { %v1229_v38 = vrot.slane %v1228_v37, 1 }
 0x412   : > { %v1230_v39 = vadd.f32 %v1229_v38, %v1228_v37 }
 0x414   : > { %v1231_v40 = vmul.f32 0.5, %v1230_v39 }
 0x416   : > { %v1232_v41 = vadd.f32 1e-05, %v1231_v40 }
 0x418   : > { %5246 = vrsqrt.f32 %v1232_v41 }
 0x422   : > { %v5247_v42 = vpop.eup %5246 }
 0x423   : > { %v1234_v44 = vmul.f32 %v5247_v42, %v1221_v30 }
 0x425   : > { %v1241_v46 = vmul.f32 %v4470_v43, %v1234_v44 }
 0x427   : > { %v1248_v49 = vadd.f32 %v4471_v45, %v1241_v46 }
 0x429   : > { %v1249_v51 = vmax.f32 %v1248_v49, 0.0 }
 0x42b   : > { %4733 = vmatmul.mubr.msk.f32.vlgmr.msra.gmra.mrb[0].mxu1 %vm1212_vm7, %v1249_v51 }
 0x42c   : > { %4758 = vmatpush3.bf16.msra.mxu1 %v4757_v50  ;;  %4743 = vmatprep.mubr.msk.f32.mxu1 %vm6322_vm0, %v6323_v4 }
 0x42d   : > { %4759 = vmatprep.subr.bf16.mxu1 %v6321_v2  ;;  %v4789_v2 = vpack.c.bf16 %v1486_v0, %v1482_v63 }
 0x42f   : > { %4790 = vmatpush1.bf16.msra.mxu0 %v4789_v2 }
 0x430   : > { %4762 = vmatpush3.bf16.msk.msra.mxu1 %vm7140_vm5, %v4760_v54  ;;  %4792 = vmatprep.subr.bf16.mxu0 %v4791_v13  ;;  %v1498_v13 = vld [vmem:[#allocation19 + $0x10] sm:$0xff] }
 0x431   : > { %4764 = vmatprep.subr.bf16.mxu1 %v4763_v57 }
 0x433   : > { %4744 = vmatmul.mubr.msk.f32.vlgmr.msra.gmra.mrb[2].mxu1 %vm1212_vm7, %v1249_v51  ;;  %4794 = vmatpush1.bf16.msra.mxu0 %v4793_v16  ;;  %v1507_v16 = vld [vmem:[#allocation19 + $0x58] sm:$0xff] }
 0x434   : > { %1579 = vmatprep.mubr.f32.mxu1 %v6323_v4  ;;  %4766 = vmatpush1.bf16.msra.mxu1 %v4765_v61 }
 0x435   : > { %4768 = vmatprep.subr.bf16.mxu1 %v4767_v6 }
 0x438   : > { %4770 = vmatpush1.bf16.msra.mxu1 %v4769_v10  ;;  %v4478_v10 = vld [vmem:[#allocation16] ss:$0 sm:$0xff] }
 0x439   : > { %4772 = vmatprep.subr.bf16.mxu1 %v4771_v20 }
 0x4fe   : > { %v1334_v22 = vpop.f32.mrb[0].mxu1 }
 0x4ff   : > { %v1335_v23 = vadd.f32 %v4472_v21, %v1334_v22  ;;  %v4734_v24 = vpop.f32.mrb[1].mxu1 }
 0x500   : > { %v4775_v24 = vpack.c.bf16 %v1511_v18, %v1507_v16  ;;  %v1976_v16 = vld [vmem:[#allocation25 + $0x40] sm:$0xff]  ;;  %v1978_v18 = vld [vmem:[#allocation25 + $0x50] sm:$0xff] }
 0x501   : > { %v1415_v25 = vmul.f32 %v7151_v17, %v1335_v23 }
 0x503   : > { %v1417_v26 = vsel %vm1416_vm8, %v1415_v25, 0.0  ;;  %v1506_v25 = vld [vmem:[#allocation19 + $0x50] sm:$0xff] }
 0x504   : > { %v1418_v27 = vrot.slane %v1417_v26, 4 }
 0x506   : > { %v1419_v28 = vadd.f32 %v1418_v27, %v1417_v26  ;;  %v1411_v29 = vpop.f32.mrb[2].mxu1  ;;  %v1510_v26 = vld [vmem:[#allocation19 + $0x70] sm:$0xff]  ;;  %v1481_v27 = vld [vmem:[#allocation17 + $0x8] sm:$0xff] }
 0x507   : > { %v1412_v30 = vadd.f32 %v4472_v21, %v1411_v29  ;;  %v4745_v31 = vpop.f32.mrb[3].mxu1  ;;  %v4773_v21 = vpack.c.bf16 %v1502_v14, %v1498_v13  ;;  %v4777_v29 = vpack.c.bf16 %v1510_v26, %v1506_v25  ;;  %v1979_v13 = vld [vmem:[#allocation25 + $0x58] sm:$0xff]  ;;  %v1981_v26 = vld [vmem:[#allocation25 + $0x68] sm:$0xff] }
 0x508   : > { %v1420_v33 = vrot.slane %v1419_v28, 2  ;;  %v1480_v31 = vld [vmem:[#allocation17] sm:$0xff] }
 0x509   : > { %v1424_v32 = vmul.f32 %v7151_v17, %v1412_v30 }
 0x50a   : > { %v1421_v36 = vadd.f32 %v1420_v33, %v1419_v28  ;;  %v1485_v28 = vld [vmem:[#allocation17 + $0x28] sm:$0xff] }
 0x50b   : > { %v1425_v34 = vsel %vm1416_vm8, %v1424_v32, 0.0  ;;  %v1484_v32 = vld [vmem:[#allocation17 + $0x20] sm:$0xff]  ;;  %v1489_v33 = vld [vmem:[#allocation17 + $0x48] sm:$0xff] }
 0x50c   : > { %v1426_v35 = vrot.slane %v1425_v34, 4  ;;  %v1422_v39 = vrot.slane %v1421_v36, 1 }
 0x50e   : > { %v1427_v37 = vadd.f32 %v1426_v35, %v1425_v34  ;;  %v1423_v42 = vadd.f32 %v1422_v39, %v1421_v36  ;;  %v1493_v34 = vld [vmem:[#allocation17 + $0x68] sm:$0xff]  ;;  %v4781_v35 = vpack.c.bf16 %v1484_v32, %v1480_v31  ;;  %v2053_v32 = vld [vmem:[#allocation25 + $0x2a8] sm:$0xff] }
 0x50f   : > { %v4783_v36 = vpack.c.bf16 %v1493_v34, %v1489_v33  ;;  %v2055_v33 = vld [vmem:[#allocation25 + $0x2b8] sm:$0xff] }
 0x510   : > { %v1428_v38 = vrot.slane %v1427_v37, 2  ;;  %v4879_v34 = vpack.c.bf16 %v2055_v33, %v2053_v32  ;;  %v2072_v33 = vld [vmem:[#allocation25 + $0x340] sm:$0xff] }
 0x512   : > { %v1429_v40 = vadd.f32 %v1428_v38, %v1427_v37  ;;  %v1488_v37 = vld [vmem:[#allocation17 + $0x40] sm:$0xff] }
 0x513   : > { %v1492_v38 = vld [vmem:[#allocation17 + $0x60] sm:$0xff] }
 0x514   : > { %v1430_v41 = vrot.slane %v1429_v40, 1  ;;  %v4785_v39 = vpack.c.bf16 %v1492_v38, %v1488_v37  ;;  %v1985_v38 = vld [vmem:[#allocation25 + $0x88] sm:$0xff] }
 0x516   : > { %v1431_v43 = vadd.f32 %v1430_v41, %v1429_v40  ;;  %v2033_v40 = vld [vmem:[#allocation25 + $0x208] sm:$0xff]  ;;  %v2035_v41 = vld [vmem:[#allocation25 + $0x218] sm:$0xff] }
 0x518   : > { %v1432_v44 = vadd.f32 %v1431_v43, %v1423_v42  ;;  %v4859_v42 = vpack.c.bf16 %v2035_v41, %v2033_v40  ;;  %v2032_v43 = vld [vmem:[#allocation25 + $0x200] sm:$0xff] }
 0x519   : > { %v1984_v41 = vld [vmem:[#allocation25 + $0x80] sm:$0xff] }
 0x51a   : > { %v1433_v45 = vmul.f32 0.25, %v1432_v44  ;;  %v2034_v44 = vld [vmem:[#allocation25 + $0x210] sm:$0xff] }
 0x51c   : > { %v1434_v46 = vsub.f32 %v1335_v23, %v1433_v45  ;;  %v1436_v47 = vsub.f32 %v1412_v30, %v1433_v45  ;;  %v4779_v30 = vpack.c.bf16 %v1485_v28, %v1481_v27  ;;  %v4861_v45 = vpack.c.bf16 %v2034_v44, %v2032_v43  ;;  %v1983_v27 = vld [vmem:[#allocation25 + $0x78] sm:$0xff]  ;;  %v2057_v44 = vld [vmem:[#allocation25 + $0x2c8] sm:$0xff] }
 0x51d   : > { %v4807_v28 = vpack.c.bf16 %v1983_v27, %v1981_v26  ;;  %v2000_v27 = vld [vmem:[#allocation25 + $0x100] sm:$0xff] }
 0x51e   : > { %v1435_v48 = vmul.f32 %v7151_v17, %v1434_v46  ;;  %v1437_v49 = vmul.f32 %v7151_v17, %v1436_v47 }
 0x520   : > { %v1438_v50 = vmul.f32 %v1435_v48, %v1435_v48  ;;  %v1446_v51 = vmul.f32 %v1437_v49, %v1437_v49  ;;  %v2036_v49 = vld [vmem:[#allocation25 + $0x220] sm:$0xff] }
 0x522   : > { %v1439_v52 = vsel %vm1416_vm8, %v1438_v50, 0.0  ;;  %v1447_v53 = vsel %vm1416_vm8, %v1446_v51, 0.0  ;;  %v2038_v50 = vld [vmem:[#allocation25 + $0x230] sm:$0xff] }
 0x523   : > { %v1440_v54 = vrot.slane %v1439_v52, 4  ;;  %v1448_v55 = vrot.slane %v1447_v53, 4  ;;  %v4865_v51 = vpack.c.bf16 %v2038_v50, %v2036_v49  ;;  %v1989_v50 = vld [vmem:[#allocation25 + $0xa8] sm:$0xff] }
 0x525   : > { %v1441_v56 = vadd.f32 %v1440_v54, %v1439_v52  ;;  %v1449_v57 = vadd.f32 %v1448_v55, %v1447_v53  ;;  %v1969_v52 = vld [vmem:[#allocation25 + $0x8] sm:$0xff]  ;;  %v1968_v54 = vld [vmem:[#allocation25] sm:$0xff]  ;;  %v1970_v55 = vld [vmem:[#allocation25 + $0x10] sm:$0xff] }
 0x527   : > { %v1442_v58 = vrot.slane %v1441_v56, 2  ;;  %v1450_v59 = vrot.slane %v1449_v57, 2 }
 0x529   : > { %v1443_v60 = vadd.f32 %v1442_v58, %v1441_v56  ;;  %v1451_v61 = vadd.f32 %v1450_v59, %v1449_v57  ;;  %v4797_v56 = vpack.c.bf16 %v1970_v55, %v1968_v54  ;;  %v2041_v57 = vld [vmem:[#allocation25 + $0x248] sm:$0xff]  ;;  %v2043_v58 = vld [vmem:[#allocation25 + $0x258] sm:$0xff] }
 0x52a   : > { %v4867_v59 = vpack.c.bf16 %v2043_v58, %v2041_v57  ;;  %v2061_v55 = vld [vmem:[#allocation25 + $0x2e8] sm:$0xff]  ;;  %v2060_v58 = vld [vmem:[#allocation25 + $0x2e0] sm:$0xff] }
 0x52b   : > { %v1444_v62 = vrot.slane %v1443_v60, 1  ;;  %v1452_v63 = vrot.slane %v1451_v61, 1 }
 0x52d   : > { %v1445_v0 = vadd.f32 %v1444_v62, %v1443_v60  ;;  %v1453_v1 = vadd.f32 %v1452_v63, %v1451_v61  ;;  %v2040_v60 = vld [vmem:[#allocation25 + $0x240] sm:$0xff]  ;;  %v2042_v61 = vld [vmem:[#allocation25 + $0x250] sm:$0xff]  ;;  %v1973_v63 = vld [vmem:[#allocation25 + $0x28] sm:$0xff] }
 0x52e   : > { %v4869_v62 = vpack.c.bf16 %v2042_v61, %v2040_v60  ;;  %v1993_v61 = vld [vmem:[#allocation25 + $0xc8] sm:$0xff] }
 0x52f   : > { %v1454_v2 = vadd.f32 %v1453_v1, %v1445_v0  ;;  %v1975_v0 = vld [vmem:[#allocation25 + $0x38] sm:$0xff] }
 0x530   : > { %v4799_v1 = vpack.c.bf16 %v1975_v0, %v1973_v63  ;;  %v1992_v0 = vld [vmem:[#allocation25 + $0xc0] sm:$0xff] }
 0x531   : > { %v1455_v3 = vmul.f32 0.25, %v1454_v2  ;;  %v1972_v2 = vld [vmem:[#allocation25 + $0x20] sm:$0xff] }
 0x533   : > { %v1456_v5 = vadd.f32 1e-05, %v1455_v3  ;;  %v1974_v3 = vld [vmem:[#allocation25 + $0x30] sm:$0xff] }
 0x535   : > { %5248 = vrsqrt.f32 %v1456_v5  ;;  %v4801_v5 = vpack.c.bf16 %v1974_v3, %v1972_v2  ;;  %v2065_v3 = vld [vmem:[#allocation25 + $0x308] sm:$0xff] }
 0x53f   : > { %v5249_v6 = vpop.eup %5248 }
 0x540   : > { %v1458_v8 = vmul.f32 %v5249_v6, %v1434_v46  ;;  %v1476_v9 = vmul.f32 %v5249_v6, %v1436_v47  ;;  %v2037_v46 = vld [vmem:[#allocation25 + $0x228] sm:$0xff]  ;;  %v2039_v47 = vld [vmem:[#allocation25 + $0x238] sm:$0xff] }
 0x541   : > { %v4863_v48 = vpack.c.bf16 %v2039_v47, %v2037_v46  ;;  %v2045_v6 = vld [vmem:[#allocation25 + $0x268] sm:$0xff]  ;;  %v2056_v47 = vld [vmem:[#allocation25 + $0x2c0] sm:$0xff] }
 0x542   : > { %v1466_v11 = vmul.f32 %v4477_v7, %v1458_v8  ;;  %v1477_v12 = vmul.f32 %v4477_v7, %v1476_v9  ;;  %v2047_v7 = vld [vmem:[#allocation25 + $0x278] sm:$0xff]  ;;  %v2044_v9 = vld [vmem:[#allocation25 + $0x260] sm:$0xff] }
 0x543   : > { %v4871_v8 = vpack.c.bf16 %v2047_v7, %v2045_v6  ;;  %v2064_v7 = vld [vmem:[#allocation25 + $0x300] sm:$0xff] }
 0x544   : > { %v1474_v19 = vadd.f32 %v4478_v10, %v1466_v11  ;;  %v1478_v20 = vadd.f32 %v4478_v10, %v1477_v12  ;;  %v2046_v10 = vld [vmem:[#allocation25 + $0x270] sm:$0xff]  ;;  %v1977_v12 = vld [vmem:[#allocation25 + $0x48] sm:$0xff] }
 0x545   : > { %v4873_v11 = vpack.c.bf16 %v2046_v10, %v2044_v9  ;;  %v4803_v14 = vpack.c.bf16 %v1979_v13, %v1977_v12  ;;  %v1997_v10 = vld [vmem:[#allocation25 + $0xe8] sm:$0xff]  ;;  %v1996_v13 = vld [vmem:[#allocation25 + $0xe0] sm:$0xff] }
 0x546   : > { %v1475_v22 = vmax.f32 %v1474_v19, 0.0  ;;  %v1479_v23 = vmax.f32 %v1478_v20, 0.0  ;;  %v4805_v19 = vpack.c.bf16 %v1978_v18, %v1976_v16  ;;  %v2049_v20 = vld [vmem:[#allocation25 + $0x288] sm:$0xff] }
 0x547   : > { %v2069_v18 = vld [vmem:[#allocation25 + $0x328] sm:$0xff] }
 0x548   : > { %4479 = vmatmul.mubr.msk.f32.vlgmr.msra.gmra.mrb[4].mxu1 %vm1416_vm8, %v1479_v23  ;;  %4482 = vmatmul.mubr.msk.f32.vlgmr.msra.gmra.mrb[2].mxu0 %vm1416_vm8, %v1475_v22 }
 0x549   : > { %4774 = vmatpush1.bf16.msra.mxu1 %v4773_v21  ;;  %1650 = vmatprep.mubr.f32.mxu1 %v6323_v4  ;;  %v2051_v21 = vld [vmem:[#allocation25 + $0x298] sm:$0xff] }
 0x54a   : > { %4776 = vmatprep.subr.bf16.mxu1 %v4775_v24  ;;  %v2050_v24 = vld [vmem:[#allocation25 + $0x290] sm:$0xff] }
 0x54d   : > { %4778 = vmatpush1.bf16.msra.mxu1 %v4777_v29  ;;  %v1980_v29 = vld [vmem:[#allocation25 + $0x60] sm:$0xff] }
 0x54e   : > { %4780 = vmatprep.subr.bf16.mxu1 %v4779_v30  ;;  %v1982_v30 = vld [vmem:[#allocation25 + $0x70] sm:$0xff] }
 0x54f   : > { %v4809_v31 = vpack.c.bf16 %v1982_v30, %v1980_v29  ;;  %v2073_v30 = vld [vmem:[#allocation25 + $0x348] sm:$0xff] }
 0x550   : > { %4480 = vmatmul.mubr.msk.f32.vlgmr.msra.gmra.mrb[6].mxu1 %vm1416_vm8, %v1479_v23  ;;  %v2048_v23 = vld [vmem:[#allocation25 + $0x280] sm:$0xff] }
 0x551   : > { %4782 = vmatpush1.bf16.msra.mxu1 %v4781_v35  ;;  %1724 = vmatprep.mubr.f32.mxu1 %v6323_v4  ;;  %v1971_v4 = vld [vmem:[#allocation25 + $0x18] sm:$0xff]  ;;  %v4877_v25 = vpack.c.bf16 %v2050_v24, %v2048_v23  ;;  %v2052_v35 = vld [vmem:[#allocation25 + $0x2a0] sm:$0xff]  ;;  %v2001_v24 = vld [vmem:[#allocation25 + $0x108] sm:$0xff] }
 0x552   : > { %4784 = vmatprep.subr.bf16.mxu1 %v4783_v36  ;;  %v4795_v53 = vpack.c.bf16 %v1971_v4, %v1969_v52  ;;  %v2054_v36 = vld [vmem:[#allocation25 + $0x2b0] sm:$0xff]  ;;  %v1988_v4 = vld [vmem:[#allocation25 + $0xa0] sm:$0xff] }
 0x553   : > { %v4881_v37 = vpack.c.bf16 %v2054_v36, %v2052_v35  ;;  %v2005_v36 = vld [vmem:[#allocation25 + $0x128] sm:$0xff] }
 0x554   : > { %4796 = vmatprep.subr.bf16.mxu0 %v4795_v53  ;;  %v1990_v53 = vld [vmem:[#allocation25 + $0xb0] sm:$0xff] }
 0x555   : > { %4786 = vmatpush1.bf16.msra.mxu1 %v4785_v39  ;;  %4798 = vmatpush1.bf16.msra.mxu0 %v4797_v56  ;;  %v1987_v39 = vld [vmem:[#allocation25 + $0x98] sm:$0xff]  ;;  %v4817_v54 = vpack.c.bf16 %v1990_v53, %v1988_v4  ;;  %v2081_v53 = vld [vmem:[#allocation25 + $0x388] sm:$0xff] }
 0x556   : > { %4860 = vmatprep.subr.bf16.mxu1 %v4859_v42  ;;  %4800 = vmatprep.subr.bf16.mxu0 %v4799_v1  ;;  %v4811_v40 = vpack.c.bf16 %v1987_v39, %v1985_v38  ;;  %v1986_v42 = vld [vmem:[#allocation25 + $0x90] sm:$0xff]  ;;  %v2063_v56 = vld [vmem:[#allocation25 + $0x2f8] sm:$0xff]  ;;  %v2004_v39 = vld [vmem:[#allocation25 + $0x120] sm:$0xff] }
 0x557   : > { %v4813_v43 = vpack.c.bf16 %v1986_v42, %v1984_v41  ;;  %v4887_v57 = vpack.c.bf16 %v2063_v56, %v2061_v55  ;;  %v1994_v1 = vld [vmem:[#allocation25 + $0xd0] sm:$0xff]  ;;  %v2077_v42 = vld [vmem:[#allocation25 + $0x368] sm:$0xff]  ;;  %v2080_v56 = vld [vmem:[#allocation25 + $0x380] sm:$0xff] }
 0x558   : > { %4481 = vmatmul.mubr.msk.f32.vlgmr.msra.gmra.mrb[4].mxu1 %vm1416_vm8, %v1475_v22  ;;  %v4875_v22 = vpack.c.bf16 %v2051_v21, %v2049_v20  ;;  %v4821_v2 = vpack.c.bf16 %v1994_v1, %v1992_v0  ;;  %v2068_v21 = vld [vmem:[#allocation25 + $0x320] sm:$0xff]  ;;  %v2085_v1 = vld [vmem:[#allocation25 + $0x3a8] sm:$0xff] }
 0x559   : > { %4862 = vmatpush1.bf16.msra.mxu1 %v4861_v45  ;;  %4802 = vmatpush1.bf16.msra.mxu0 %v4801_v5  ;;  %v2059_v45 = vld [vmem:[#allocation25 + $0x2d8] sm:$0xff] }
 0x55a   : > { %4864 = vmatprep.subr.bf16.mxu1 %v4863_v48  ;;  %4804 = vmatprep.subr.bf16.mxu0 %v4803_v14  ;;  %v4883_v46 = vpack.c.bf16 %v2059_v45, %v2057_v44  ;;  %v2058_v48 = vld [vmem:[#allocation25 + $0x2d0] sm:$0xff]  ;;  %v2067_v5 = vld [vmem:[#allocation25 + $0x318] sm:$0xff]  ;;  %v2076_v45 = vld [vmem:[#allocation25 + $0x360] sm:$0xff] }
 0x55b   : > { %v4885_v49 = vpack.c.bf16 %v2058_v48, %v2056_v47  ;;  %v4891_v6 = vpack.c.bf16 %v2067_v5, %v2065_v3  ;;  %v1998_v14 = vld [vmem:[#allocation25 + $0xf0] sm:$0xff]  ;;  %v2009_v48 = vld [vmem:[#allocation25 + $0x148] sm:$0xff]  ;;  %v2084_v5 = vld [vmem:[#allocation25 + $0x3a0] sm:$0xff] }
 0x55c   : > { %v4825_v16 = vpack.c.bf16 %v1998_v14, %v1996_v13  ;;  %v2089_v14 = vld [vmem:[#allocation25 + $0x3c8] sm:$0xff] }
 0x55d   : > { %4866 = vmatpush1.bf16.msra.mxu1 %v4865_v51  ;;  %4806 = vmatpush1.bf16.msra.mxu0 %v4805_v19  ;;  %v1991_v51 = vld [vmem:[#allocation25 + $0xb8] sm:$0xff] }
 0x55e   : > { %4868 = vmatprep.subr.bf16.mxu1 %v4867_v59  ;;  %4808 = vmatprep.subr.bf16.mxu0 %v4807_v28  ;;  %v4815_v52 = vpack.c.bf16 %v1991_v51, %v1989_v50  ;;  %v2062_v59 = vld [vmem:[#allocation25 + $0x2f0] sm:$0xff]  ;;  %v2071_v19 = vld [vmem:[#allocation25 + $0x338] sm:$0xff]  ;;  %v2008_v51 = vld [vmem:[#allocation25 + $0x140] sm:$0xff] }
 0x55f   : > { %v4889_v60 = vpack.c.bf16 %v2062_v59, %v2060_v58  ;;  %v4895_v20 = vpack.c.bf16 %v2071_v19, %v2069_v18  ;;  %v2002_v28 = vld [vmem:[#allocation25 + $0x110] sm:$0xff]  ;;  %v2013_v59 = vld [vmem:[#allocation25 + $0x168] sm:$0xff]  ;;  %v2088_v19 = vld [vmem:[#allocation25 + $0x3c0] sm:$0xff] }
 0x560   : > { %v4829_v29 = vpack.c.bf16 %v2002_v28, %v2000_v27  ;;  %v2093_v28 = vld [vmem:[#allocation25 + $0x3e8] sm:$0xff] }
 0x561   : > { %4870 = vmatpush1.bf16.msra.mxu1 %v4869_v62  ;;  %4810 = vmatpush1.bf16.msra.mxu0 %v4809_v31  ;;  %v1995_v62 = vld [vmem:[#allocation25 + $0xd8] sm:$0xff] }
 0x562   : > { %4872 = vmatprep.subr.bf16.mxu1 %v4871_v8  ;;  %4812 = vmatprep.subr.bf16.mxu0 %v4811_v40  ;;  %v4819_v63 = vpack.c.bf16 %v1995_v62, %v1993_v61  ;;  %v2066_v8 = vld [vmem:[#allocation25 + $0x310] sm:$0xff]  ;;  %v2075_v31 = vld [vmem:[#allocation25 + $0x358] sm:$0xff]  ;;  %v2012_v62 = vld [vmem:[#allocation25 + $0x160] sm:$0xff] }
 0x563   : > { %v4893_v9 = vpack.c.bf16 %v2066_v8, %v2064_v7  ;;  %v4899_v32 = vpack.c.bf16 %v2075_v31, %v2073_v30  ;;  %v2006_v40 = vld [vmem:[#allocation25 + $0x130] sm:$0xff]  ;;  %v2017_v8 = vld [vmem:[#allocation25 + $0x188] sm:$0xff]  ;;  %v2092_v31 = vld [vmem:[#allocation25 + $0x3e0] sm:$0xff] }
 0x564   : > { %v4833_v41 = vpack.c.bf16 %v2006_v40, %v2004_v39  ;;  %v2029_v40 = vld [vmem:[#allocation25 + $0x1e8] sm:$0xff] }
 0x565   : > { %4874 = vmatpush1.bf16.msra.mxu1 %v4873_v11  ;;  %4814 = vmatpush1.bf16.msra.mxu0 %v4813_v43  ;;  %v1999_v11 = vld [vmem:[#allocation25 + $0xf8] sm:$0xff] }
 0x566   : > { %4876 = vmatprep.subr.bf16.mxu1 %v4875_v22  ;;  %4816 = vmatprep.subr.bf16.mxu0 %v4815_v52  ;;  %v4823_v12 = vpack.c.bf16 %v1999_v11, %v1997_v10  ;;  %v2070_v22 = vld [vmem:[#allocation25 + $0x330] sm:$0xff]  ;;  %v2079_v43 = vld [vmem:[#allocation25 + $0x378] sm:$0xff]  ;;  %v2016_v11 = vld [vmem:[#allocation25 + $0x180] sm:$0xff] }
 0x567   : > { %v4897_v23 = vpack.c.bf16 %v2070_v22, %v2068_v21  ;;  %v4903_v44 = vpack.c.bf16 %v2079_v43, %v2077_v42  ;;  %v2010_v52 = vld [vmem:[#allocation25 + $0x150] sm:$0xff]  ;;  %v2021_v22 = vld [vmem:[#allocation25 + $0x1a8] sm:$0xff]  ;;  %v2028_v43 = vld [vmem:[#allocation25 + $0x1e0] sm:$0xff] }
 0x568   : > { %v4837_v4 = vpack.c.bf16 %v2010_v52, %v2008_v51 }
 0x569   : > { %4878 = vmatpush1.bf16.msra.mxu1 %v4877_v25  ;;  %4818 = vmatpush1.bf16.msra.mxu0 %v4817_v54  ;;  %v2003_v25 = vld [vmem:[#allocation25 + $0x118] sm:$0xff] }
 0x56a   : > { %4880 = vmatprep.subr.bf16.mxu1 %v4879_v34  ;;  %4820 = vmatprep.subr.bf16.mxu0 %v4819_v63  ;;  %v4827_v26 = vpack.c.bf16 %v2003_v25, %v2001_v24  ;;  %v2074_v34 = vld [vmem:[#allocation25 + $0x350] sm:$0xff]  ;;  %v2083_v54 = vld [vmem:[#allocation25 + $0x398] sm:$0xff]  ;;  %v2020_v25 = vld [vmem:[#allocation25 + $0x1a0] sm:$0xff] }
 0x56b   : > { %v4901_v35 = vpack.c.bf16 %v2074_v34, %v2072_v33  ;;  %v4907_v55 = vpack.c.bf16 %v2083_v54, %v2081_v53  ;;  %v2014_v63 = vld [vmem:[#allocation25 + $0x170] sm:$0xff]  ;;  %v2025_v34 = vld [vmem:[#allocation25 + $0x1c8] sm:$0xff] }
 0x56c   : > { %v4841_v0 = vpack.c.bf16 %v2014_v63, %v2012_v62 }
 0x56d   : > { %4882 = vmatpush1.bf16.msra.mxu1 %v4881_v37  ;;  %4822 = vmatpush1.bf16.msra.mxu0 %v4821_v2  ;;  %v2007_v37 = vld [vmem:[#allocation25 + $0x138] sm:$0xff] }
 0x56e   : > { %4884 = vmatprep.subr.bf16.mxu1 %v4883_v46  ;;  %4824 = vmatprep.subr.bf16.mxu0 %v4823_v12  ;;  %v4831_v38 = vpack.c.bf16 %v2007_v37, %v2005_v36  ;;  %v2078_v46 = vld [vmem:[#allocation25 + $0x370] sm:$0xff]  ;;  %v2087_v2 = vld [vmem:[#allocation25 + $0x3b8] sm:$0xff]  ;;  %v2024_v37 = vld [vmem:[#allocation25 + $0x1c0] sm:$0xff] }
 0x56f   : > { %v4905_v47 = vpack.c.bf16 %v2078_v46, %v2076_v45  ;;  %v4911_v3 = vpack.c.bf16 %v2087_v2, %v2085_v1  ;;  %v2018_v12 = vld [vmem:[#allocation25 + $0x190] sm:$0xff] }
 0x570   : > { %v4845_v13 = vpack.c.bf16 %v2018_v12, %v2016_v11 }
 0x571   : > { %4886 = vmatpush1.bf16.msra.mxu1 %v4885_v49  ;;  %4826 = vmatpush1.bf16.msra.mxu0 %v4825_v16  ;;  %v2011_v49 = vld [vmem:[#allocation25 + $0x158] sm:$0xff] }
 0x572   : > { %4888 = vmatprep.subr.bf16.mxu1 %v4887_v57  ;;  %4828 = vmatprep.subr.bf16.mxu0 %v4827_v26  ;;  %v4835_v50 = vpack.c.bf16 %v2011_v49, %v2009_v48  ;;  %v2082_v57 = vld [vmem:[#allocation25 + $0x390] sm:$0xff]  ;;  %v2091_v16 = vld [vmem:[#allocation25 + $0x3d8] sm:$0xff]  ;;  %v7180_v48 = vsub.s32 2, %v7147_v15 }
 0x573   : > { %v4909_v58 = vpack.c.bf16 %v2082_v57, %v2080_v56  ;;  %v4915_v18 = vpack.c.bf16 %v2091_v16, %v2089_v14  ;;  %v2022_v26 = vld [vmem:[#allocation25 + $0x1b0] sm:$0xff]  ;;  %v7191_v57 = vsub.s32 1, %v7147_v15 }
 0x574   : > { %v4849_v27 = vpack.c.bf16 %v2022_v26, %v2020_v25  ;;  %v1802_v49 = vld [vmem:[#allocation20] sm:$0xf] }
 0x575   : > { %4890 = vmatpush1.bf16.msra.mxu1 %v4889_v60  ;;  %4830 = vmatpush1.bf16.msra.mxu0 %v4829_v29  ;;  %v2015_v60 = vld [vmem:[#allocation25 + $0x178] sm:$0xff]  ;;  %v1815_v51 = vrot.slane %v1802_v49, %v7180_v48  ;;  %v1811_v63 = vrot.slane %v1802_v49, %v7191_v57 }
 0x576   : > { %4892 = vmatprep.subr.bf16.mxu1 %v4891_v6  ;;  %4832 = vmatprep.subr.bf16.mxu0 %v4831_v38  ;;  %v4839_v61 = vpack.c.bf16 %v2015_v60, %v2013_v59  ;;  %v2086_v6 = vld [vmem:[#allocation25 + $0x3b0] sm:$0xff]  ;;  %v2095_v29 = vld [vmem:[#allocation25 + $0x3f8] sm:$0xff] }
 0x577   : > { %v4913_v7 = vpack.c.bf16 %v2086_v6, %v2084_v5  ;;  %v4919_v30 = vpack.c.bf16 %v2095_v29, %v2093_v28  ;;  %v2026_v38 = vld [vmem:[#allocation25 + $0x1d0] sm:$0xff] }
 0x578   : > { %v4853_v39 = vpack.c.bf16 %v2026_v38, %v2024_v37 }
 0x579   : > { %4894 = vmatpush1.bf16.msra.mxu1 %v4893_v9  ;;  %4834 = vmatpush1.bf16.msra.mxu0 %v4833_v41  ;;  %v2019_v9 = vld [vmem:[#allocation25 + $0x198] sm:$0xff] }
 0x57a   : > { %4896 = vmatprep.subr.bf16.mxu1 %v4895_v20  ;;  %4836 = vmatprep.subr.bf16.mxu0 %v4835_v50  ;;  %v4843_v10 = vpack.c.bf16 %v2019_v9, %v2017_v8  ;;  %v2090_v20 = vld [vmem:[#allocation25 + $0x3d0] sm:$0xff]  ;;  %v2031_v41 = vld [vmem:[#allocation25 + $0x1f8] sm:$0xff]  ;;  %v7183_v50 = vsub.s32 3, %v7147_v15 }
 0x57b   : > { %v4917_v21 = vpack.c.bf16 %v2090_v20, %v2088_v19  ;;  %v4855_v42 = vpack.c.bf16 %v2031_v41, %v2029_v40 }
 0x57d   : > { %4898 = vmatpush1.bf16.msra.mxu1 %v4897_v23  ;;  %4838 = vmatpush1.bf16.msra.mxu0 %v4837_v4  ;;  %v2023_v23 = vld [vmem:[#allocation25 + $0x1b8] sm:$0xff]  ;;  %v1819_v4 = vrot.slane %v1802_v49, %v7183_v50 }
 0x57e   : > { %4900 = vmatprep.subr.bf16.mxu1 %v4899_v32  ;;  %4840 = vmatprep.subr.bf16.mxu0 %v4839_v61  ;;  %v4847_v24 = vpack.c.bf16 %v2023_v23, %v2021_v22  ;;  %v2094_v32 = vld [vmem:[#allocation25 + $0x3f0] sm:$0xff] }
 0x57f   : > { %v4921_v33 = vpack.c.bf16 %v2094_v32, %v2092_v31 }
 0x581   : > { %4902 = vmatpush1.bf16.msra.mxu1 %v4901_v35  ;;  %4842 = vmatpush1.bf16.msra.mxu0 %v4841_v0  ;;  %v2027_v35 = vld [vmem:[#allocation25 + $0x1d8] sm:$0xff] }
 0x582   : > { %4904 = vmatprep.subr.bf16.mxu1 %v4903_v44  ;;  %4844 = vmatprep.subr.bf16.mxu0 %v4843_v10  ;;  %v4851_v36 = vpack.c.bf16 %v2027_v35, %v2025_v34  ;;  %v2030_v44 = vld [vmem:[#allocation25 + $0x1f0] sm:$0xff] }
 0x583   : > { %v4857_v45 = vpack.c.bf16 %v2030_v44, %v2028_v43 }
 0x585   : > { %4906 = vmatpush1.bf16.msra.mxu1 %v4905_v47  ;;  %4846 = vmatpush1.bf16.msra.mxu0 %v4845_v13 }
 0x586   : > { %4908 = vmatprep.subr.bf16.mxu1 %v4907_v55  ;;  %4848 = vmatprep.subr.bf16.mxu0 %v4847_v24  ;;  %v7188_v55 = vsub.s32 0, %v7147_v15 }
 0x588   : > { %v1807_v61 = vrot.slane %v1802_v49, %v7188_v55 }
 0x589   : > { %4910 = vmatpush1.bf16.msra.mxu1 %v4909_v58  ;;  %4850 = vmatpush1.bf16.msra.mxu0 %v4849_v27 }
 0x58a   : > { %4912 = vmatprep.subr.bf16.mxu1 %v4911_v3  ;;  %4852 = vmatprep.subr.bf16.mxu0 %v4851_v36 }
 0x58d   : > { %4914 = vmatpush1.bf16.msra.mxu1 %v4913_v7  ;;  %4854 = vmatpush1.bf16.msra.mxu0 %v4853_v39 }
 0x58e   : > { %4916 = vmatprep.subr.bf16.mxu1 %v4915_v18  ;;  %4856 = vmatprep.subr.bf16.mxu0 %v4855_v42 }
 0x591   : > { %4918 = vmatpush1.bf16.msra.mxu1 %v4917_v21  ;;  %4858 = vmatpush1.bf16.msra.mxu0 %v4857_v45 }
 0x592   : > { %4920 = vmatprep.subr.bf16.mxu1 %v4919_v30 }
 0x595   : > { %4922 = vmatpush1.bf16.msra.mxu1 %v4921_v33 }
 0x61b   : > { %v1797_v46 = vpop.f32.mrb[2].mxu0 }
 0x61c   : > { %v1799_v47 = vpop.f32.mrb[3].mxu0 }
 0x623   : > { %v1652_v52 = vpop.f32.mrb[6].mxu1 }
 0x624   : > { %v1798_v53 = vadd.f32 %v1797_v46, %v1652_v52  ;;  %v1654_v54 = vpop.f32.mrb[7].mxu1 }
 0x625   : > { %v1800_v56 = vadd.f32 %v1799_v47, %v1654_v54 }
 0x626   : > { %v1826_v58 = vadd.f32 %v1815_v51, %v1798_v53 }
 0x627   : > { %v1827_v59 = vadd.f32 %v1819_v4, %v1800_v56 }
 0x628   : > { %v1832_v60 = vmul.f32 %v7151_v17, %v1826_v58 }
 0x629   : > { %v1833_v62 = vmul.f32 %v7151_v17, %v1827_v59 }
 0x62a   : > { %v1846_v0 = vrot.slane %v1832_v60, 4 }
 0x62b   : > { %v1852_v1 = vrot.slane %v1833_v62, 4  ;;  %v1726_v2 = vpop.f32.mrb[4].mxu1 }
 0x62c   : > { %v1847_v3 = vadd.f32 %v1846_v0, %v1832_v60  ;;  %v1824_v5 = vadd.f32 %v1807_v61, %v1726_v2  ;;  %v1728_v6 = vpop.f32.mrb[5].mxu1 }
 0x62d   : > { %v1853_v7 = vadd.f32 %v1852_v1, %v1833_v62  ;;  %v1825_v8 = vadd.f32 %v1811_v63, %v1728_v6 }
 0x62e   : > { %v1848_v15 = vrot.slane %v1847_v3, 2  ;;  %v1830_v9 = vmul.f32 %v7151_v17, %v1824_v5 }
 0x62f   : > { %v1854_v10 = vrot.slane %v1853_v7, 2  ;;  %v1831_v11 = vmul.f32 %v7151_v17, %v1825_v8 }
 0x630   : > { %v1849_v12 = vadd.f32 %v1848_v15, %v1847_v3  ;;  %v1834_v13 = vrot.slane %v1830_v9, 4 }
 0x631   : > { %v1855_v14 = vadd.f32 %v1854_v10, %v1853_v7  ;;  %v1840_v16 = vrot.slane %v1831_v11, 4 }
 0x632   : > { %v1850_v18 = vrot.slane %v1849_v12, 1  ;;  %v1835_v19 = vadd.f32 %v1834_v13, %v1830_v9 }
 0x633   : > { %v1856_v20 = vrot.slane %v1855_v14, 1  ;;  %v1841_v21 = vadd.f32 %v1840_v16, %v1831_v11 }
 0x634   : > { %v1851_v22 = vadd.f32 %v1850_v18, %v1849_v12  ;;  %v1836_v23 = vrot.slane %v1835_v19, 2 }
 0x635   : > { %v1857_v24 = vadd.f32 %v1856_v20, %v1855_v14  ;;  %v1842_v25 = vrot.slane %v1841_v21, 2 }
 0x636   : > { %v1860_v26 = vmul.f32 0.5, %v1851_v22  ;;  %v1837_v27 = vadd.f32 %v1836_v23, %v1835_v19  ;;  %v1829_v22 = vld [vmem:[#allocation23] sm:$0xf] }
 0x637   : > { %v1861_v28 = vmul.f32 0.5, %v1857_v24  ;;  %v1843_v29 = vadd.f32 %v1842_v25, %v1841_v21  ;;  %v1828_v21 = vld [vmem:[#allocation22] sm:$0xf] }
 0x638   : > { %v1864_v30 = vsub.f32 %v1826_v58, %v1860_v26  ;;  %v1838_v31 = vrot.slane %v1837_v27, 1  ;;  %v1926_v23 = vrot.slane %v1828_v21, %v7180_v48  ;;  %v1930_v25 = vrot.slane %v1828_v21, %v7183_v50 }
 0x639   : > { %v1865_v32 = vsub.f32 %v1827_v59, %v1861_v28  ;;  %v1844_v33 = vrot.slane %v1843_v29, 1  ;;  %v1951_v28 = vrot.slane %v1829_v22, %v7180_v48  ;;  %v1947_v48 = vrot.slane %v1829_v22, %v7191_v57 }
 0x63a   : > { %v1868_v34 = vmul.f32 %v7151_v17, %v1864_v30  ;;  %v1839_v35 = vadd.f32 %v1838_v31, %v1837_v27  ;;  %v1955_v31 = vrot.slane %v1829_v22, %v7183_v50 }
 0x63b   : > { %v1869_v36 = vmul.f32 %v7151_v17, %v1865_v32  ;;  %v1845_v37 = vadd.f32 %v1844_v33, %v1843_v29 }
 0x63c   : > { %v1872_v38 = vmul.f32 %v1868_v34, %v1868_v34  ;;  %v1858_v39 = vmul.f32 0.5, %v1839_v35  ;;  %v1918_v35 = vrot.slane %v1828_v21, %v7188_v55 }
 0x63d   : > { %v1873_v40 = vmul.f32 %v1869_v36, %v1869_v36  ;;  %v1859_v41 = vmul.f32 0.5, %v1845_v37 }
 0x63e   : > { %v1886_v42 = vrot.slane %v1872_v38, 4  ;;  %v1862_v43 = vsub.f32 %v1824_v5, %v1858_v39  ;;  %v1922_v39 = vrot.slane %v1828_v21, %v7191_v57  ;;  %v2349_v21 = vld [vmem:[#allocation31 + $0xd8] sm:$0xff] }
 0x63f   : > { %v1892_v44 = vrot.slane %v1873_v40, 4  ;;  %v1863_v45 = vsub.f32 %v1825_v8, %v1859_v41 }
 0x640   : > { %v1887_v46 = vadd.f32 %v1886_v42, %v1872_v38  ;;  %v1866_v47 = vmul.f32 %v7151_v17, %v1862_v43  ;;  %v1943_v42 = vrot.slane %v1829_v22, %v7188_v55 }
 0x641   : > { %v1893_v49 = vadd.f32 %v1892_v44, %v1873_v40  ;;  %v1867_v51 = vmul.f32 %v7151_v17, %v1863_v45 }
 0x642   : > { %v1888_v52 = vrot.slane %v1887_v46, 2  ;;  %v1870_v4 = vmul.f32 %v1866_v47, %v1866_v47 }
 0x643   : > { %v1894_v53 = vrot.slane %v1893_v49, 2  ;;  %v1871_v54 = vmul.f32 %v1867_v51, %v1867_v51 }
 0x644   : > { %v1889_v56 = vadd.f32 %v1888_v52, %v1887_v46  ;;  %v1874_v58 = vrot.slane %v1870_v4, 4 }
 0x645   : > { %v1895_v59 = vadd.f32 %v1894_v53, %v1893_v49  ;;  %v1880_v60 = vrot.slane %v1871_v54, 4  ;;  %v2339_v53 = vld [vmem:[#allocation31 + $0x88] sm:$0xff] }
 0x646   : > { %v1890_v61 = vrot.slane %v1889_v56, 1  ;;  %v1875_v62 = vadd.f32 %v1874_v58, %v1870_v4  ;;  %v2338_v4 = vld [vmem:[#allocation31 + $0x80] sm:$0xff]  ;;  %v2340_v58 = vld [vmem:[#allocation31 + $0x90] sm:$0xff] }
 0x647   : > { %v1896_v63 = vrot.slane %v1895_v59, 1  ;;  %v1881_v0 = vadd.f32 %v1880_v60, %v1871_v54  ;;  %v2322_v54 = vld [vmem:[#allocation31] sm:$0xff] }
 0x648   : > { %v1891_v1 = vadd.f32 %v1890_v61, %v1889_v56  ;;  %v1876_v2 = vrot.slane %v1875_v62, 2  ;;  %v2323_v56 = vld [vmem:[#allocation31 + $0x8] sm:$0xff]  ;;  %v2324_v61 = vld [vmem:[#allocation31 + $0x10] sm:$0xff] }
 0x649   : > { %v1897_v3 = vadd.f32 %v1896_v63, %v1895_v59  ;;  %v1882_v5 = vrot.slane %v1881_v0, 2  ;;  %v2341_v59 = vld [vmem:[#allocation31 + $0x98] sm:$0xff] }
 0x64a   : > { %v1900_v6 = vmul.f32 0.5, %v1891_v1  ;;  %v1877_v7 = vadd.f32 %v1876_v2, %v1875_v62  ;;  %v4927_v60 = vpack.c.bf16 %v2341_v59, %v2340_v58  ;;  %v2325_v62 = vld [vmem:[#allocation31 + $0x18] sm:$0xff]  ;;  %v2343_v1 = vld [vmem:[#allocation31 + $0xa8] sm:$0xff] }
 0x64b   : > { %v1901_v8 = vmul.f32 0.5, %v1897_v3  ;;  %v1883_v15 = vadd.f32 %v1882_v5, %v1881_v0  ;;  %v4929_v63 = vpack.c.bf16 %v2325_v62, %v2324_v61  ;;  %v2342_v0 = vld [vmem:[#allocation31 + $0xa0] sm:$0xff]  ;;  %v2327_v5 = vld [vmem:[#allocation31 + $0x28] sm:$0xff] }
 0x64c   : > { %v1904_v9 = vadd.f32 1e-05, %v1900_v6  ;;  %v1878_v10 = vrot.slane %v1877_v7, 1  ;;  %v4931_v2 = vpack.c.bf16 %v2343_v1, %v2342_v0  ;;  %v2326_v3 = vld [vmem:[#allocation31 + $0x20] sm:$0xff] }
 0x64d   : > { %v1905_v11 = vadd.f32 1e-05, %v1901_v8  ;;  %v1884_v12 = vrot.slane %v1883_v15, 1  ;;  %v4933_v6 = vpack.c.bf16 %v2327_v5, %v2326_v3  ;;  %v2345_v8 = vld [vmem:[#allocation31 + $0xb8] sm:$0xff] }
 0x64e   : > { %5250 = vrsqrt.f32 %v1904_v9  ;;  %v1879_v13 = vadd.f32 %v1878_v10, %v1877_v7  ;;  %v2344_v7 = vld [vmem:[#allocation31 + $0xb0] sm:$0xff]  ;;  %v2329_v10 = vld [vmem:[#allocation31 + $0x38] sm:$0xff] }
 0x64f   : > { %5252 = vrsqrt.f32 %v1905_v11  ;;  %v1885_v14 = vadd.f32 %v1884_v12, %v1883_v15  ;;  %v4935_v15 = vpack.c.bf16 %v2345_v8, %v2344_v7  ;;  %v2328_v9 = vld [vmem:[#allocation31 + $0x30] sm:$0xff]  ;;  %v2346_v12 = vld [vmem:[#allocation31 + $0xc0] sm:$0xff] }
 0x650   : > { %v1898_v16 = vmul.f32 0.5, %v1879_v13  ;;  %v4937_v11 = vpack.c.bf16 %v2329_v10, %v2328_v9  ;;  %v2347_v13 = vld [vmem:[#allocation31 + $0xc8] sm:$0xff] }
 0x651   : > { %v1899_v18 = vmul.f32 0.5, %v1885_v14  ;;  %v4939_v14 = vpack.c.bf16 %v2347_v13, %v2346_v12 }
 0x652   : > { %v1902_v19 = vadd.f32 1e-05, %v1898_v16  ;;  %v2330_v16 = vld [vmem:[#allocation31 + $0x40] sm:$0xff] }
 0x653   : > { %v1903_v20 = vadd.f32 1e-05, %v1899_v18  ;;  %v2331_v18 = vld [vmem:[#allocation31 + $0x48] sm:$0xff] }
 0x654   : > { %5254 = vrsqrt.f32 %v1902_v19  ;;  %v4941_v19 = vpack.c.bf16 %v2331_v18, %v2330_v16 }
 0x655   : > { %5256 = vrsqrt.f32 %v1903_v20  ;;  %v2348_v20 = vld [vmem:[#allocation31 + $0xd0] sm:$0xff] }
 0x656   : > { %v4943_v22 = vpack.c.bf16 %v2349_v21, %v2348_v20 }
 0x658   : > { %v5251_v24 = vpop.eup %5250 }
 0x659   : > { %v5253_v26 = vpop.eup %5252  ;;  %v1912_v27 = vmul.f32 %v5251_v24, %v1864_v30  ;;  %v2333_v24 = vld [vmem:[#allocation31 + $0x58] sm:$0xff] }
 0x65a   : > { %v1913_v29 = vmul.f32 %v5253_v26, %v1865_v32  ;;  %v2350_v26 = vld [vmem:[#allocation31 + $0xe0] sm:$0xff] }
 0x65b   : > { %v1937_v33 = vmul.f32 %v1926_v23, %v1912_v27  ;;  %v2332_v23 = vld [vmem:[#allocation31 + $0x50] sm:$0xff]  ;;  %v2351_v27 = vld [vmem:[#allocation31 + $0xe8] sm:$0xff] }
 0x65c   : > { %v1938_v34 = vmul.f32 %v1930_v25, %v1913_v29  ;;  %v4945_v25 = vpack.c.bf16 %v2333_v24, %v2332_v23  ;;  %v2334_v29 = vld [vmem:[#allocation31 + $0x60] sm:$0xff] }
 0x65d   : > { %v1962_v36 = vadd.f32 %v1951_v28, %v1937_v33  ;;  %v4947_v28 = vpack.c.bf16 %v2351_v27, %v2350_v26  ;;  %v2250_v26 = vld [vmem:[#allocation28] sm:$0x3]  ;;  %v2251_v27 = vld [vmem:[#allocation29] sm:$0x3] }
 0x65e   : > { %v5255_v37 = vpop.eup %5254  ;;  %v1963_v38 = vadd.f32 %v1955_v31, %v1938_v34  ;;  %v2335_v31 = vld [vmem:[#allocation31 + $0x68] sm:$0xff]  ;;  %v2352_v34 = vld [vmem:[#allocation31 + $0xf0] sm:$0xff] }
 0x65f   : > { %v5257_v40 = vpop.eup %5256  ;;  %v1910_v41 = vmul.f32 %v5255_v37, %v1862_v43  ;;  %v1966_v46 = vmax.f32 %v1962_v36, 0.0  ;;  %v4923_v43 = vpack.c.bf16 %v2339_v53, %v2338_v4  ;;  %v4949_v33 = vpack.c.bf16 %v2335_v31, %v2334_v29  ;;  %v2336_v36 = vld [vmem:[#allocation31 + $0x70] sm:$0xff] }
 0x660   : > { %v1911_v44 = vmul.f32 %v5257_v40, %v1863_v45  ;;  %v1967_v30 = vmax.f32 %v1963_v38, 0.0  ;;  %v4925_v45 = vpack.c.bf16 %v2323_v56, %v2322_v54  ;;  %v2337_v38 = vld [vmem:[#allocation31 + $0x78] sm:$0xff]  ;;  %v2302_v31 = vrot.slane %v2250_v26, %v7191_v57 }
 0x661   : > { %v1935_v32 = vmul.f32 %v1918_v35, %v1910_v41  ;;  %4924 = vmatprep.subr.bf16.mxu0 %v4923_v43  ;;  %v2353_v35 = vld [vmem:[#allocation31 + $0xf8] sm:$0xff] }
 0x662   : > { %2243 = vmatprep.mubr.f32.mxu1 %v1967_v30  ;;  %v1936_v50 = vmul.f32 %v1922_v39, %v1911_v44  ;;  %v4951_v37 = vpack.c.bf16 %v2353_v35, %v2352_v34  ;;  %v4953_v39 = vpack.c.bf16 %v2337_v38, %v2336_v36  ;;  %v2096_v41 = vld [vmem:[#allocation26] sm:$0x3]  ;;  %v2311_v35 = vrot.slane %v2251_v27, %v7188_v55 }
 0x663   : > { %2244 = vmatmul.mubr.f32.vlgmr.msra.gmra.mrb[8].mxu1 %v1966_v46  ;;  %v1960_v47 = vadd.f32 %v1943_v42, %v1935_v32  ;;  %v2101_v44 = vrot.slane %v2096_v41, %v7188_v55  ;;  %v2105_v30 = vrot.slane %v2096_v41, %v7191_v57 }
 0x664   : > { %v1961_v49 = vadd.f32 %v1947_v48, %v1936_v50 }
 0x665   : > { %v1964_v52 = vmax.f32 %v1960_v47, 0.0 }
 0x666   : > { %v1965_v51 = vmax.f32 %v1961_v49, 0.0 }
 0x668   : > { %2172 = vmatprep.mubr.f32.mxu0 %v1965_v51 }
 0x669   : > { %2173 = vmatmul.mubr.f32.vlgmr.msra.gmra.mrb[4].mxu0 %v1964_v52 }
 0x66a   : > { %4926 = vmatpush3.bf16.msra.mxu0 %v4925_v45 }
 0x66b   : > { %4928 = vmatprep.subr.bf16.mxu0 %v4927_v60 }
 0x66e   : > { %4930 = vmatpush3.bf16.msra.mxu0 %v4929_v63 }
 0x66f   : > { %4932 = vmatprep.subr.bf16.mxu0 %v4931_v2 }
 0x672   : > { %4934 = vmatpush3.bf16.msra.mxu0 %v4933_v6 }
 0x673   : > { %4936 = vmatprep.subr.bf16.mxu0 %v4935_v15 }
 0x676   : > { %4938 = vmatpush3.bf16.msra.mxu0 %v4937_v11 }
 0x677   : > { %4940 = vmatprep.subr.bf16.mxu0 %v4939_v14 }
 0x67a   : > { %4942 = vmatpush3.bf16.msra.mxu0 %v4941_v19 }
 0x67b   : > { %4944 = vmatprep.subr.bf16.mxu0 %v4943_v22 }
 0x67e   : > { %4946 = vmatpush3.bf16.msra.mxu0 %v4945_v25 }
 0x67f   : > { %4948 = vmatprep.subr.bf16.mxu0 %v4947_v28  ;;  %v2298_v28 = vrot.slane %v2250_v26, %v7188_v55 }
 0x682   : > { %4950 = vmatpush3.bf16.msra.mxu0 %v4949_v33 }
 0x683   : > { %4952 = vmatprep.subr.bf16.mxu0 %v4951_v37  ;;  %v2315_v37 = vrot.slane %v2251_v27, %v7191_v57 }
 0x686   : > { %4954 = vmatpush3.bf16.msra.mxu0 %v4953_v39 }
 0x736   : > { %v2245_v40 = vpop.f32.mrb[8].mxu1 }
 0x737   : > { %v2247_v42 = vpop.f32.mrb[9].mxu1 }
 0x73c   : > { %v2174_v48 = vpop.f32.mrb[4].mxu0 }
 0x73d   : > { %v2175_v32 = vadd.f32 %v2174_v48, %v2101_v44  ;;  %v2176_v46 = vpop.f32.mrb[5].mxu0  ;;  %v4483_v48 = vld [vmem:[#allocation32] ss:$0 sm:$0xff] }
 0x73e   : > { %v2177_v50 = vadd.f32 %v2176_v46, %v2105_v30 }
 0x73f   : > { %v2246_v47 = vadd.f32 %v2245_v40, %v2175_v32 }
 0x740   : > { %v2248_v49 = vadd.f32 %v2247_v42, %v2177_v50 }
 0x741   : > { %v2252_v51 = vmul.f32 %v7151_v17, %v2246_v47 }
 0x742   : > { %v2253_v52 = vmul.f32 %v7151_v17, %v2248_v49 }
 0x743   : > { %v2254_v4 = vrot.slane %v2252_v51, 4 }
 0x744   : > { %v2260_v53 = vrot.slane %v2253_v52, 4 }
 0x745   : > { %v2255_v43 = vadd.f32 %v2254_v4, %v2252_v51 }
 0x746   : > { %v2261_v54 = vadd.f32 %v2260_v53, %v2253_v52 }
 0x747   : > { %v2256_v56 = vrot.slane %v2255_v43, 2 }
 0x748   : > { %v2262_v45 = vrot.slane %v2261_v54, 2 }
 0x749   : > { %v2257_v58 = vadd.f32 %v2256_v56, %v2255_v43 }
 0x74a   : > { %v2263_v59 = vadd.f32 %v2262_v45, %v2261_v54 }
 0x74b   : > { %v2258_v60 = vrot.slane %v2257_v58, 1 }
 0x74c   : > { %v2264_v61 = vrot.slane %v2263_v59, 1 }
 0x74d   : > { %v2259_v62 = vadd.f32 %v2258_v60, %v2257_v58 }
 0x74e   : > { %v2265_v63 = vadd.f32 %v2264_v61, %v2263_v59 }
 0x74f   : > { %v2266_v0 = vmul.f32 0.5, %v2259_v62 }
 0x750   : > { %v2267_v1 = vmul.f32 0.5, %v2265_v63 }
 0x751   : > { %v2268_v2 = vsub.f32 %v2246_v47, %v2266_v0 }
 0x752   : > { %v2269_v3 = vsub.f32 %v2248_v49, %v2267_v1 }
 0x753   : > { %v2270_v5 = vmul.f32 %v7151_v17, %v2268_v2 }
 0x754   : > { %v2271_v6 = vmul.f32 %v7151_v17, %v2269_v3 }
 0x755   : > { %v2272_v7 = vmul.f32 %v2270_v5, %v2270_v5  ;;  %v4485_v5 = vld [vmem:[#allocation35] ss:$0 sm:$0xff] }
 0x756   : > { %v2273_v8 = vmul.f32 %v2271_v6, %v2271_v6 }
 0x757   : > { %v2274_v15 = vrot.slane %v2272_v7, 4 }
 0x758   : > { %v2280_v9 = vrot.slane %v2273_v8, 4 }
 0x759   : > { %v2275_v10 = vadd.f32 %v2274_v15, %v2272_v7 }
 0x75a   : > { %v2281_v11 = vadd.f32 %v2280_v9, %v2273_v8 }
 0x75b   : > { %v2276_v12 = vrot.slane %v2275_v10, 2 }
 0x75c   : > { %v2282_v13 = vrot.slane %v2281_v11, 2 }
 0x75d   : > { %v2277_v14 = vadd.f32 %v2276_v12, %v2275_v10 }
 0x75e   : > { %v2283_v16 = vadd.f32 %v2282_v13, %v2281_v11 }
 0x75f   : > { %v2278_v18 = vrot.slane %v2277_v14, 1 }
 0x760   : > { %v2284_v19 = vrot.slane %v2283_v16, 1 }
 0x761   : > { %v2279_v20 = vadd.f32 %v2278_v18, %v2277_v14 }
 0x762   : > { %v2285_v21 = vadd.f32 %v2284_v19, %v2283_v16 }
 0x763   : > { %v2286_v22 = vmul.f32 0.5, %v2279_v20 }
 0x764   : > { %v2287_v23 = vmul.f32 0.5, %v2285_v21 }
 0x765   : > { %v2288_v24 = vadd.f32 1e-05, %v2286_v22 }
 0x766   : > { %v2289_v25 = vadd.f32 1e-05, %v2287_v23 }
 0x767   : > { %5258 = vrsqrt.f32 %v2288_v24 }
 0x768   : > { %5260 = vrsqrt.f32 %v2289_v25 }
 0x771   : > { %v5259_v29 = vpop.eup %5258 }
 0x772   : > { %v5261_v33 = vpop.eup %5260  ;;  %v2292_v34 = vmul.f32 %v5259_v29, %v2268_v2  ;;  %v4484_v2 = vld [vmem:[#allocation34] ss:$0 sm:$0xff] }
 0x773   : > { %v2293_v36 = vmul.f32 %v5261_v33, %v2269_v3 }
 0x774   : > { %v2305_v38 = vmul.f32 %v2298_v28, %v2292_v34 }
 0x775   : > { %v2306_v39 = vmul.f32 %v2302_v31, %v2293_v36 }
 0x776   : > { %v2318_v40 = vadd.f32 %v2311_v35, %v2305_v38 }
 0x777   : > { %v2319_v41 = vadd.f32 %v2315_v37, %v2306_v39 }
 0x778   : > { %v2320_v44 = vmax.f32 %v2318_v40, 0.0 }
 0x779   : > { %v2321_v42 = vmax.f32 %v2319_v41, 0.0 }
 0x77b   : > { %2425 = vmatprep.mubr.f32.mxu0 %v2321_v42 }
 0x77c   : > { %2426 = vmatmul.mubr.f32.vlgmr.msra.gmra.mrb[6].mxu0 %v2320_v44 }
 0x84f   : > { %v4712_v30 = vpop.f32.mrb[6].mxu0 }
 0x850   : > { %v4713_v32 = vpop.f32.mrb[7].mxu0 }
 0x851   : > { %v4714_v46 = vadd.f32 %v4713_v32, %v4712_v30 }
 0x853   : > { %v2428_v50 = vadd.f32 %v4714_v46, %v4483_v48 }
 0x855   : > { %v2433_v47 = vmul.f32 %v7151_v17, %v2428_v50 }
 0x857   : > { %v2434_v49 = vrot.slane %v2433_v47, 4 }
 0x859   : > { %v2435_v55 = vadd.f32 %v2434_v49, %v2433_v47 }
 0x85b   : > { %v2436_v51 = vrot.slane %v2435_v55, 2 }
 0x85d   : > { %v2437_v52 = vadd.f32 %v2436_v51, %v2435_v55 }
 0x85f   : > { %v2438_v57 = vrot.slane %v2437_v52, 1 }
 0x861   : > { %v2439_v4 = vadd.f32 %v2438_v57, %v2437_v52 }
 0x863   : > { %v2440_v53 = vmul.f32 0.5, %v2439_v4 }
 0x865   : > { %v2441_v43 = vsub.f32 %v2428_v50, %v2440_v53 }
 0x867   : > { %v2442_v54 = vmul.f32 %v7151_v17, %v2441_v43 }
 0x869   : > { %v2443_v56 = vmul.f32 %v2442_v54, %v2442_v54 }
 0x86b   : > { %v2444_v45 = vrot.slane %v2443_v56, 4 }
 0x86d   : > { %v2445_v58 = vadd.f32 %v2444_v45, %v2443_v56 }
 0x86f   : > { %v2446_v59 = vrot.slane %v2445_v58, 2 }
 0x871   : > { %v2447_v60 = vadd.f32 %v2446_v59, %v2445_v58 }
 0x873   : > { %v2448_v61 = vrot.slane %v2447_v60, 1 }
 0x875   : > { %v2449_v62 = vadd.f32 %v2448_v61, %v2447_v60 }
 0x877   : > { %v2450_v63 = vmul.f32 0.5, %v2449_v62 }
 0x879   : > { %v2451_v0 = vadd.f32 1e-05, %v2450_v63 }
 0x87b   : > { %5262 = vrsqrt.f32 %v2451_v0 }
 0x885   : > { %v5263_v1 = vpop.eup %5262 }
 0x886   : > { %v2453_v3 = vmul.f32 %v5263_v1, %v2441_v43 }
 0x888   : > { %v2460_v6 = vmul.f32 %v4484_v2, %v2453_v3 }
 0x88a   : > { %v2467_v7 = vadd.f32 %v4485_v5, %v2460_v6 }
 0x88c   : > { %v2468_v8 = vmax.f32 %v2467_v7, 0.0 }
 0x88e   : > { %v2469_v15 = vpack.c.bf16 %v2468_v8, %v2468_v8 }
 0x890   : > { %2470 = vst [vmem:[#allocation2] sm:$0xf] %v2469_v15 }
 0x891 PF: > { %v5264_v17 = vld [vmem:[%s7112_s4 + $0x4] ss:$88 sps:$4 sm:$0xff]   ;;  %v5266_v9 = vld [vmem:[%s7112_s4] ss:$88 sps:$4 sm:$0xff]   ;;  %v6325_v10 = vmov 0  }
 0x892   : > { %3676 = vmatprep.mubr.bf16.mxu0 %v6325_v10  ;;  %3717 = vmatprep.mubr.bf16.mxu1 %v6325_v10  ;;  %v5267_v11 = vld [vmem:[%s7112_s4 + $0xb4] ss:$88 sps:$4 sm:$0xff]   ;;  %v5269_v12 = vld [vmem:[%s7112_s4 + $0xb0] ss:$88 sps:$4 sm:$0xff]   ;;  %v5270_v13 = vld [vmem:[%s7112_s4 + $0x164] ss:$88 sps:$4 sm:$0xff]  }
 0x893   : > { %3644 = vmatprep.subr.bf16.mxu0 %v5264_v17  ;;  %v5272_v14 = vld [vmem:[%s7112_s4 + $0x160] ss:$88 sps:$4 sm:$0xff]   ;;  %v5273_v16 = vld [vmem:[%s7112_s4 + $0x214] ss:$88 sps:$4 sm:$0xff]   ;;  %v5275_v18 = vld [vmem:[%s7112_s4 + $0x210] ss:$88 sps:$4 sm:$0xff]  }
 0x894   : > { %3645 = vmatpush1.bf16.msra.mxu0 %v5266_v9  ;;  %v5288_v19 = vld [vmem:[%s7112_s4 + $0xc] ss:$88 sps:$4 sm:$0xff]   ;;  %v5290_v20 = vld [vmem:[%s7112_s4 + $0x8] ss:$88 sps:$4 sm:$0xff]   ;;  %v5294_v22 = vld [vmem:[%s7112_s4 + $0xbc] ss:$88 sps:$4 sm:$0xff]  }
 0x895   : > { %3646 = vmatprep.subr.bf16.mxu0 %v5267_v11  ;;  %v5276_v21 = vld [vmem:[%s7112_s4 + $0x2c4] ss:$88 sps:$4 sm:$0xff]   ;;  %3685 = vmatprep.subr.bf16.mxu1 %v5288_v19  ;;  %v5296_v23 = vld [vmem:[%s7112_s4 + $0xb8] ss:$88 sps:$4 sm:$0xff]   ;;  %v5279_v25 = vld [vmem:[%s7112_s4 + $0x374] ss:$88 sps:$4 sm:$0xff]  }
 0x896   : > { %3686 = vmatpush1.bf16.msra.mxu1 %v5290_v20  ;;  %v5278_v24 = vld [vmem:[%s7112_s4 + $0x2c0] ss:$88 sps:$4 sm:$0xff]   ;;  %v5300_v26 = vld [vmem:[%s7112_s4 + $0x16c] ss:$88 sps:$4 sm:$0xff]   ;;  %v5281_v27 = vld [vmem:[%s7112_s4 + $0x370] ss:$88 sps:$4 sm:$0xff]  }
 0x897   : > { %3687 = vmatprep.subr.bf16.mxu1 %v5294_v22  ;;  %v5302_v28 = vld [vmem:[%s7112_s4 + $0x168] ss:$88 sps:$4 sm:$0xff]   ;;  %v5306_v29 = vld [vmem:[%s7112_s4 + $0x21c] ss:$88 sps:$4 sm:$0xff]   ;;  %v5308_v34 = vld [vmem:[%s7112_s4 + $0x218] ss:$88 sps:$4 sm:$0xff]  }
 0x898   : > { %3647 = vmatpush1.bf16.msra.mxu0 %v5269_v12  ;;  %v5282_v31 = vld [vmem:[%s7112_s4 + $0x424] ss:$88 sps:$4 sm:$0xff]   ;;  %v5284_v33 = vld [vmem:[%s7112_s4 + $0x420] ss:$88 sps:$4 sm:$0xff]   ;;  %v5285_v36 = vld [vmem:[%s7112_s4 + $0x4d4] ss:$88 sps:$4 sm:$0xff]  }
 0x899   : > { %3648 = vmatprep.subr.bf16.mxu0 %v5270_v13  ;;  %v5312_v35 = vld [vmem:[%s7112_s4 + $0x2cc] ss:$88 sps:$4 sm:$0xff]   ;;  %v5287_v37 = vld [vmem:[%s7112_s4 + $0x4d0] ss:$88 sps:$4 sm:$0xff]   ;;  %v5318_v39 = vld [vmem:[%s7112_s4 + $0x37c] ss:$88 sps:$4 sm:$0xff]  }
 0x89a   : > { %3688 = vmatpush1.bf16.msra.mxu1 %v5296_v23  ;;  %v5314_v38 = vld [vmem:[%s7112_s4 + $0x2c8] ss:$88 sps:$4 sm:$0xff]   ;;  %v5293_v40 = vld [vmem:[%s7112_s4 + $0x14] ss:$88 sps:$4 sm:$0xff]   ;;  %v5320_v44 = vld [vmem:[%s7112_s4 + $0x378] ss:$88 sps:$4 sm:$0xff]  }
 0x89b   : > { %3689 = vmatprep.subr.bf16.mxu1 %v5300_v26  ;;  %v7253_v41 = vld [vmem:[#allocation2] sm:$0xf]  ;;  %v5291_v42 = vld [vmem:[%s7112_s4 + $0x10] ss:$88 sps:$4 sm:$0xff]   ;;  %v5324_v30 = vld [vmem:[%s7112_s4 + $0x42c] ss:$88 sps:$4 sm:$0xff]  }
 0x89c   : > { %3649 = vmatpush1.bf16.msra.mxu0 %v5272_v14  ;;  %v5299_v48 = vld [vmem:[%s7112_s4 + $0xc4] ss:$88 sps:$4 sm:$0xff]   ;;  %v5297_v32 = vld [vmem:[%s7112_s4 + $0xc0] ss:$88 sps:$4 sm:$0xff]   ;;  %v5305_v47 = vld [vmem:[%s7112_s4 + $0x174] ss:$88 sps:$4 sm:$0xff]  }
 0x89d   : > { %3650 = vmatprep.subr.bf16.mxu0 %v5273_v16  ;;  %v5326_v46 = vld [vmem:[%s7112_s4 + $0x428] ss:$88 sps:$4 sm:$0xff]   ;;  %v5330_v50 = vld [vmem:[%s7112_s4 + $0x4dc] ss:$88 sps:$4 sm:$0xff]   ;;  %v5332_v55 = vld [vmem:[%s7112_s4 + $0x4d8] ss:$88 sps:$4 sm:$0xff]  }
 0x89e   : > { %3690 = vmatpush1.bf16.msra.mxu1 %v5302_v28  ;;  %v5303_v49 = vld [vmem:[%s7112_s4 + $0x170] ss:$88 sps:$4 sm:$0xff]   ;;  %v5338_v51 = vld [vmem:[%s7112_s4 + $0x1c] ss:$88 sps:$4 sm:$0xff]   ;;  %v5309_v57 = vld [vmem:[%s7112_s4 + $0x220] ss:$88 sps:$4 sm:$0xff]  }
 0x89f   : > { %3691 = vmatprep.subr.bf16.mxu1 %v5306_v29  ;;  %v5311_v52 = vld [vmem:[%s7112_s4 + $0x224] ss:$88 sps:$4 sm:$0xff]   ;;  %v5336_v4 = vld [vmem:[%s7112_s4 + $0x18] ss:$88 sps:$4 sm:$0xff]   ;;  %v5317_v43 = vld [vmem:[%s7112_s4 + $0x2d4] ss:$88 sps:$4 sm:$0xff]  }
 0x8a0   : > { %3651 = vmatpush1.bf16.msra.mxu0 %v5275_v18  ;;  %v5344_v53 = vld [vmem:[%s7112_s4 + $0xcc] ss:$88 sps:$4 sm:$0xff]   ;;  %v5315_v54 = vld [vmem:[%s7112_s4 + $0x2d0] ss:$88 sps:$4 sm:$0xff]   ;;  %v5350_v45 = vld [vmem:[%s7112_s4 + $0x17c] ss:$88 sps:$4 sm:$0xff]  }
 0x8a1   : > { %3652 = vmatprep.subr.bf16.mxu0 %v5276_v21  ;;  %v5342_v56 = vld [vmem:[%s7112_s4 + $0xc8] ss:$88 sps:$4 sm:$0xff]   ;;  %v5323_v58 = vld [vmem:[%s7112_s4 + $0x384] ss:$88 sps:$4 sm:$0xff]   ;;  %v5348_v60 = vld [vmem:[%s7112_s4 + $0x178] ss:$88 sps:$4 sm:$0xff]  }
 0x8a2   : > { %3692 = vmatpush1.bf16.msra.mxu1 %v5308_v34  ;;  %v5321_v59 = vld [vmem:[%s7112_s4 + $0x380] ss:$88 sps:$4 sm:$0xff]   ;;  %v5356_v61 = vld [vmem:[%s7112_s4 + $0x22c] ss:$88 sps:$4 sm:$0xff]   ;;  %v5327_v63 = vld [vmem:[%s7112_s4 + $0x430] ss:$88 sps:$4 sm:$0xff]  }
 0x8a3   : > { %3693 = vmatprep.subr.bf16.mxu1 %v5312_v35  ;;  %v5329_v62 = vld [vmem:[%s7112_s4 + $0x434] ss:$88 sps:$4 sm:$0xff]   ;;  %v5354_v0 = vld [vmem:[%s7112_s4 + $0x228] ss:$88 sps:$4 sm:$0xff]   ;;  %v5335_v2 = vld [vmem:[%s7112_s4 + $0x4e4] ss:$88 sps:$4 sm:$0xff]  }
 0x8a4   : > { %3653 = vmatpush1.bf16.msra.mxu0 %v5278_v24  ;;  %v5362_v1 = vld [vmem:[%s7112_s4 + $0x2dc] ss:$88 sps:$4 sm:$0xff]   ;;  %v5333_v3 = vld [vmem:[%s7112_s4 + $0x4e0] ss:$88 sps:$4 sm:$0xff]   ;;  %v5368_v6 = vld [vmem:[%s7112_s4 + $0x38c] ss:$88 sps:$4 sm:$0xff]  }
 0x8a5   : > { %3654 = vmatprep.subr.bf16.mxu0 %v5279_v25  ;;  %v5360_v5 = vld [vmem:[%s7112_s4 + $0x2d8] ss:$88 sps:$4 sm:$0xff]   ;;  %v5341_v7 = vld [vmem:[%s7112_s4 + $0x24] ss:$88 sps:$4 sm:$0xff]   ;;  %v5366_v15 = vld [vmem:[%s7112_s4 + $0x388] ss:$88 sps:$4 sm:$0xff]  }
 0x8a6   : > { %3694 = vmatpush1.bf16.msra.mxu1 %v5314_v38  ;;  %v5339_v8 = vld [vmem:[%s7112_s4 + $0x20] ss:$88 sps:$4 sm:$0xff]   ;;  %v5374_v17 = vld [vmem:[%s7112_s4 + $0x43c] ss:$88 sps:$4 sm:$0xff]   ;;  %v5345_v11 = vld [vmem:[%s7112_s4 + $0xd0] ss:$88 sps:$4 sm:$0xff]  }
 0x8a7   : > { %3695 = vmatprep.subr.bf16.mxu1 %v5318_v39  ;;  %v5347_v9 = vld [vmem:[%s7112_s4 + $0xd4] ss:$88 sps:$4 sm:$0xff]   ;;  %v5372_v12 = vld [vmem:[%s7112_s4 + $0x438] ss:$88 sps:$4 sm:$0xff]   ;;  %v5353_v14 = vld [vmem:[%s7112_s4 + $0x184] ss:$88 sps:$4 sm:$0xff]  }
 0x8a8   : > { %3655 = vmatpush1.bf16.msra.mxu0 %v5281_v27  ;;  %v5380_v13 = vld [vmem:[%s7112_s4 + $0x4ec] ss:$88 sps:$4 sm:$0xff]   ;;  %v5351_v16 = vld [vmem:[%s7112_s4 + $0x180] ss:$88 sps:$4 sm:$0xff]   ;;  %v5357_v21 = vld [vmem:[%s7112_s4 + $0x230] ss:$88 sps:$4 sm:$0xff]  }
 0x8a9   : > { %3656 = vmatprep.subr.bf16.mxu0 %v5282_v31  ;;  %v5378_v18 = vld [vmem:[%s7112_s4 + $0x4e8] ss:$88 sps:$4 sm:$0xff]   ;;  %v5386_v19 = vld [vmem:[%s7112_s4 + $0x2c] ss:$88 sps:$4 sm:$0xff]   ;;  %v5392_v23 = vld [vmem:[%s7112_s4 + $0xdc] ss:$88 sps:$4 sm:$0xff]  }
 0x8aa   : > { %3696 = vmatpush1.bf16.msra.mxu1 %v5320_v44  ;;  %v5359_v20 = vld [vmem:[%s7112_s4 + $0x234] ss:$88 sps:$4 sm:$0xff]   ;;  %v5384_v22 = vld [vmem:[%s7112_s4 + $0x28] ss:$88 sps:$4 sm:$0xff]   ;;  %v5365_v24 = vld [vmem:[%s7112_s4 + $0x2e4] ss:$88 sps:$4 sm:$0xff]  }
 0x8ab   : > { %3697 = vmatprep.subr.bf16.mxu1 %v5324_v30  ;;  %v5363_v25 = vld [vmem:[%s7112_s4 + $0x2e0] ss:$88 sps:$4 sm:$0xff]   ;;  %v5398_v27 = vld [vmem:[%s7112_s4 + $0x18c] ss:$88 sps:$4 sm:$0xff]   ;;  %v5369_v29 = vld [vmem:[%s7112_s4 + $0x390] ss:$88 sps:$4 sm:$0xff]  }
 0x8ac   : > { %3657 = vmatpush1.bf16.msra.mxu0 %v5284_v33  ;;  %v5390_v26 = vld [vmem:[%s7112_s4 + $0xd8] ss:$88 sps:$4 sm:$0xff]   ;;  %v5371_v28 = vld [vmem:[%s7112_s4 + $0x394] ss:$88 sps:$4 sm:$0xff]   ;;  %v5396_v31 = vld [vmem:[%s7112_s4 + $0x188] ss:$88 sps:$4 sm:$0xff]  }
 0x8ad   : > { %3658 = vmatprep.subr.bf16.mxu0 %v5285_v36  ;;  %v5404_v33 = vld [vmem:[%s7112_s4 + $0x23c] ss:$88 sps:$4 sm:$0xff]   ;;  %v5375_v35 = vld [vmem:[%s7112_s4 + $0x440] ss:$88 sps:$4 sm:$0xff]   ;;  %v5381_v39 = vld [vmem:[%s7112_s4 + $0x4f0] ss:$88 sps:$4 sm:$0xff]  }
 0x8ae   : > { %3698 = vmatpush1.bf16.msra.mxu1 %v5326_v46  ;;  %v5377_v34 = vld [vmem:[%s7112_s4 + $0x444] ss:$88 sps:$4 sm:$0xff]   ;;  %v5402_v36 = vld [vmem:[%s7112_s4 + $0x238] ss:$88 sps:$4 sm:$0xff]   ;;  %v5383_v38 = vld [vmem:[%s7112_s4 + $0x4f4] ss:$88 sps:$4 sm:$0xff]  }
 0x8af   : > { %3699 = vmatprep.subr.bf16.mxu1 %v5330_v50  ;;  %v5389_v44 = vld [vmem:[%s7112_s4 + $0x34] ss:$88 sps:$4 sm:$0xff]   ;;  %v5387_v30 = vld [vmem:[%s7112_s4 + $0x30] ss:$88 sps:$4 sm:$0xff]   ;;  %v5395_v46 = vld [vmem:[%s7112_s4 + $0xe4] ss:$88 sps:$4 sm:$0xff]  }
 0x8b0   : > { %3659 = vmatpush1.bf16.msra.mxu0 %v5287_v37  ;;  %v5410_v37 = vld [vmem:[%s7112_s4 + $0x2ec] ss:$88 sps:$4 sm:$0xff]   ;;  %v5393_v50 = vld [vmem:[%s7112_s4 + $0xe0] ss:$88 sps:$4 sm:$0xff]  }
 0x8b1   : > { %3726 = vmatprep.subr.bf16.mxu0 %v5293_v40  ;;  %v5408_v40 = vld [vmem:[%s7112_s4 + $0x2e8] ss:$88 sps:$4 sm:$0xff]  }
 0x8b2   : > { %3700 = vmatpush1.bf16.msra.mxu1 %v5332_v55  ;;  %v5401_v55 = vld [vmem:[%s7112_s4 + $0x194] ss:$88 sps:$4 sm:$0xff]  }
 0x8b3   : > { %3677 = vmatmul.mubr.bf16.vlgmr.msra.gmra.mrb[0].mxu0 %v7253_v41  ;;  %3767 = vmatprep.subr.bf16.mxu1 %v5338_v51  ;;  %v5399_v51 = vld [vmem:[%s7112_s4 + $0x190] ss:$88 sps:$4 sm:$0xff]  }
 0x8b4   : > { %3727 = vmatpush1.bf16.msra.mxu0 %v5291_v42  ;;  %3758 = vmatprep.mubr.bf16.mxu0 %v6325_v10  ;;  %v5416_v42 = vld [vmem:[%s7112_s4 + $0x39c] ss:$88 sps:$4 sm:$0xff]  }
 0x8b5   : > { %3728 = vmatprep.subr.bf16.mxu0 %v5299_v48  ;;  %3718 = vmatmul.mubr.bf16.vlgmr.msra.gmra.mrb[0].mxu1 %v7253_v41  ;;  %v5414_v48 = vld [vmem:[%s7112_s4 + $0x398] ss:$88 sps:$4 sm:$0xff]  }
 0x8b6   : > { %3768 = vmatpush1.bf16.msra.mxu1 %v5336_v4  ;;  %3799 = vmatprep.mubr.bf16.mxu1 %v6325_v10  ;;  %v5407_v4 = vld [vmem:[%s7112_s4 + $0x244] ss:$88 sps:$4 sm:$0xff]  }
 0x8b7   : > { %3769 = vmatprep.subr.bf16.mxu1 %v5344_v53  ;;  %v5405_v53 = vld [vmem:[%s7112_s4 + $0x240] ss:$88 sps:$4 sm:$0xff]  }
 0x8b8   : > { %3729 = vmatpush1.bf16.msra.mxu0 %v5297_v32  ;;  %v5422_v32 = vld [vmem:[%s7112_s4 + $0x44c] ss:$88 sps:$4 sm:$0xff]  }
 0x8b9   : > { %3730 = vmatprep.subr.bf16.mxu0 %v5305_v47  ;;  %v5420_v47 = vld [vmem:[%s7112_s4 + $0x448] ss:$88 sps:$4 sm:$0xff]  }
 0x8ba   : > { %3770 = vmatpush1.bf16.msra.mxu1 %v5342_v56  ;;  %v5413_v56 = vld [vmem:[%s7112_s4 + $0x2f4] ss:$88 sps:$4 sm:$0xff]  }
 0x8bb   : > { %3771 = vmatprep.subr.bf16.mxu1 %v5350_v45  ;;  %v5411_v45 = vld [vmem:[%s7112_s4 + $0x2f0] ss:$88 sps:$4 sm:$0xff]  }
 0x8bc   : > { %3731 = vmatpush1.bf16.msra.mxu0 %v5303_v49  ;;  %v5428_v49 = vld [vmem:[%s7112_s4 + $0x4fc] ss:$88 sps:$4 sm:$0xff]  }
 0x8bd   : > { %3732 = vmatprep.subr.bf16.mxu0 %v5311_v52  ;;  %v5426_v52 = vld [vmem:[%s7112_s4 + $0x4f8] ss:$88 sps:$4 sm:$0xff]  }
 0x8be   : > { %3772 = vmatpush1.bf16.msra.mxu1 %v5348_v60  ;;  %v5419_v60 = vld [vmem:[%s7112_s4 + $0x3a4] ss:$88 sps:$4 sm:$0xff]  }
 0x8bf   : > { %3773 = vmatprep.subr.bf16.mxu1 %v5356_v61  ;;  %v5417_v61 = vld [vmem:[%s7112_s4 + $0x3a0] ss:$88 sps:$4 sm:$0xff]  }
 0x8c0   : > { %3733 = vmatpush1.bf16.msra.mxu0 %v5309_v57  ;;  %v5434_v57 = vld [vmem:[%s7112_s4 + $0x3c] ss:$88 sps:$4 sm:$0xff]  }
 0x8c1   : > { %3734 = vmatprep.subr.bf16.mxu0 %v5317_v43  ;;  %v5432_v43 = vld [vmem:[%s7112_s4 + $0x38] ss:$88 sps:$4 sm:$0xff]  }
 0x8c2   : > { %3774 = vmatpush1.bf16.msra.mxu1 %v5354_v0  ;;  %v5425_v0 = vld [vmem:[%s7112_s4 + $0x454] ss:$88 sps:$4 sm:$0xff]  }
 0x8c3   : > { %3775 = vmatprep.subr.bf16.mxu1 %v5362_v1  ;;  %v5450_v1 = vld [vmem:[%s7112_s4 + $0x248] ss:$88 sps:$4 sm:$0xff]  }
 0x8c4   : > { %3735 = vmatpush1.bf16.msra.mxu0 %v5315_v54  ;;  %v5440_v54 = vld [vmem:[%s7112_s4 + $0xec] ss:$88 sps:$4 sm:$0xff]  }
 0x8c5   : > { %3736 = vmatprep.subr.bf16.mxu0 %v5323_v58  ;;  %v5438_v58 = vld [vmem:[%s7112_s4 + $0xe8] ss:$88 sps:$4 sm:$0xff]  }
 0x8c6   : > { %3776 = vmatpush1.bf16.msra.mxu1 %v5360_v5  ;;  %v5431_v5 = vld [vmem:[%s7112_s4 + $0x504] ss:$88 sps:$4 sm:$0xff]  }
 0x8c7   : > { %3777 = vmatprep.subr.bf16.mxu1 %v5368_v6  ;;  %v5456_v6 = vld [vmem:[%s7112_s4 + $0x2f8] ss:$88 sps:$4 sm:$0xff]  }
 0x8c8   : > { %3737 = vmatpush1.bf16.msra.mxu0 %v5321_v59  ;;  %v5446_v59 = vld [vmem:[%s7112_s4 + $0x19c] ss:$88 sps:$4 sm:$0xff]  }
 0x8c9   : > { %3738 = vmatprep.subr.bf16.mxu0 %v5329_v62  ;;  %v5444_v62 = vld [vmem:[%s7112_s4 + $0x198] ss:$88 sps:$4 sm:$0xff]  }
 0x8ca   : > { %3778 = vmatpush1.bf16.msra.mxu1 %v5366_v15  ;;  %v5437_v15 = vld [vmem:[%s7112_s4 + $0x44] ss:$88 sps:$4 sm:$0xff]  }
 0x8cb   : > { %3779 = vmatprep.subr.bf16.mxu1 %v5374_v17  ;;  %v5462_v17 = vld [vmem:[%s7112_s4 + $0x3a8] ss:$88 sps:$4 sm:$0xff]  }
 0x8cc   : > { %3739 = vmatpush1.bf16.msra.mxu0 %v5327_v63  ;;  %v5452_v63 = vld [vmem:[%s7112_s4 + $0x24c] ss:$88 sps:$4 sm:$0xff]  }
 0x8cd   : > { %3740 = vmatprep.subr.bf16.mxu0 %v5335_v2  ;;  %v5423_v2 = vld [vmem:[%s7112_s4 + $0x450] ss:$88 sps:$4 sm:$0xff]  }
 0x8ce   : > { %3780 = vmatpush1.bf16.msra.mxu1 %v5372_v12  ;;  %v5443_v12 = vld [vmem:[%s7112_s4 + $0xf4] ss:$88 sps:$4 sm:$0xff]  }
 0x8cf   : > { %3781 = vmatprep.subr.bf16.mxu1 %v5380_v13  ;;  %v5468_v13 = vld [vmem:[%s7112_s4 + $0x458] ss:$88 sps:$4 sm:$0xff]  }
 0x8d0   : > { %3741 = vmatpush1.bf16.msra.mxu0 %v5333_v3  ;;  %v5458_v3 = vld [vmem:[%s7112_s4 + $0x2fc] ss:$88 sps:$4 sm:$0xff]  }
 0x8d1   : > { %3808 = vmatprep.subr.bf16.mxu0 %v5341_v7  ;;  %v5429_v7 = vld [vmem:[%s7112_s4 + $0x500] ss:$88 sps:$4 sm:$0xff]  }
 0x8d2   : > { %3782 = vmatpush1.bf16.msra.mxu1 %v5378_v18  ;;  %v5449_v18 = vld [vmem:[%s7112_s4 + $0x1a4] ss:$88 sps:$4 sm:$0xff]  }
 0x8d3   : > { %3759 = vmatmul.mubr.bf16.vlgmr.msra.gmra.mrb[4].mxu0 %v7253_v41  ;;  %3849 = vmatprep.subr.bf16.mxu1 %v5386_v19  ;;  %v5474_v19 = vld [vmem:[%s7112_s4 + $0x508] ss:$88 sps:$4 sm:$0xff]  }
 0x8d4   : > { %3809 = vmatpush1.bf16.msra.mxu0 %v5339_v8  ;;  %3840 = vmatprep.mubr.bf16.mxu0 %v6325_v10  ;;  %v5464_v8 = vld [vmem:[%s7112_s4 + $0x3ac] ss:$88 sps:$4 sm:$0xff]  }
 0x8d5   : > { %3810 = vmatprep.subr.bf16.mxu0 %v5347_v9  ;;  %3800 = vmatmul.mubr.bf16.vlgmr.msra.gmra.mrb[4].mxu1 %v7253_v41  ;;  %v5435_v9 = vld [vmem:[%s7112_s4 + $0x40] ss:$88 sps:$4 sm:$0xff]  }
 0x8d6   : > { %3850 = vmatpush1.bf16.msra.mxu1 %v5384_v22  ;;  %3881 = vmatprep.mubr.bf16.mxu1 %v6325_v10  ;;  %v5455_v22 = vld [vmem:[%s7112_s4 + $0x254] ss:$88 sps:$4 sm:$0xff]  }
 0x8d7   : > { %3851 = vmatprep.subr.bf16.mxu1 %v5392_v23  ;;  %v5480_v23 = vld [vmem:[%s7112_s4 + $0x48] ss:$88 sps:$4 sm:$0xff]  }
 0x8d8   : > { %3811 = vmatpush1.bf16.msra.mxu0 %v5345_v11  ;;  %v5470_v11 = vld [vmem:[%s7112_s4 + $0x45c] ss:$88 sps:$4 sm:$0xff]  }
 0x8d9   : > { %3812 = vmatprep.subr.bf16.mxu0 %v5353_v14  ;;  %v5441_v14 = vld [vmem:[%s7112_s4 + $0xf0] ss:$88 sps:$4 sm:$0xff]  }
 0x8da   : > { %3852 = vmatpush1.bf16.msra.mxu1 %v5390_v26  ;;  %v5461_v26 = vld [vmem:[%s7112_s4 + $0x304] ss:$88 sps:$4 sm:$0xff]  }
 0x8db   : > { %3853 = vmatprep.subr.bf16.mxu1 %v5398_v27  ;;  %v5486_v27 = vld [vmem:[%s7112_s4 + $0xf8] ss:$88 sps:$4 sm:$0xff]  }
 0x8dc   : > { %3813 = vmatpush1.bf16.msra.mxu0 %v5351_v16  ;;  %v5476_v16 = vld [vmem:[%s7112_s4 + $0x50c] ss:$88 sps:$4 sm:$0xff]  }
 0x8dd   : > { %3814 = vmatprep.subr.bf16.mxu0 %v5359_v20  ;;  %v5447_v20 = vld [vmem:[%s7112_s4 + $0x1a0] ss:$88 sps:$4 sm:$0xff]  }
 0x8de   : > { %3854 = vmatpush1.bf16.msra.mxu1 %v5396_v31  ;;  %v5467_v31 = vld [vmem:[%s7112_s4 + $0x3b4] ss:$88 sps:$4 sm:$0xff]  }
 0x8df   : > { %3855 = vmatprep.subr.bf16.mxu1 %v5404_v33  ;;  %v5492_v33 = vld [vmem:[%s7112_s4 + $0x1a8] ss:$88 sps:$4 sm:$0xff]  }
 0x8e0   : > { %3815 = vmatpush1.bf16.msra.mxu0 %v5357_v21  ;;  %v5482_v21 = vld [vmem:[%s7112_s4 + $0x4c] ss:$88 sps:$4 sm:$0xff]  }
 0x8e1   : > { %3816 = vmatprep.subr.bf16.mxu0 %v5365_v24  ;;  %v5453_v24 = vld [vmem:[%s7112_s4 + $0x250] ss:$88 sps:$4 sm:$0xff]  }
 0x8e2   : > { %3856 = vmatpush1.bf16.msra.mxu1 %v5402_v36  ;;  %v5473_v36 = vld [vmem:[%s7112_s4 + $0x464] ss:$88 sps:$4 sm:$0xff]  }
 0x8e3   : > { %3857 = vmatprep.subr.bf16.mxu1 %v5410_v37  ;;  %v5498_v37 = vld [vmem:[%s7112_s4 + $0x258] ss:$88 sps:$4 sm:$0xff]  }
 0x8e4   : > { %3817 = vmatpush1.bf16.msra.mxu0 %v5363_v25  ;;  %v5488_v25 = vld [vmem:[%s7112_s4 + $0xfc] ss:$88 sps:$4 sm:$0xff]  }
 0x8e5   : > { %3818 = vmatprep.subr.bf16.mxu0 %v5371_v28  ;;  %v5459_v28 = vld [vmem:[%s7112_s4 + $0x300] ss:$88 sps:$4 sm:$0xff]  }
 0x8e6   : > { %3858 = vmatpush1.bf16.msra.mxu1 %v5408_v40  ;;  %v5479_v40 = vld [vmem:[%s7112_s4 + $0x514] ss:$88 sps:$4 sm:$0xff]  }
 0x8e7   : > { %3859 = vmatprep.subr.bf16.mxu1 %v5416_v42  ;;  %v5504_v42 = vld [vmem:[%s7112_s4 + $0x308] ss:$88 sps:$4 sm:$0xff]  }
 0x8e8   : > { %3819 = vmatpush1.bf16.msra.mxu0 %v5369_v29  ;;  %v5494_v29 = vld [vmem:[%s7112_s4 + $0x1ac] ss:$88 sps:$4 sm:$0xff]  }
 0x8e9   : > { %3820 = vmatprep.subr.bf16.mxu0 %v5377_v34  ;;  %v5465_v34 = vld [vmem:[%s7112_s4 + $0x3b0] ss:$88 sps:$4 sm:$0xff]  }
 0x8ea   : > { %3860 = vmatpush1.bf16.msra.mxu1 %v5414_v48  ;;  %v5485_v48 = vld [vmem:[%s7112_s4 + $0x54] ss:$88 sps:$4 sm:$0xff]  }
 0x8eb   : > { %3861 = vmatprep.subr.bf16.mxu1 %v5422_v32  ;;  %v5510_v32 = vld [vmem:[%s7112_s4 + $0x3b8] ss:$88 sps:$4 sm:$0xff]  }
 0x8ec   : > { %3821 = vmatpush1.bf16.msra.mxu0 %v5375_v35  ;;  %v5500_v35 = vld [vmem:[%s7112_s4 + $0x25c] ss:$88 sps:$4 sm:$0xff]  }
 0x8ed   : > { %3822 = vmatprep.subr.bf16.mxu0 %v5383_v38  ;;  %v5471_v38 = vld [vmem:[%s7112_s4 + $0x460] ss:$88 sps:$4 sm:$0xff]  }
 0x8ee   : > { %3862 = vmatpush1.bf16.msra.mxu1 %v5420_v47  ;;  %v5491_v47 = vld [vmem:[%s7112_s4 + $0x104] ss:$88 sps:$4 sm:$0xff]  }
 0x8ef   : > { %3863 = vmatprep.subr.bf16.mxu1 %v5428_v49  ;;  %v5516_v49 = vld [vmem:[%s7112_s4 + $0x468] ss:$88 sps:$4 sm:$0xff]  }
 0x8f0   : > { %3823 = vmatpush1.bf16.msra.mxu0 %v5381_v39  ;;  %v5506_v39 = vld [vmem:[%s7112_s4 + $0x30c] ss:$88 sps:$4 sm:$0xff]  }
 0x8f1   : > { %3890 = vmatprep.subr.bf16.mxu0 %v5389_v44  ;;  %v5477_v44 = vld [vmem:[%s7112_s4 + $0x510] ss:$88 sps:$4 sm:$0xff]  }
 0x8f2   : > { %3864 = vmatpush1.bf16.msra.mxu1 %v5426_v52  ;;  %v5497_v52 = vld [vmem:[%s7112_s4 + $0x1b4] ss:$88 sps:$4 sm:$0xff]  }
 0x8f3   : > { %3841 = vmatmul.mubr.bf16.vlgmr.msra.gmra.mrb[8].mxu0 %v7253_v41  ;;  %3931 = vmatprep.subr.bf16.mxu1 %v5434_v57  ;;  %v5522_v57 = vld [vmem:[%s7112_s4 + $0x518] ss:$88 sps:$4 sm:$0xff]  }
 0x8f4   : > { %3891 = vmatpush1.bf16.msra.mxu0 %v5387_v30  ;;  %3922 = vmatprep.mubr.bf16.mxu0 %v6325_v10  ;;  %v5512_v30 = vld [vmem:[%s7112_s4 + $0x3bc] ss:$88 sps:$4 sm:$0xff]  }
 0x8f5   : > { %3892 = vmatprep.subr.bf16.mxu0 %v5395_v46  ;;  %3882 = vmatmul.mubr.bf16.vlgmr.msra.gmra.mrb[8].mxu1 %v7253_v41  ;;  %v5483_v46 = vld [vmem:[%s7112_s4 + $0x50] ss:$88 sps:$4 sm:$0xff]  }
 0x8f6   : > { %3932 = vmatpush1.bf16.msra.mxu1 %v5432_v43  ;;  %3963 = vmatprep.mubr.bf16.mxu1 %v6325_v10  ;;  %v5501_v43 = vld [vmem:[%s7112_s4 + $0x260] ss:$88 sps:$4 sm:$0xff]  }
 0x8f7   : > { %3933 = vmatprep.subr.bf16.mxu1 %v5440_v54  ;;  %v5509_v54 = vld [vmem:[%s7112_s4 + $0x314] ss:$88 sps:$4 sm:$0xff]  }
 0x8f8   : > { %3893 = vmatpush1.bf16.msra.mxu0 %v5393_v50  ;;  %v5518_v50 = vld [vmem:[%s7112_s4 + $0x46c] ss:$88 sps:$4 sm:$0xff]  }
 0x8f9   : > { %3894 = vmatprep.subr.bf16.mxu0 %v5401_v55  ;;  %v5489_v55 = vld [vmem:[%s7112_s4 + $0x100] ss:$88 sps:$4 sm:$0xff]  }
 0x8fa   : > { %3934 = vmatpush1.bf16.msra.mxu1 %v5438_v58  ;;  %v5521_v58 = vld [vmem:[%s7112_s4 + $0x474] ss:$88 sps:$4 sm:$0xff]  }
 0x8fb   : > { %3935 = vmatprep.subr.bf16.mxu1 %v5446_v59  ;;  %v5519_v59 = vld [vmem:[%s7112_s4 + $0x470] ss:$88 sps:$4 sm:$0xff]  }
 0x8fc   : > { %3895 = vmatpush1.bf16.msra.mxu0 %v5399_v51  ;;  %v5524_v51 = vld [vmem:[%s7112_s4 + $0x51c] ss:$88 sps:$4 sm:$0xff]  }
 0x8fd   : > { %3896 = vmatprep.subr.bf16.mxu0 %v5407_v4  ;;  %v5495_v4 = vld [vmem:[%s7112_s4 + $0x1b0] ss:$88 sps:$4 sm:$0xff]  }
 0x8fe   : > { %3936 = vmatpush1.bf16.msra.mxu1 %v5444_v62  ;;  %v2654_v62 = vlaneseq }
 0x8ff   : > { %3937 = vmatprep.subr.bf16.mxu1 %v5452_v63 }
 0x900   : > { %3897 = vmatpush1.bf16.msra.mxu0 %v5405_v53  ;;  %v5503_v53 = vld [vmem:[%s7112_s4 + $0x264] ss:$88 sps:$4 sm:$0xff]   ;;  %v7423_v63 = vshrl.u32 %v2654_v62, 7 }
 0x901   : > { %3898 = vmatprep.subr.bf16.mxu0 %v5413_v56  ;;  %v5515_v56 = vld [vmem:[%s7112_s4 + $0x3c4] ss:$88 sps:$4 sm:$0xff]  }
 0x902   : > { %3938 = vmatpush1.bf16.msra.mxu1 %v5450_v1  ;;  %v2648_v1 = vld [vmem:[%s7124_s11] sm:$0xff] }
 0x903   : > { %3939 = vmatprep.subr.bf16.mxu1 %v5458_v3 }
 0x904   : > { %3899 = vmatpush1.bf16.msra.mxu0 %v5411_v45  ;;  %v5513_v45 = vld [vmem:[%s7112_s4 + $0x3c0] ss:$88 sps:$4 sm:$0xff]  }
 0x905   : > { %3900 = vmatprep.subr.bf16.mxu0 %v5419_v60  ;;  %v5527_v60 = vld [vmem:[%s7112_s4 + $0x524] ss:$88 sps:$4 sm:$0xff]  }
 0x906   : > { %3940 = vmatpush1.bf16.msra.mxu1 %v5456_v6 }
 0x907   : > { %3941 = vmatprep.subr.bf16.mxu1 %v5464_v8 }
 0x908   : > { %3901 = vmatpush1.bf16.msra.mxu0 %v5417_v61  ;;  %v5525_v61 = vld [vmem:[%s7112_s4 + $0x520] ss:$88 sps:$4 sm:$0xff]  }
 0x909   : > { %3902 = vmatprep.subr.bf16.mxu0 %v5425_v0  ;;  %v7426_v0 = vsub.s32 0, %v7423_v63 }
 0x90a   : > { %3942 = vmatpush1.bf16.msra.mxu1 %v5462_v17 }
 0x90b   : > { %3943 = vmatprep.subr.bf16.mxu1 %v5470_v11  ;;  %v2657_v3 = vrot.slane %v2648_v1, %v7426_v0  ;;  %v7440_v11 = vsub.s32 3, %v7423_v63 }
 0x90c   : > { %3903 = vmatpush1.bf16.msra.mxu0 %v5423_v2  ;;  %v7430_v2 = vsub.s32 1, %v7423_v63 }
 0x90d   : > { %3904 = vmatprep.subr.bf16.mxu0 %v5431_v5 }
 0x90e   : > { %3944 = vmatpush1.bf16.msra.mxu1 %v5468_v13  ;;  %v2661_v5 = vrot.slane %v2648_v1, %v7430_v2  ;;  %v2669_v13 = vrot.slane %v2648_v1, %v7440_v11 }
 0x90f   : > { %3945 = vmatprep.subr.bf16.mxu1 %v5476_v16 }
 0x910   : > { %3905 = vmatpush1.bf16.msra.mxu0 %v5429_v7 }
 0x911   : > { %3972 = vmatprep.subr.bf16.mxu0 %v5437_v15 }
 0x912   : > { %3946 = vmatpush1.bf16.msra.mxu1 %v5474_v19 }
 0x913   : > { %3923 = vmatmul.mubr.bf16.vlgmr.msra.gmra.mrb[12].mxu0 %v7253_v41  ;;  %4013 = vmatprep.subr.bf16.mxu1 %v5482_v21 }
 0x914   : > { %3973 = vmatpush1.bf16.msra.mxu0 %v5435_v9  ;;  %4004 = vmatprep.mubr.bf16.mxu0 %v6325_v10  ;;  %v7437_v9 = vsub.s32 2, %v7423_v63 }
 0x915   : > { %3974 = vmatprep.subr.bf16.mxu0 %v5443_v12  ;;  %3964 = vmatmul.mubr.bf16.vlgmr.msra.gmra.mrb[12].mxu1 %v7253_v41 }
 0x916   : > { %4014 = vmatpush1.bf16.msra.mxu1 %v5480_v23  ;;  %4045 = vmatprep.mubr.bf16.mxu1 %v6325_v10  ;;  %v2665_v12 = vrot.slane %v2648_v1, %v7437_v9  ;;  %v7450_v23 = vsub.s32 5, %v7423_v63 }
 0x917   : > { %4015 = vmatprep.subr.bf16.mxu1 %v5488_v25 }
 0x918   : > { %3975 = vmatpush1.bf16.msra.mxu0 %v5441_v14  ;;  %v2677_v25 = vrot.slane %v2648_v1, %v7450_v23 }
 0x919   : > { %3976 = vmatprep.subr.bf16.mxu0 %v5449_v18 }
 0x91a   : > { %4016 = vmatpush1.bf16.msra.mxu1 %v5486_v27 }
 0x91b   : > { %4017 = vmatprep.subr.bf16.mxu1 %v5494_v29 }
 0x91c   : > { %3977 = vmatpush1.bf16.msra.mxu0 %v5447_v20 }
 0x91d   : > { %3978 = vmatprep.subr.bf16.mxu0 %v5455_v22  ;;  %v7447_v22 = vsub.s32 4, %v7423_v63 }
 0x91e   : > { %4018 = vmatpush1.bf16.msra.mxu1 %v5492_v33 }
 0x91f   : > { %4019 = vmatprep.subr.bf16.mxu1 %v5500_v35  ;;  %v2684_v35 = vsub.s32 7, %v7423_v63 }
 0x920   : > { %3979 = vmatpush1.bf16.msra.mxu0 %v5453_v24  ;;  %v2673_v24 = vrot.slane %v2648_v1, %v7447_v22 }
 0x921   : > { %3980 = vmatprep.subr.bf16.mxu0 %v5461_v26 }
 0x922   : > { %4020 = vmatpush1.bf16.msra.mxu1 %v5498_v37  ;;  %v2685_v37 = vrot.slane %v2648_v1, %v2684_v35 }
 0x923   : > { %4021 = vmatprep.subr.bf16.mxu1 %v5506_v39 }
 0x924   : > { %3981 = vmatpush1.bf16.msra.mxu0 %v5459_v28 }
 0x925   : > { %3982 = vmatprep.subr.bf16.mxu0 %v5467_v31 }
 0x926   : > { %4022 = vmatpush1.bf16.msra.mxu1 %v5504_v42 }
 0x927   : > { %4023 = vmatprep.subr.bf16.mxu1 %v5512_v30 }
 0x928   : > { %3983 = vmatpush1.bf16.msra.mxu0 %v5465_v34  ;;  %v2680_v34 = vsub.s32 6, %v7423_v63 }
 0x929   : > { %3984 = vmatprep.subr.bf16.mxu0 %v5473_v36 }
 0x92a   : > { %4024 = vmatpush1.bf16.msra.mxu1 %v5510_v32  ;;  %v2681_v36 = vrot.slane %v2648_v1, %v2680_v34 }
 0x92b   : > { %4025 = vmatprep.subr.bf16.mxu1 %v5518_v50 }
 0x92c   : > { %3985 = vmatpush1.bf16.msra.mxu0 %v5471_v38 }
 0x92d   : > { %3986 = vmatprep.subr.bf16.mxu0 %v5479_v40 }
 0x92e   : > { %4026 = vmatpush1.bf16.msra.mxu1 %v5516_v49 }
 0x92f   : > { %4027 = vmatprep.subr.bf16.mxu1 %v5524_v51 }
 0x930   : > { %3987 = vmatpush1.bf16.msra.mxu0 %v5477_v44 }
 0x931   : > { %4054 = vmatprep.subr.bf16.mxu0 %v5485_v48  ;;  %v2649_v48 = vld [vmem:[%s7124_s11 + $0x8] sm:$0xff] }
 0x932   : > { %4028 = vmatpush1.bf16.msra.mxu1 %v5522_v57  ;;  %v2689_v32 = vrot.slane %v2649_v48, %v7426_v0  ;;  %v2697_v57 = vrot.slane %v2649_v48, %v7437_v9 }
 0x933   : > { %4005 = vmatmul.mubr.bf16.vlgmr.msra.gmra.mrb[16].mxu0 %v7253_v41 }
 0x934   : > { %4055 = vmatpush1.bf16.msra.mxu0 %v5483_v46  ;;  %4086 = vmatprep.mubr.bf16.mxu0 %v6325_v10  ;;  %v5507_v10 = vld [vmem:[%s7112_s4 + $0x310] ss:$88 sps:$4 sm:$0xff]   ;;  %v2693_v46 = vrot.slane %v2649_v48, %v7430_v2 }
 0x935   : > { %4056 = vmatprep.subr.bf16.mxu0 %v5491_v47  ;;  %4046 = vmatmul.mubr.bf16.vlgmr.msra.gmra.mrb[16].mxu1 %v7253_v41 }
 0x938   : > { %4057 = vmatpush1.bf16.msra.mxu0 %v5489_v55 }
 0x939   : > { %4058 = vmatprep.subr.bf16.mxu0 %v5497_v52 }
 0x93c   : > { %4059 = vmatpush1.bf16.msra.mxu0 %v5495_v4  ;;  %v2701_v4 = vrot.slane %v2649_v48, %v7440_v11 }
 0x93d   : > { %4060 = vmatprep.subr.bf16.mxu0 %v5503_v53 }
 0x940   : > { %4061 = vmatpush1.bf16.msra.mxu0 %v5501_v43 }
 0x941   : > { %4062 = vmatprep.subr.bf16.mxu0 %v5509_v54 }
 0x944   : > { %4063 = vmatpush1.bf16.msra.mxu0 %v5507_v10 }
 0x945   : > { %4064 = vmatprep.subr.bf16.mxu0 %v5515_v56 }
 0x948   : > { %4065 = vmatpush1.bf16.msra.mxu0 %v5513_v45 }
 0x949   : > { %4066 = vmatprep.subr.bf16.mxu0 %v5521_v58  ;;  %v2705_v58 = vrot.slane %v2649_v48, %v7447_v22 }
 0x94c   : > { %4067 = vmatpush1.bf16.msra.mxu0 %v5519_v59  ;;  %v2709_v59 = vrot.slane %v2649_v48, %v7450_v23 }
 0x94d   : > { %4068 = vmatprep.subr.bf16.mxu0 %v5527_v60 }
 0x950   : > { %4069 = vmatpush1.bf16.msra.mxu0 %v5525_v61 }
 0x953   : > { %4087 = vmatmul.mubr.bf16.vlgmr.msra.gmra.mrb[20].mxu0 %v7253_v41 }
 0x986   : > { %v3678_v6 = vpop.f32.mrb[0].mxu0 }
 0x987   : > { %v3679_v7 = vadd.f32 %v3678_v6, %v2657_v3  ;;  %v3680_v8 = vpop.f32.mrb[1].mxu0  ;;  %v2717_v6 = vrot.slane %v2649_v48, %v2684_v35 }
 0x988   : > { %v3681_v15 = vadd.f32 %v3680_v8, %v2661_v5  ;;  %v3682_v41 = vpop.f32.mrb[2].mxu0  ;;  %v3719_v14 = vpop.f32.mrb[0].mxu1  ;;  %v2713_v5 = vrot.slane %v2649_v48, %v2680_v34 }
 0x989   : > { %4095 = vst [vmem:[%s7122_s17] sm:$0xff] %v3679_v7  ;;  %v3683_v17 = vpop.f32.mrb[3].mxu0  ;;  %v3720_v16 = vadd.f32 %v3719_v14, %v2665_v12  ;;  %v3721_v18 = vpop.f32.mrb[1].mxu1 }
 0x98a   : > { %4096 = vst [vmem:[%s7122_s17 + $0x8] sm:$0xff] %v3681_v15  ;;  %v3722_v19 = vadd.f32 %v3721_v18, %v2669_v13  ;;  %v3723_v20 = vpop.f32.mrb[2].mxu1  ;;  %v2650_v13 = vld [vmem:[%s7124_s11 + $0x10] sm:$0x3f] }
 0x98b   : > { %4097 = vst [vmem:[%s7122_s17 + $0x10] sm:$0xff] %v3720_v16  ;;  %v3724_v21 = vpop.f32.mrb[3].mxu1  ;;  %v2721_v14 = vrot.slane %v2650_v13, %v7426_v0  ;;  %v2725_v16 = vrot.slane %v2650_v13, %v7430_v2  ;;  %v2737_v34 = vrot.slane %v2650_v13, %v7447_v22  ;;  %v2741_v35 = vrot.slane %v2650_v13, %v7450_v23 }
 0x98c   : > { %4098 = vst [vmem:[%s7122_s17 + $0x18] sm:$0xff] %v3722_v19 }
 0x9a6   : > { %v3760_v26 = vpop.f32.mrb[4].mxu0 }
 0x9a7   : > { %v3761_v27 = vadd.f32 %v3760_v26, %v2673_v24  ;;  %v3762_v28 = vpop.f32.mrb[5].mxu0  ;;  %v2729_v26 = vrot.slane %v2650_v13, %v7437_v9 }
 0x9a8   : > { %v3763_v29 = vadd.f32 %v3762_v28, %v2677_v25  ;;  %v3764_v31 = vpop.f32.mrb[6].mxu0  ;;  %v3801_v38 = vpop.f32.mrb[4].mxu1 }
 0x9a9   : > { %4099 = vst [vmem:[%s7122_s17 + $0x20] sm:$0xff] %v3761_v27  ;;  %v3765_v33 = vpop.f32.mrb[7].mxu0  ;;  %v3802_v39 = vadd.f32 %v3801_v38, %v2681_v36  ;;  %v3803_v40 = vpop.f32.mrb[5].mxu1  ;;  %v2733_v27 = vrot.slane %v2650_v13, %v7440_v11 }
 0x9aa   : > { %4100 = vst [vmem:[%s7122_s17 + $0x28] sm:$0xff] %v3763_v29  ;;  %v3804_v42 = vadd.f32 %v3803_v40, %v2685_v37  ;;  %v3805_v44 = vpop.f32.mrb[6].mxu1 }
 0x9ab   : > { %4101 = vst [vmem:[%s7122_s17 + $0x30] sm:$0xff] %v3802_v39  ;;  %v3806_v30 = vpop.f32.mrb[7].mxu1 }
 0x9ac   : > { %4102 = vst [vmem:[%s7122_s17 + $0x38] sm:$0xff] %v3804_v42 }
 0x9c6   : > { %v3842_v50 = vpop.f32.mrb[8].mxu0 }
 0x9c7   : > { %v3843_v47 = vadd.f32 %v3842_v50, %v2689_v32  ;;  %v3844_v49 = vpop.f32.mrb[9].mxu0 }
 0x9c8   : > { %v3845_v55 = vadd.f32 %v3844_v49, %v2693_v46  ;;  %v3846_v51 = vpop.f32.mrb[10].mxu0  ;;  %v3883_v53 = vpop.f32.mrb[8].mxu1 }
 0x9c9   : > { %4103 = vst [vmem:[%s7122_s17 + $0x40] sm:$0xff] %v3843_v47  ;;  %v3847_v52 = vpop.f32.mrb[11].mxu0  ;;  %v3884_v43 = vadd.f32 %v3883_v53, %v2697_v57  ;;  %v3885_v54 = vpop.f32.mrb[9].mxu1 }
 0x9ca   : > { %4104 = vst [vmem:[%s7122_s17 + $0x48] sm:$0xff] %v3845_v55  ;;  %v3886_v10 = vadd.f32 %v3885_v54, %v2701_v4  ;;  %v3887_v56 = vpop.f32.mrb[10].mxu1 }
 0x9cb   : > { %4105 = vst [vmem:[%s7122_s17 + $0x50] sm:$0xff] %v3884_v43  ;;  %v3888_v45 = vpop.f32.mrb[11].mxu1 }
 0x9cc   : > { %4106 = vst [vmem:[%s7122_s17 + $0x58] sm:$0xff] %v3886_v10 }
 0x9e6   : > { %v3924_v60 = vpop.f32.mrb[12].mxu0 }
 0x9e7   : > { %v3925_v61 = vadd.f32 %v3924_v60, %v2705_v58  ;;  %v3926_v62 = vpop.f32.mrb[13].mxu0 }
 0x9e8   : > { %v3927_v63 = vadd.f32 %v3926_v62, %v2709_v59  ;;  %v3928_v1 = vpop.f32.mrb[14].mxu0  ;;  %v3965_v7 = vpop.f32.mrb[12].mxu1 }
 0x9e9   : > { %4107 = vst [vmem:[%s7122_s17 + $0x60] sm:$0xff] %v3925_v61  ;;  %v3929_v3 = vpop.f32.mrb[15].mxu0  ;;  %v3966_v8 = vadd.f32 %v3965_v7, %v2713_v5  ;;  %v3967_v15 = vpop.f32.mrb[13].mxu1 }
 0x9ea   : > { %4108 = vst [vmem:[%s7122_s17 + $0x68] sm:$0xff] %v3927_v63  ;;  %v3968_v41 = vadd.f32 %v3967_v15, %v2717_v6  ;;  %v3969_v17 = vpop.f32.mrb[14].mxu1 }
 0x9eb   : > { %4109 = vst [vmem:[%s7122_s17 + $0x70] sm:$0xff] %v3966_v8  ;;  %v3970_v12 = vpop.f32.mrb[15].mxu1 }
 0x9ec   : > { %4110 = vst [vmem:[%s7122_s17 + $0x78] sm:$0xff] %v3968_v41 }
 0xa06   : > { %v4006_v18 = vpop.f32.mrb[16].mxu0 }
 0xa07   : > { %v4007_v19 = vadd.f32 %v4006_v18, %v2721_v14  ;;  %v4008_v20 = vpop.f32.mrb[17].mxu0 }
 0xa08   : > { %v4009_v21 = vadd.f32 %v4008_v20, %v2725_v16  ;;  %v4010_v24 = vpop.f32.mrb[18].mxu0  ;;  %v4047_v28 = vpop.f32.mrb[16].mxu1 }
 0xa09   : > { %4111 = vst [vmem:[%s7122_s17 + $0x80] sm:$0xff] %v4007_v19  ;;  %v4011_v25 = vpop.f32.mrb[19].mxu0  ;;  %v4048_v29 = vadd.f32 %v4047_v28, %v2729_v26  ;;  %v4049_v0 = vpop.f32.mrb[17].mxu1 }
 0xa0a   : > { %4112 = vst [vmem:[%s7122_s17 + $0x88] sm:$0xff] %v4009_v21  ;;  %v4050_v2 = vadd.f32 %v4049_v0, %v2733_v27  ;;  %v4051_v31 = vpop.f32.mrb[18].mxu1 }
 0xa0b   : > { %4113 = vst [vmem:[%s7122_s17 + $0x90] sm:$0xff] %v4048_v29  ;;  %v4052_v33 = vpop.f32.mrb[19].mxu1 }
 0xa0c   : > { %4114 = vst [vmem:[%s7122_s17 + $0x98] sm:$0xff] %v4050_v2 }
 0xa26   : > { %v4088_v36 = vpop.f32.mrb[20].mxu0 }
 0xa27   : > { %v4089_v37 = vadd.f32 %v4088_v36, %v2737_v34  ;;  %v4090_v38 = vpop.f32.mrb[21].mxu0 }
 0xa28   : > { %v4091_v9 = vadd.f32 %v4090_v38, %v2741_v35  ;;  %v4092_v39 = vpop.f32.mrb[22].mxu0 }
 0xa29   : > { %4115 = vst [vmem:[%s7122_s17 + $0xa0] sm:$0xff] %v4089_v37  ;;  %v4093_v11 = vpop.f32.mrb[23].mxu0 }
 0xa2a   : > { %4116 = vst [vmem:[%s7122_s17 + $0xa8] sm:$0xff] %v4091_v9 }
 0xa2b PF: > { %p44_p1 = scmp.ge.s32.totalorder %s6746_s24, 8   ;;  %s7665_s29 = smov %s6278_s2 }
 0xa2c   : > { %s7666_s2 = smov %s6282_s6  ;;  %s7667_s6 = smov %s6757_s13 }
 0xa2d   : > { %s7668_s30 = smov %s6746_s24  ;;  %46 = sbr.rel (!%p44_p1) target bundleno = 40 (0x28), region = 262 }
 0xa34   :  { %4139 = vsyncpa [#allocation4], 1 }
 0xa35   :  { %4141 = vsyncpa [#allocation4 + $0x1], 1 }
 0xa36   :  { %4142 = vsyncpa [#allocation6], 1 }
 0xa37   :  { %4143 = vsyncpa [#allocation9], 1 }
 0xa38   :  { %4144 = vsyncpa [#allocation12], 1 }
 0xa39   :  { %4145 = vsyncpa [#allocation15], 1 }
 0xa3a   :  { %4146 = vsyncpa [#allocation18], 1 }
 0xa3b   :  { %4147 = vsyncpa [#allocation21], 1 }
 0xa3c   :  { %4148 = vsyncpa [#allocation24], 1 }
 0xa3d   :  { %4149 = vsyncpa [#allocation27], 1 }
 0xa3e   :  { %4150 = vsyncpa [#allocation30], 1 }
 0xa3f   :  { %4151 = vsyncpa [#allocation33], 1 }
 0xa40   :  { %4152 = vsyncpa [#allocation36], 1 }

</bundles_post_ra>
